<compile_context>
chip_gen: v7x
topology: tpu7x:2x2x1
jax: 0.10.0
libtpu: 0.0.40
codegen_flags: <defaults>
</compile_context>

<pallas_src>
import math
import functools

import jax
import jax.numpy as jnp
from jax.experimental import pallas as pl
from jax.experimental.pallas import tpu as pltpu

BN_EPS = 1e-5
LEAKY_SLOPE = 0.01  # torch.nn.LeakyReLU default


def _leaky_relu(x):
    return jnp.where(x >= 0, x, LEAKY_SLOPE * x)


def _batch_seq_norm(z2d, gamma, beta):
    # BatchSeqNorm == nn.BatchNorm1d on the flattened (B*N, D) tensor,
    # training-mode forward (biased batch statistics over B*N), affine.
    # TODO(synk): running_mean / running_var buffer updates (stateful training
    #             side effect) are not replicated in this pure forward kernel.
    m = jnp.mean(z2d, axis=0, keepdims=True)
    v = jnp.mean(jnp.square(z2d - m), axis=0, keepdims=True)
    return gamma * (z2d - m) * jax.lax.rsqrt(v + BN_EPS) + beta


def _encoder_kernel(ek_ref, x_ref, e_ref,
                    wqv_ref, wprj_ref, bprj_ref,
                    g1_ref, be1_ref, g2_ref, be2_ref,
                    w1_ref, b1_ref, w2_ref, b2_ref,
                    o_ref, pool_ref, h_buf, *, B, N, H, Dh):
    """One EdgeWeightedTransformerLayer per grid step (postnormalize=True, mask=None)."""
    # TODO(synk): the optional attention mask is not implemented (the encoder
    #             always calls its layers with mask=None).
    l = pl.program_id(0)
    last = pl.num_programs(0) - 1
    HDh = H * Dh

    # Layer 0: load the node features into the VMEM carry buffer.
    @pl.when(l == 0)
    def _():
        h_buf[...] = x_ref[...]

    x2d = h_buf[...]                 # (B*N, D) f32 carry (stays on-chip all layers)
    e2 = e_ref[...]                  # (B*N, M) f32, attended node M on lanes

    # ---- fused q|v projection on the MXU (bf16 inputs, f32 accumulation) ------
    # k is dropped: q.k is constant along the softmax axis => cancels exactly.
    qv = jnp.dot(x2d.astype(jnp.bfloat16), wqv_ref[...],
                 preferred_element_type=jnp.float32)           # (B*N, 2*HDh)
    q_s = qv[:, :HDh] * (1.0 / math.sqrt(Dh))                  # scale folded into q
    v2d = qv[:, HDh:]                                          # (B*N, HDh)

    # ---- edge-modulated attention scores (ekv never materialized) -------------
    # dots[bn, m] (head h) = sum_d (q_d/sqrt(Dh)) * LeakyReLU(e*wk[h,d] + bk[h,d])
    attn = []
    for h in range(H):
        de = jnp.zeros((B * N, N), jnp.float32)
        for d in range(Dh):
            c = h * Dh + d
            q_c = q_s[:, c:c + 1]                              # (B*N, 1)
            wk_c = ek_ref[l, c]                                # SMEM scalars
            bk_c = ek_ref[l, 2 * HDh + c]
            de = de + q_c * _leaky_relu(e2 * wk_c + bk_c)      # (B*N, M)
        dots = de - jnp.max(de, axis=-1, keepdims=True)
        p = jnp.exp(dots)
        denom = jnp.sum(p, axis=-1, keepdims=True)
        attn.append(p * pl.reciprocal(denom, approx=True))     # softmax over M

    # ---- edge-modulated value aggregation --------------------------------------
    # hat[bn, h*Dh+d] = v + sum_m attn[h][bn, m] * LeakyReLU(e*wv[h,d] + bv[h,d])
    ecols = []
    for h in range(H):
        a_h = attn[h]
        for d in range(Dh):
            c = h * Dh + d
            wv_c = ek_ref[l, HDh + c]
            bv_c = ek_ref[l, 3 * HDh + c]
            t = _leaky_relu(e2 * wv_c + bv_c)                  # (B*N, M)
            ecols.append(jnp.sum(a_h * t, axis=-1, keepdims=True))
    hat = v2d + jnp.concatenate(ecols, axis=-1)                # (B*N, HDh)

    prj = jnp.dot(hat.astype(jnp.bfloat16), wprj_ref[...],
                  preferred_element_type=jnp.float32) + bprj_ref[...]

    # postnormalize=True:  y = BN1(x + mha(x));  out = BN2(y + mlp(y))
    y = _batch_seq_norm(x2d + prj, g1_ref[...], be1_ref[...])
    hid = jnp.maximum(
        jnp.dot(y.astype(jnp.bfloat16), w1_ref[...],
                preferred_element_type=jnp.float32) + b1_ref[...], 0.0)
    mlp = jnp.dot(hid.astype(jnp.bfloat16), w2_ref[...],
                  preferred_element_type=jnp.float32) + b2_ref[...]
    out = _batch_seq_norm(y + mlp, g2_ref[...], be2_ref[...])

    h_buf[...] = out                 # carry to the next layer (stays in VMEM)

    @pl.when(l == last)
    def _():
        o_ref[...] = out             # single HBM writeback for the whole encoder
        # Fused graph mean-pool: h.mean(dim=1), computed once on the final layer.
        inv_n = 1.0 / N
        for b in range(B):
            seg = out[b * N:(b + 1) * N, :]                    # (N, D) static slice
            pool_ref[b:b + 1, :] = jnp.sum(seg, axis=0, keepdims=True) * inv_n


def edge_weighted_graph_encoder(layer_params, nodes, edges, H, Dh):
    """Fused Pallas forward: returns (h, h.mean(dim=1)) like the PyTorch module."""
    B, N, D = nodes.shape
    L = len(layer_params)
    HDh = H * Dh
    FF = layer_params[0][9].shape[-1]

    def stack(i, dtype=None):
        a = jnp.stack([p[i] for p in layer_params], axis=0)
        return a.astype(dtype) if dtype is not None else a

    # Big matmul weights pre-cast to bf16 (MXU-native); everything else f32.
    wqkv_s = stack(0)                                          # (L, D, 3*HDh) f32
    # Keep only q|v columns: k provably never affects the forward output.
    wqv_s = jnp.concatenate([wqkv_s[..., :HDh], wqkv_s[..., 2 * HDh:]],
                            axis=-1).astype(jnp.bfloat16)      # (L, D, 2*HDh)
    wek_s, bek_s = stack(1), stack(2)                          # (L, 1, 2*HDh)
    wprj_s = stack(3, jnp.bfloat16)                            # (L, HDh, D)
    bprj_s = stack(4)                                          # (L, 1, D)
    g1_s, be1_s, g2_s, be2_s = stack(5), stack(6), stack(7), stack(8)
    w1_s = stack(9, jnp.bfloat16)                              # (L, D, FF)
    b1_s = stack(10)                                           # (L, 1, FF)
    w2_s = stack(11, jnp.bfloat16)                             # (L, FF, D)
    b2_s = stack(12)                                           # (L, 1, D)

    # Tiny edge-modulation Linear(1, 2*H*Dh) packed into an SMEM scalar table:
    # per layer: [wk(HDh) | wv(HDh) | bk(HDh) | bv(HDh)].
    ek_tab = jnp.concatenate(
        [wek_s[:, 0, :HDh], wek_s[:, 0, HDh:],
         bek_s[:, 0, :HDh], bek_s[:, 0, HDh:]], axis=-1)       # (L, 4*HDh) f32

    def pspec(shape):
        return pl.BlockSpec((None,) + shape, lambda l: (l,) + (0,) * len(shape))

    kern = functools.partial(_encoder_kernel, B=B, N=N, H=H, Dh=Dh)
    out2d, pooled = pl.pallas_call(
        kern,
        out_shape=(jax.ShapeDtypeStruct((B * N, D), jnp.float32),
                   jax.ShapeDtypeStruct((B, D), jnp.float32)),
        grid=(L,),
        in_specs=[
            pl.BlockSpec(memory_space=pltpu.MemorySpace.SMEM),   # ek_tab (scalars)
            pl.BlockSpec((B * N, D), lambda l: (0, 0)),          # nodes (flat)
            pl.BlockSpec((B * N, N), lambda l: (0, 0)),          # edges (flat, resident)
            pspec((D, 2 * HDh)),                                 # wqv    (bf16)
            pspec((HDh, D)),                                     # wprj   (bf16)
            pspec((1, D)),                                       # bprj
            pspec((1, D)),                                       # bn1 gamma
            pspec((1, D)),                                       # bn1 beta
            pspec((1, D)),                                       # bn2 gamma
            pspec((1, D)),                                       # bn2 beta
            pspec((D, FF)),                                      # mlp w1 (bf16)
            pspec((1, FF)),                                      # mlp b1
            pspec((FF, D)),                                      # mlp w2 (bf16)
            pspec((1, D)),                                       # mlp b2
        ],
        out_specs=(pl.BlockSpec((B * N, D), lambda l: (0, 0)),   # node features
                   pl.BlockSpec((B, D), lambda l: (0, 0))),      # graph mean-pool
        scratch_shapes=[pltpu.VMEM((B * N, D), jnp.float32)],    # node-feature carry
        compiler_params=pltpu.CompilerParams(
            dimension_semantics=("arbitrary",),   # layer axis is a sequential carry
            vmem_limit_bytes=32 * 1024 * 1024),
    )(ek_tab, nodes.reshape(B * N, D), edges.reshape(B * N, N),
      wqv_s, wprj_s, bprj_s, g1_s, be1_s, g2_s, be2_s,
      w1_s, b1_s, w2_s, b2_s)

    return out2d.reshape(B, N, D), pooled


# ----------------------------- pure-JAX reference ------------------------------
# Full-fidelity math (keeps the k projection and the q.k term) so the check also
# validates the softmax shift-invariance optimization used in the kernel.

def _ref_layer(x2d, e, p, H, Dh):
    (wqkv, wek, bek, wprj, bprj, g1, be1, g2, be2, w1, b1, w2, b2) = p
    B, N, M = e.shape
    HDh = H * Dh
    bf = jnp.bfloat16

    qkv = jnp.dot(x2d.astype(bf), wqkv.astype(bf), preferred_element_type=jnp.float32)
    q = qkv[:, :HDh].reshape(B, N, H, Dh)
    k = qkv[:, HDh:2 * HDh].reshape(B, N, H, Dh)
    v = qkv[:, 2 * HDh:]

    ekv = _leaky_relu(e[:, :, :, None] * wek.reshape(1, 1, 1, 2 * HDh)
                      + bek.reshape(1, 1, 1, 2 * HDh))             # (B,N,M,2*HDh)
    ekm = ekv[..., :HDh].reshape(B, N, M, H, Dh)
    evm = ekv[..., HDh:].reshape(B, N, M, H, Dh)

    qk = jnp.sum(q * k, axis=-1)                                   # (B,N,H)
    qe = jnp.sum(q[:, :, None, :, :] * ekm, axis=-1)               # (B,N,M,H)
    dots = (qk[:, :, None, :] + qe) / math.sqrt(Dh)
    dots = dots - jnp.max(dots, axis=2, keepdims=True)
    pexp = jnp.exp(dots)
    attn = pexp / jnp.sum(pexp, axis=2, keepdims=True)             # softmax over M
    E = jnp.sum(attn[..., None] * evm, axis=2)                     # (B,N,H,Dh)
    hat = v + E.reshape(B * N, HDh)

    prj = jnp.dot(hat.astype(bf), wprj.astype(bf),
                  preferred_element_type=jnp.float32) + bprj
    y = _batch_seq_norm(x2d + prj, g1, be1)
    hid = jnp.maximum(jnp.dot(y.astype(bf), w1.astype(bf),
                              preferred_element_type=jnp.float32) + b1, 0.0)
    mlp = jnp.dot(hid.astype(bf), w2.astype(bf),
                  preferred_element_type=jnp.float32) + b2
    return _batch_seq_norm(y + mlp, g2, be2)


def _ref_encoder(layer_params, nodes, edges, H, Dh):
    B, N, D = nodes.shape
    x2d = nodes.reshape(B * N, D)
    for p in layer_params:
        x2d = _ref_layer(x2d, edges, p, H, Dh)
    h = x2d.reshape(B, N, D)
    return h, jnp.mean(h, axis=1)


def init_layer_params(key, D, H, Dh, FF):
    """Deterministic synthetic init mirroring the module's parameter shapes."""
    HDh = H * Dh
    ks = jax.random.split(key, 8)
    s_qkv = 1.0 / math.sqrt(Dh)
    wqkv = jax.random.uniform(ks[0], (D, 3 * HDh), jnp.float32, -s_qkv, s_qkv)
    # ekv = nn.Linear(1, 2*H*Dh): default torch init is U(-1, 1) since fan_in=1
    wek = jax.random.uniform(ks[1], (1, 2 * HDh), jnp.float32, -1.0, 1.0)
    bek = jax.random.uniform(ks[2], (1, 2 * HDh), jnp.float32, -1.0, 1.0)
    s_prj = 1.0 / math.sqrt(D)
    wprj = jax.random.uniform(ks[3], (HDh, D), jnp.float32, -s_prj, s_prj)
    bprj = jnp.zeros((1, D), jnp.float32)          # reset_parameters zeros prj bias
    g1 = jnp.ones((1, D), jnp.float32)
    be1 = jnp.zeros((1, D), jnp.float32)
    g2 = jnp.ones((1, D), jnp.float32)
    be2 = jnp.zeros((1, D), jnp.float32)
    s1 = 1.0 / math.sqrt(D)
    w1 = jax.random.uniform(ks[4], (D, FF), jnp.float32, -s1, s1)
    b1 = jax.random.uniform(ks[5], (1, FF), jnp.float32, -s1, s1)
    s2 = 1.0 / math.sqrt(FF)
    w2 = jax.random.uniform(ks[6], (FF, D), jnp.float32, -s2, s2)
    b2 = jax.random.uniform(ks[7], (1, D), jnp.float32, -s2, s2)
    return [wqkv, wek, bek, wprj, bprj, g1, be1, g2, be2, w1, b1, w2, b2]


if __name__ == "__main__":
    # input['nodes']: (B, N, embed_dim), input['edges']: (B, N, N)
    B, N, D = 2, 8, 32
    n_heads, n_layers, FF = 4, 2, 512
    Dh = D // n_heads

    key = jax.random.PRNGKey(0)
    key, kn, ke = jax.random.split(key, 3)
    nodes = jax.random.normal(kn, (B, N, D), jnp.float32)
    edges = jax.random.uniform(ke, (B, N, N), jnp.float32)

    layer_params = []
    for _ in range(n_layers):
        key, sub = jax.random.split(key)
        layer_params.append(init_layer_params(sub, D, n_heads, Dh, FF))

    fwd = jax.jit(functools.partial(edge_weighted_graph_encoder, H=n_heads, Dh=Dh))
    h, h_mean = fwd(layer_params, nodes, edges)
    jax.block_until_ready((h, h_mean))

    # Check the fused Pallas encoder against the same math run through XLA
    # (bf16 matmuls / f32 elsewhere; tolerance covers the EUP approx reciprocal).
    rh, rhm = jax.jit(functools.partial(_ref_encoder, H=n_heads, Dh=Dh))(
        layer_params, nodes, edges)
    assert h.shape == (B, N, D) and h_mean.shape == (B, D)
    assert jnp.allclose(h, rh, atol=2e-2, rtol=2e-2), "node output mismatch"
    assert jnp.allclose(h_mean, rhm, atol=2e-2, rtol=2e-2), "graph mean mismatch"

    print("KERNEL_OK")
</pallas_src>

<mosaic_0001>
module attributes {stable_mosaic.version = 11 : i64} {
  func.func @_encoder_kernel(%arg0: i32, %arg1: memref<2x128xf32, #tpu.memory_space<smem>>, %arg2: memref<16x32xf32, #tpu.memory_space<vmem>>, %arg3: memref<16x8xf32, #tpu.memory_space<vmem>>, %arg4: memref<1x32x64xbf16, #tpu.memory_space<vmem>>, %arg5: memref<1x32x32xbf16, #tpu.memory_space<vmem>>, %arg6: memref<1x1x32xf32, #tpu.memory_space<vmem>>, %arg7: memref<1x1x32xf32, #tpu.memory_space<vmem>>, %arg8: memref<1x1x32xf32, #tpu.memory_space<vmem>>, %arg9: memref<1x1x32xf32, #tpu.memory_space<vmem>>, %arg10: memref<1x1x32xf32, #tpu.memory_space<vmem>>, %arg11: memref<1x32x512xbf16, #tpu.memory_space<vmem>>, %arg12: memref<1x1x512xf32, #tpu.memory_space<vmem>>, %arg13: memref<1x512x32xbf16, #tpu.memory_space<vmem>>, %arg14: memref<1x1x32xf32, #tpu.memory_space<vmem>>, %arg15: memref<16x32xf32, #tpu.memory_space<vmem>>, %arg16: memref<2x32xf32, #tpu.memory_space<vmem>>, %arg17: memref<16x32xf32, #tpu.memory_space<vmem>>) attributes {dimension_semantics = [#tpu.dimension_semantics<arbitrary>], iteration_bounds = array<i64: 2>, scalar_prefetch = 0 : i64, scratch_operands = 1 : i64, tpu.core_type = #tpu.core_type<tc>, window_params = [{transform_indices = @transform_0, window_bounds = array<i64: 2, 128>}, {pipeline_mode = #tpu.pipeline_mode<synchronous>, transform_indices = @transform_1, window_bounds = array<i64: 16, 32>}, {pipeline_mode = #tpu.pipeline_mode<synchronous>, transform_indices = @transform_2, window_bounds = array<i64: 16, 8>}, {transform_indices = @transform_3, window_bounds = array<i64: 1, 32, 64>}, {transform_indices = @transform_4, window_bounds = array<i64: 1, 32, 32>}, {transform_indices = @transform_5, window_bounds = array<i64: 1, 1, 32>}, {transform_indices = @transform_6, window_bounds = array<i64: 1, 1, 32>}, {transform_indices = @transform_7, window_bounds = array<i64: 1, 1, 32>}, {transform_indices = @transform_8, window_bounds = array<i64: 1, 1, 32>}, {transform_indices = @transform_9, window_bounds = array<i64: 1, 1, 32>}, {transform_indices = @transform_10, window_bounds = array<i64: 1, 32, 512>}, {transform_indices = @transform_11, window_bounds = array<i64: 1, 1, 512>}, {transform_indices = @transform_12, window_bounds = array<i64: 1, 512, 32>}, {transform_indices = @transform_13, window_bounds = array<i64: 1, 1, 32>}, {pipeline_mode = #tpu.pipeline_mode<synchronous>, transform_indices = @transform_14, window_bounds = array<i64: 16, 32>}, {pipeline_mode = #tpu.pipeline_mode<synchronous>, transform_indices = @transform_15, window_bounds = array<i64: 2, 32>}]} {
    %c0_i32 = arith.constant 0 : i32
    %0 = arith.cmpi eq, %arg0, %c0_i32 : i32
    %1 = arith.extui %0 : i1 to i32
    %c0_i32_0 = arith.constant 0 : i32
    %2 = arith.cmpi ne, %1, %c0_i32_0 : i32
    scf.if %2 {
      %c0_228 = arith.constant 0 : index
      %c0_229 = arith.constant 0 : index
      %1201 = vector.load %arg2[%c0_228, %c0_229] : memref<16x32xf32, #tpu.memory_space<vmem>>, vector<16x32xf32>
      %c0_230 = arith.constant 0 : index
      %c0_231 = arith.constant 0 : index
      %1202 = vector.load %arg17[%c0_230, %c0_231] : memref<16x32xf32, #tpu.memory_space<vmem>>, vector<16x32xf32>
      tpu.vector_store %arg17[%c0_230, %c0_231], %1201 {strides = array<i32>} : memref<16x32xf32, #tpu.memory_space<vmem>>, vector<16x32xf32>,
    } else {
    }
    %c0 = arith.constant 0 : index
    %c0_1 = arith.constant 0 : index
    %3 = vector.load %arg17[%c0, %c0_1] : memref<16x32xf32, #tpu.memory_space<vmem>>, vector<16x32xf32>
    %c0_2 = arith.constant 0 : index
    %c0_3 = arith.constant 0 : index
    %4 = vector.load %arg3[%c0_2, %c0_3] : memref<16x8xf32, #tpu.memory_space<vmem>>, vector<16x8xf32>
    %5 = arith.truncf %3 : vector<16x32xf32> to vector<16x32xbf16>
    %c0_4 = arith.constant 0 : index
    %c0_5 = arith.constant 0 : index
    %c0_6 = arith.constant 0 : index
    %6 = vector.load %arg4[%c0_4, %c0_5, %c0_6] : memref<1x32x64xbf16, #tpu.memory_space<vmem>>, vector<1x32x64xbf16>
    %7 = vector.shape_cast %6 : vector<1x32x64xbf16> to vector<32x64xbf16>
    %cst = arith.constant dense<0.000000e+00> : vector<16x64xf32>
    %8 = tpu.matmul %5, %7, %cst {dimension_numbers = #tpu.dot_dimension_numbers<[1], [0], [0], [1], [0, 0, 1, 1], [], []>} : vector<16x32xbf16>, vector<32x64xbf16>, vector<16x64xf32> -> vector<16x64xf32>
    %9 = vector.extract_strided_slice %8 {offsets = [0, 0], sizes = [16, 32], strides = [1, 1]} : vector<16x64xf32> to vector<16x32xf32>
    %cst_7 = arith.constant 0.353553385 : f32
    %10 = vector.broadcast %cst_7 : f32 to vector<16x32xf32>
    %11 = arith.mulf %9, %10 : vector<16x32xf32>
    %12 = vector.extract_strided_slice %8 {offsets = [0, 32], sizes = [16, 32], strides = [1, 1]} : vector<16x64xf32> to vector<16x32xf32>
    %cst_8 = arith.constant 0.000000e+00 : f32
    %13 = vector.broadcast %cst_8 : f32 to vector<16x8xf32>
    %14 = vector.extract_strided_slice %11 {offsets = [0, 0], sizes = [16, 1], strides = [1, 1]} : vector<16x32xf32> to vector<16x1xf32>
    %15 = arith.index_cast %arg0 : i32 to index
    %c0_9 = arith.constant 0 : index
    %16 = memref.load %arg1[%15, %c0_9] : memref<2x128xf32, #tpu.memory_space<smem>>
    %17 = arith.index_cast %arg0 : i32 to index
    %c64 = arith.constant 64 : index
    %18 = memref.load %arg1[%17, %c64] : memref<2x128xf32, #tpu.memory_space<smem>>
    %19 = vector.broadcast %16 : f32 to vector<16x8xf32>
    %20 = arith.mulf %4, %19 : vector<16x8xf32>
    %21 = vector.broadcast %18 : f32 to vector<16x8xf32>
    %22 = arith.addf %20, %21 : vector<16x8xf32>
    %cst_10 = arith.constant 0.000000e+00 : f32
    %23 = vector.broadcast %cst_10 : f32 to vector<16x8xf32>
    %24 = arith.cmpf oge, %22, %23 : vector<16x8xf32>
    %cst_11 = arith.constant 0.00999999977 : f32
    %25 = vector.broadcast %cst_11 : f32 to vector<16x8xf32>
    %26 = arith.mulf %25, %22 : vector<16x8xf32>
    %27 = arith.select %24, %22, %26 : vector<16x8xi1>, vector<16x8xf32>
    %28 = vector.broadcast %14 : vector<16x1xf32> to vector<16x8xf32>
    %29 = arith.mulf %28, %27 : vector<16x8xf32>
    %30 = arith.addf %13, %29 : vector<16x8xf32>
    %31 = vector.extract_strided_slice %11 {offsets = [0, 1], sizes = [16, 1], strides = [1, 1]} : vector<16x32xf32> to vector<16x1xf32>
    %32 = arith.index_cast %arg0 : i32 to index
    %c1 = arith.constant 1 : index
    %33 = memref.load %arg1[%32, %c1] : memref<2x128xf32, #tpu.memory_space<smem>>
    %34 = arith.index_cast %arg0 : i32 to index
    %c65 = arith.constant 65 : index
    %35 = memref.load %arg1[%34, %c65] : memref<2x128xf32, #tpu.memory_space<smem>>
    %36 = vector.broadcast %33 : f32 to vector<16x8xf32>
    %37 = arith.mulf %4, %36 : vector<16x8xf32>
    %38 = vector.broadcast %35 : f32 to vector<16x8xf32>
    %39 = arith.addf %37, %38 : vector<16x8xf32>
    %cst_12 = arith.constant 0.000000e+00 : f32
    %40 = vector.broadcast %cst_12 : f32 to vector<16x8xf32>
    %41 = arith.cmpf oge, %39, %40 : vector<16x8xf32>
    %cst_13 = arith.constant 0.00999999977 : f32
    %42 = vector.broadcast %cst_13 : f32 to vector<16x8xf32>
    %43 = arith.mulf %42, %39 : vector<16x8xf32>
    %44 = arith.select %41, %39, %43 : vector<16x8xi1>, vector<16x8xf32>
    %45 = vector.broadcast %31 : vector<16x1xf32> to vector<16x8xf32>
    %46 = arith.mulf %45, %44 : vector<16x8xf32>
    %47 = arith.addf %30, %46 : vector<16x8xf32>
    %48 = vector.extract_strided_slice %11 {offsets = [0, 2], sizes = [16, 1], strides = [1, 1]} : vector<16x32xf32> to vector<16x1xf32>
    %49 = arith.index_cast %arg0 : i32 to index
    %c2 = arith.constant 2 : index
    %50 = memref.load %arg1[%49, %c2] : memref<2x128xf32, #tpu.memory_space<smem>>
    %51 = arith.index_cast %arg0 : i32 to index
    %c66 = arith.constant 66 : index
    %52 = memref.load %arg1[%51, %c66] : memref<2x128xf32, #tpu.memory_space<smem>>
    %53 = vector.broadcast %50 : f32 to vector<16x8xf32>
    %54 = arith.mulf %4, %53 : vector<16x8xf32>
    %55 = vector.broadcast %52 : f32 to vector<16x8xf32>
    %56 = arith.addf %54, %55 : vector<16x8xf32>
    %cst_14 = arith.constant 0.000000e+00 : f32
    %57 = vector.broadcast %cst_14 : f32 to vector<16x8xf32>
    %58 = arith.cmpf oge, %56, %57 : vector<16x8xf32>
    %cst_15 = arith.constant 0.00999999977 : f32
    %59 = vector.broadcast %cst_15 : f32 to vector<16x8xf32>
    %60 = arith.mulf %59, %56 : vector<16x8xf32>
    %61 = arith.select %58, %56, %60 : vector<16x8xi1>, vector<16x8xf32>
    %62 = vector.broadcast %48 : vector<16x1xf32> to vector<16x8xf32>
    %63 = arith.mulf %62, %61 : vector<16x8xf32>
    %64 = arith.addf %47, %63 : vector<16x8xf32>
    %65 = vector.extract_strided_slice %11 {offsets = [0, 3], sizes = [16, 1], strides = [1, 1]} : vector<16x32xf32> to vector<16x1xf32>
    %66 = arith.index_cast %arg0 : i32 to index
    %c3 = arith.constant 3 : index
    %67 = memref.load %arg1[%66, %c3] : memref<2x128xf32, #tpu.memory_space<smem>>
    %68 = arith.index_cast %arg0 : i32 to index
    %c67 = arith.constant 67 : index
    %69 = memref.load %arg1[%68, %c67] : memref<2x128xf32, #tpu.memory_space<smem>>
    %70 = vector.broadcast %67 : f32 to vector<16x8xf32>
    %71 = arith.mulf %4, %70 : vector<16x8xf32>
    %72 = vector.broadcast %69 : f32 to vector<16x8xf32>
    %73 = arith.addf %71, %72 : vector<16x8xf32>
    %cst_16 = arith.constant 0.000000e+00 : f32
    %74 = vector.broadcast %cst_16 : f32 to vector<16x8xf32>
    %75 = arith.cmpf oge, %73, %74 : vector<16x8xf32>
    %cst_17 = arith.constant 0.00999999977 : f32
    %76 = vector.broadcast %cst_17 : f32 to vector<16x8xf32>
    %77 = arith.mulf %76, %73 : vector<16x8xf32>
    %78 = arith.select %75, %73, %77 : vector<16x8xi1>, vector<16x8xf32>
    %79 = vector.broadcast %65 : vector<16x1xf32> to vector<16x8xf32>
    %80 = arith.mulf %79, %78 : vector<16x8xf32>
    %81 = arith.addf %64, %80 : vector<16x8xf32>
    %82 = vector.extract_strided_slice %11 {offsets = [0, 4], sizes = [16, 1], strides = [1, 1]} : vector<16x32xf32> to vector<16x1xf32>
    %83 = arith.index_cast %arg0 : i32 to index
    %c4 = arith.constant 4 : index
    %84 = memref.load %arg1[%83, %c4] : memref<2x128xf32, #tpu.memory_space<smem>>
    %85 = arith.index_cast %arg0 : i32 to index
    %c68 = arith.constant 68 : index
    %86 = memref.load %arg1[%85, %c68] : memref<2x128xf32, #tpu.memory_space<smem>>
    %87 = vector.broadcast %84 : f32 to vector<16x8xf32>
    %88 = arith.mulf %4, %87 : vector<16x8xf32>
    %89 = vector.broadcast %86 : f32 to vector<16x8xf32>
    %90 = arith.addf %88, %89 : vector<16x8xf32>
    %cst_18 = arith.constant 0.000000e+00 : f32
    %91 = vector.broadcast %cst_18 : f32 to vector<16x8xf32>
    %92 = arith.cmpf oge, %90, %91 : vector<16x8xf32>
    %cst_19 = arith.constant 0.00999999977 : f32
    %93 = vector.broadcast %cst_19 : f32 to vector<16x8xf32>
    %94 = arith.mulf %93, %90 : vector<16x8xf32>
    %95 = arith.select %92, %90, %94 : vector<16x8xi1>, vector<16x8xf32>
    %96 = vector.broadcast %82 : vector<16x1xf32> to vector<16x8xf32>
    %97 = arith.mulf %96, %95 : vector<16x8xf32>
    %98 = arith.addf %81, %97 : vector<16x8xf32>
    %99 = vector.extract_strided_slice %11 {offsets = [0, 5], sizes = [16, 1], strides = [1, 1]} : vector<16x32xf32> to vector<16x1xf32>
    %100 = arith.index_cast %arg0 : i32 to index
    %c5 = arith.constant 5 : index
    %101 = memref.load %arg1[%100, %c5] : memref<2x128xf32, #tpu.memory_space<smem>>
    %102 = arith.index_cast %arg0 : i32 to index
    %c69 = arith.constant 69 : index
    %103 = memref.load %arg1[%102, %c69] : memref<2x128xf32, #tpu.memory_space<smem>>
    %104 = vector.broadcast %101 : f32 to vector<16x8xf32>
    %105 = arith.mulf %4, %104 : vector<16x8xf32>
    %106 = vector.broadcast %103 : f32 to vector<16x8xf32>
    %107 = arith.addf %105, %106 : vector<16x8xf32>
    %cst_20 = arith.constant 0.000000e+00 : f32
    %108 = vector.broadcast %cst_20 : f32 to vector<16x8xf32>
    %109 = arith.cmpf oge, %107, %108 : vector<16x8xf32>
    %cst_21 = arith.constant 0.00999999977 : f32
    %110 = vector.broadcast %cst_21 : f32 to vector<16x8xf32>
    %111 = arith.mulf %110, %107 : vector<16x8xf32>
    %112 = arith.select %109, %107, %111 : vector<16x8xi1>, vector<16x8xf32>
    %113 = vector.broadcast %99 : vector<16x1xf32> to vector<16x8xf32>
    %114 = arith.mulf %113, %112 : vector<16x8xf32>
    %115 = arith.addf %98, %114 : vector<16x8xf32>
    %116 = vector.extract_strided_slice %11 {offsets = [0, 6], sizes = [16, 1], strides = [1, 1]} : vector<16x32xf32> to vector<16x1xf32>
    %117 = arith.index_cast %arg0 : i32 to index
    %c6 = arith.constant 6 : index
    %118 = memref.load %arg1[%117, %c6] : memref<2x128xf32, #tpu.memory_space<smem>>
    %119 = arith.index_cast %arg0 : i32 to index
    %c70 = arith.constant 70 : index
    %120 = memref.load %arg1[%119, %c70] : memref<2x128xf32, #tpu.memory_space<smem>>
    %121 = vector.broadcast %118 : f32 to vector<16x8xf32>
    %122 = arith.mulf %4, %121 : vector<16x8xf32>
    %123 = vector.broadcast %120 : f32 to vector<16x8xf32>
    %124 = arith.addf %122, %123 : vector<16x8xf32>
    %cst_22 = arith.constant 0.000000e+00 : f32
    %125 = vector.broadcast %cst_22 : f32 to vector<16x8xf32>
    %126 = arith.cmpf oge, %124, %125 : vector<16x8xf32>
    %cst_23 = arith.constant 0.00999999977 : f32
    %127 = vector.broadcast %cst_23 : f32 to vector<16x8xf32>
    %128 = arith.mulf %127, %124 : vector<16x8xf32>
    %129 = arith.select %126, %124, %128 : vector<16x8xi1>, vector<16x8xf32>
    %130 = vector.broadcast %116 : vector<16x1xf32> to vector<16x8xf32>
    %131 = arith.mulf %130, %129 : vector<16x8xf32>
    %132 = arith.addf %115, %131 : vector<16x8xf32>
    %133 = vector.extract_strided_slice %11 {offsets = [0, 7], sizes = [16, 1], strides = [1, 1]} : vector<16x32xf32> to vector<16x1xf32>
    %134 = arith.index_cast %arg0 : i32 to index
    %c7 = arith.constant 7 : index
    %135 = memref.load %arg1[%134, %c7] : memref<2x128xf32, #tpu.memory_space<smem>>
    %136 = arith.index_cast %arg0 : i32 to index
    %c71 = arith.constant 71 : index
    %137 = memref.load %arg1[%136, %c71] : memref<2x128xf32, #tpu.memory_space<smem>>
    %138 = vector.broadcast %135 : f32 to vector<16x8xf32>
    %139 = arith.mulf %4, %138 : vector<16x8xf32>
    %140 = vector.broadcast %137 : f32 to vector<16x8xf32>
    %141 = arith.addf %139, %140 : vector<16x8xf32>
    %cst_24 = arith.constant 0.000000e+00 : f32
    %142 = vector.broadcast %cst_24 : f32 to vector<16x8xf32>
    %143 = arith.cmpf oge, %141, %142 : vector<16x8xf32>
    %cst_25 = arith.constant 0.00999999977 : f32
    %144 = vector.broadcast %cst_25 : f32 to vector<16x8xf32>
    %145 = arith.mulf %144, %141 : vector<16x8xf32>
    %146 = arith.select %143, %141, %145 : vector<16x8xi1>, vector<16x8xf32>
    %147 = vector.broadcast %133 : vector<16x1xf32> to vector<16x8xf32>
    %148 = arith.mulf %147, %146 : vector<16x8xf32>
    %149 = arith.addf %132, %148 : vector<16x8xf32>
    %cst_26 = arith.constant dense<0xFF800000> : vector<16xf32>
    %150 = vector.multi_reduction <maximumf>, %149, %cst_26 [1] : vector<16x8xf32> to vector<16xf32>
    %151 = vector.shape_cast %150 : vector<16xf32> to vector<16x1xf32>
    %152 = vector.broadcast %151 : vector<16x1xf32> to vector<16x8xf32>
    %153 = arith.subf %149, %152 : vector<16x8xf32>
    %154 = math.exp %153 : vector<16x8xf32>
    %cst_27 = arith.constant dense<0.000000e+00> : vector<16xf32>
    %155 = vector.multi_reduction <add>, %154, %cst_27 [1] : vector<16x8xf32> to vector<16xf32>
    %156 = vector.shape_cast %155 : vector<16xf32> to vector<16x1xf32>
    %157 = tpu.reciprocal %156 {approx = true} : vector<16x1xf32> -> vector<16x1xf32>
    %158 = vector.broadcast %157 : vector<16x1xf32> to vector<16x8xf32>
    %159 = arith.mulf %154, %158 : vector<16x8xf32>
    %cst_28 = arith.constant 0.000000e+00 : f32
    %160 = vector.broadcast %cst_28 : f32 to vector<16x8xf32>
    %161 = vector.extract_strided_slice %11 {offsets = [0, 8], sizes = [16, 1], strides = [1, 1]} : vector<16x32xf32> to vector<16x1xf32>
    %162 = arith.index_cast %arg0 : i32 to index
    %c8 = arith.constant 8 : index
    %163 = memref.load %arg1[%162, %c8] : memref<2x128xf32, #tpu.memory_space<smem>>
    %164 = arith.index_cast %arg0 : i32 to index
    %c72 = arith.constant 72 : index
    %165 = memref.load %arg1[%164, %c72] : memref<2x128xf32, #tpu.memory_space<smem>>
    %166 = vector.broadcast %163 : f32 to vector<16x8xf32>
    %167 = arith.mulf %4, %166 : vector<16x8xf32>
    %168 = vector.broadcast %165 : f32 to vector<16x8xf32>
    %169 = arith.addf %167, %168 : vector<16x8xf32>
    %cst_29 = arith.constant 0.000000e+00 : f32
    %170 = vector.broadcast %cst_29 : f32 to vector<16x8xf32>
    %171 = arith.cmpf oge, %169, %170 : vector<16x8xf32>
    %cst_30 = arith.constant 0.00999999977 : f32
    %172 = vector.broadcast %cst_30 : f32 to vector<16x8xf32>
    %173 = arith.mulf %172, %169 : vector<16x8xf32>
    %174 = arith.select %171, %169, %173 : vector<16x8xi1>, vector<16x8xf32>
    %175 = vector.broadcast %161 : vector<16x1xf32> to vector<16x8xf32>
    %176 = arith.mulf %175, %174 : vector<16x8xf32>
    %177 = arith.addf %160, %176 : vector<16x8xf32>
    %178 = vector.extract_strided_slice %11 {offsets = [0, 9], sizes = [16, 1], strides = [1, 1]} : vector<16x32xf32> to vector<16x1xf32>
    %179 = arith.index_cast %arg0 : i32 to index
    %c9 = arith.constant 9 : index
    %180 = memref.load %arg1[%179, %c9] : memref<2x128xf32, #tpu.memory_space<smem>>
    %181 = arith.index_cast %arg0 : i32 to index
    %c73 = arith.constant 73 : index
    %182 = memref.load %arg1[%181, %c73] : memref<2x128xf32, #tpu.memory_space<smem>>
    %183 = vector.broadcast %180 : f32 to vector<16x8xf32>
    %184 = arith.mulf %4, %183 : vector<16x8xf32>
    %185 = vector.broadcast %182 : f32 to vector<16x8xf32>
    %186 = arith.addf %184, %185 : vector<16x8xf32>
    %cst_31 = arith.constant 0.000000e+00 : f32
    %187 = vector.broadcast %cst_31 : f32 to vector<16x8xf32>
    %188 = arith.cmpf oge, %186, %187 : vector<16x8xf32>
    %cst_32 = arith.constant 0.00999999977 : f32
    %189 = vector.broadcast %cst_32 : f32 to vector<16x8xf32>
    %190 = arith.mulf %189, %186 : vector<16x8xf32>
    %191 = arith.select %188, %186, %190 : vector<16x8xi1>, vector<16x8xf32>
    %192 = vector.broadcast %178 : vector<16x1xf32> to vector<16x8xf32>
    %193 = arith.mulf %192, %191 : vector<16x8xf32>
    %194 = arith.addf %177, %193 : vector<16x8xf32>
    %195 = vector.extract_strided_slice %11 {offsets = [0, 10], sizes = [16, 1], strides = [1, 1]} : vector<16x32xf32> to vector<16x1xf32>
    %196 = arith.index_cast %arg0 : i32 to index
    %c10 = arith.constant 10 : index
    %197 = memref.load %arg1[%196, %c10] : memref<2x128xf32, #tpu.memory_space<smem>>
    %198 = arith.index_cast %arg0 : i32 to index
    %c74 = arith.constant 74 : index
    %199 = memref.load %arg1[%198, %c74] : memref<2x128xf32, #tpu.memory_space<smem>>
    %200 = vector.broadcast %197 : f32 to vector<16x8xf32>
    %201 = arith.mulf %4, %200 : vector<16x8xf32>
    %202 = vector.broadcast %199 : f32 to vector<16x8xf32>
    %203 = arith.addf %201, %202 : vector<16x8xf32>
    %cst_33 = arith.constant 0.000000e+00 : f32
    %204 = vector.broadcast %cst_33 : f32 to vector<16x8xf32>
    %205 = arith.cmpf oge, %203, %204 : vector<16x8xf32>
    %cst_34 = arith.constant 0.00999999977 : f32
    %206 = vector.broadcast %cst_34 : f32 to vector<16x8xf32>
    %207 = arith.mulf %206, %203 : vector<16x8xf32>
    %208 = arith.select %205, %203, %207 : vector<16x8xi1>, vector<16x8xf32>
    %209 = vector.broadcast %195 : vector<16x1xf32> to vector<16x8xf32>
    %210 = arith.mulf %209, %208 : vector<16x8xf32>
    %211 = arith.addf %194, %210 : vector<16x8xf32>
    %212 = vector.extract_strided_slice %11 {offsets = [0, 11], sizes = [16, 1], strides = [1, 1]} : vector<16x32xf32> to vector<16x1xf32>
    %213 = arith.index_cast %arg0 : i32 to index
    %c11 = arith.constant 11 : index
    %214 = memref.load %arg1[%213, %c11] : memref<2x128xf32, #tpu.memory_space<smem>>
    %215 = arith.index_cast %arg0 : i32 to index
    %c75 = arith.constant 75 : index
    %216 = memref.load %arg1[%215, %c75] : memref<2x128xf32, #tpu.memory_space<smem>>
    %217 = vector.broadcast %214 : f32 to vector<16x8xf32>
    %218 = arith.mulf %4, %217 : vector<16x8xf32>
    %219 = vector.broadcast %216 : f32 to vector<16x8xf32>
    %220 = arith.addf %218, %219 : vector<16x8xf32>
    %cst_35 = arith.constant 0.000000e+00 : f32
    %221 = vector.broadcast %cst_35 : f32 to vector<16x8xf32>
    %222 = arith.cmpf oge, %220, %221 : vector<16x8xf32>
    %cst_36 = arith.constant 0.00999999977 : f32
    %223 = vector.broadcast %cst_36 : f32 to vector<16x8xf32>
    %224 = arith.mulf %223, %220 : vector<16x8xf32>
    %225 = arith.select %222, %220, %224 : vector<16x8xi1>, vector<16x8xf32>
    %226 = vector.broadcast %212 : vector<16x1xf32> to vector<16x8xf32>
    %227 = arith.mulf %226, %225 : vector<16x8xf32>
    %228 = arith.addf %211, %227 : vector<16x8xf32>
    %229 = vector.extract_strided_slice %11 {offsets = [0, 12], sizes = [16, 1], strides = [1, 1]} : vector<16x32xf32> to vector<16x1xf32>
    %230 = arith.index_cast %arg0 : i32 to index
    %c12 = arith.constant 12 : index
    %231 = memref.load %arg1[%230, %c12] : memref<2x128xf32, #tpu.memory_space<smem>>
    %232 = arith.index_cast %arg0 : i32 to index
    %c76 = arith.constant 76 : index
    %233 = memref.load %arg1[%232, %c76] : memref<2x128xf32, #tpu.memory_space<smem>>
    %234 = vector.broadcast %231 : f32 to vector<16x8xf32>
    %235 = arith.mulf %4, %234 : vector<16x8xf32>
    %236 = vector.broadcast %233 : f32 to vector<16x8xf32>
    %237 = arith.addf %235, %236 : vector<16x8xf32>
    %cst_37 = arith.constant 0.000000e+00 : f32
    %238 = vector.broadcast %cst_37 : f32 to vector<16x8xf32>
    %239 = arith.cmpf oge, %237, %238 : vector<16x8xf32>
    %cst_38 = arith.constant 0.00999999977 : f32
    %240 = vector.broadcast %cst_38 : f32 to vector<16x8xf32>
    %241 = arith.mulf %240, %237 : vector<16x8xf32>
    %242 = arith.select %239, %237, %241 : vector<16x8xi1>, vector<16x8xf32>
    %243 = vector.broadcast %229 : vector<16x1xf32> to vector<16x8xf32>
    %244 = arith.mulf %243, %242 : vector<16x8xf32>
    %245 = arith.addf %228, %244 : vector<16x8xf32>
    %246 = vector.extract_strided_slice %11 {offsets = [0, 13], sizes = [16, 1], strides = [1, 1]} : vector<16x32xf32> to vector<16x1xf32>
    %247 = arith.index_cast %arg0 : i32 to index
    %c13 = arith.constant 13 : index
    %248 = memref.load %arg1[%247, %c13] : memref<2x128xf32, #tpu.memory_space<smem>>
    %249 = arith.index_cast %arg0 : i32 to index
    %c77 = arith.constant 77 : index
    %250 = memref.load %arg1[%249, %c77] : memref<2x128xf32, #tpu.memory_space<smem>>
    %251 = vector.broadcast %248 : f32 to vector<16x8xf32>
    %252 = arith.mulf %4, %251 : vector<16x8xf32>
    %253 = vector.broadcast %250 : f32 to vector<16x8xf32>
    %254 = arith.addf %252, %253 : vector<16x8xf32>
    %cst_39 = arith.constant 0.000000e+00 : f32
    %255 = vector.broadcast %cst_39 : f32 to vector<16x8xf32>
    %256 = arith.cmpf oge, %254, %255 : vector<16x8xf32>
    %cst_40 = arith.constant 0.00999999977 : f32
    %257 = vector.broadcast %cst_40 : f32 to vector<16x8xf32>
    %258 = arith.mulf %257, %254 : vector<16x8xf32>
    %259 = arith.select %256, %254, %258 : vector<16x8xi1>, vector<16x8xf32>
    %260 = vector.broadcast %246 : vector<16x1xf32> to vector<16x8xf32>
    %261 = arith.mulf %260, %259 : vector<16x8xf32>
    %262 = arith.addf %245, %261 : vector<16x8xf32>
    %263 = vector.extract_strided_slice %11 {offsets = [0, 14], sizes = [16, 1], strides = [1, 1]} : vector<16x32xf32> to vector<16x1xf32>
    %264 = arith.index_cast %arg0 : i32 to index
    %c14 = arith.constant 14 : index
    %265 = memref.load %arg1[%264, %c14] : memref<2x128xf32, #tpu.memory_space<smem>>
    %266 = arith.index_cast %arg0 : i32 to index
    %c78 = arith.constant 78 : index
    %267 = memref.load %arg1[%266, %c78] : memref<2x128xf32, #tpu.memory_space<smem>>
    %268 = vector.broadcast %265 : f32 to vector<16x8xf32>
    %269 = arith.mulf %4, %268 : vector<16x8xf32>
    %270 = vector.broadcast %267 : f32 to vector<16x8xf32>
    %271 = arith.addf %269, %270 : vector<16x8xf32>
    %cst_41 = arith.constant 0.000000e+00 : f32
    %272 = vector.broadcast %cst_41 : f32 to vector<16x8xf32>
    %273 = arith.cmpf oge, %271, %272 : vector<16x8xf32>
    %cst_42 = arith.constant 0.00999999977 : f32
    %274 = vector.broadcast %cst_42 : f32 to vector<16x8xf32>
    %275 = arith.mulf %274, %271 : vector<16x8xf32>
    %276 = arith.select %273, %271, %275 : vector<16x8xi1>, vector<16x8xf32>
    %277 = vector.broadcast %263 : vector<16x1xf32> to vector<16x8xf32>
    %278 = arith.mulf %277, %276 : vector<16x8xf32>
    %279 = arith.addf %262, %278 : vector<16x8xf32>
    %280 = vector.extract_strided_slice %11 {offsets = [0, 15], sizes = [16, 1], strides = [1, 1]} : vector<16x32xf32> to vector<16x1xf32>
    %281 = arith.index_cast %arg0 : i32 to index
    %c15 = arith.constant 15 : index
    %282 = memref.load %arg1[%281, %c15] : memref<2x128xf32, #tpu.memory_space<smem>>
    %283 = arith.index_cast %arg0 : i32 to index
    %c79 = arith.constant 79 : index
    %284 = memref.load %arg1[%283, %c79] : memref<2x128xf32, #tpu.memory_space<smem>>
    %285 = vector.broadcast %282 : f32 to vector<16x8xf32>
    %286 = arith.mulf %4, %285 : vector<16x8xf32>
    %287 = vector.broadcast %284 : f32 to vector<16x8xf32>
    %288 = arith.addf %286, %287 : vector<16x8xf32>
    %cst_43 = arith.constant 0.000000e+00 : f32
    %289 = vector.broadcast %cst_43 : f32 to vector<16x8xf32>
    %290 = arith.cmpf oge, %288, %289 : vector<16x8xf32>
    %cst_44 = arith.constant 0.00999999977 : f32
    %291 = vector.broadcast %cst_44 : f32 to vector<16x8xf32>
    %292 = arith.mulf %291, %288 : vector<16x8xf32>
    %293 = arith.select %290, %288, %292 : vector<16x8xi1>, vector<16x8xf32>
    %294 = vector.broadcast %280 : vector<16x1xf32> to vector<16x8xf32>
    %295 = arith.mulf %294, %293 : vector<16x8xf32>
    %296 = arith.addf %279, %295 : vector<16x8xf32>
    %cst_45 = arith.constant dense<0xFF800000> : vector<16xf32>
    %297 = vector.multi_reduction <maximumf>, %296, %cst_45 [1] : vector<16x8xf32> to vector<16xf32>
    %298 = vector.shape_cast %297 : vector<16xf32> to vector<16x1xf32>
    %299 = vector.broadcast %298 : vector<16x1xf32> to vector<16x8xf32>
    %300 = arith.subf %296, %299 : vector<16x8xf32>
    %301 = math.exp %300 : vector<16x8xf32>
    %cst_46 = arith.constant dense<0.000000e+00> : vector<16xf32>
    %302 = vector.multi_reduction <add>, %301, %cst_46 [1] : vector<16x8xf32> to vector<16xf32>
    %303 = vector.shape_cast %302 : vector<16xf32> to vector<16x1xf32>
    %304 = tpu.reciprocal %303 {approx = true} : vector<16x1xf32> -> vector<16x1xf32>
    %305 = vector.broadcast %304 : vector<16x1xf32> to vector<16x8xf32>
    %306 = arith.mulf %301, %305 : vector<16x8xf32>
    %cst_47 = arith.constant 0.000000e+00 : f32
    %307 = vector.broadcast %cst_47 : f32 to vector<16x8xf32>
    %308 = vector.extract_strided_slice %11 {offsets = [0, 16], sizes = [16, 1], strides = [1, 1]} : vector<16x32xf32> to vector<16x1xf32>
    %309 = arith.index_cast %arg0 : i32 to index
    %c16 = arith.constant 16 : index
    %310 = memref.load %arg1[%309, %c16] : memref<2x128xf32, #tpu.memory_space<smem>>
    %311 = arith.index_cast %arg0 : i32 to index
    %c80 = arith.constant 80 : index
    %312 = memref.load %arg1[%311, %c80] : memref<2x128xf32, #tpu.memory_space<smem>>
    %313 = vector.broadcast %310 : f32 to vector<16x8xf32>
    %314 = arith.mulf %4, %313 : vector<16x8xf32>
    %315 = vector.broadcast %312 : f32 to vector<16x8xf32>
    %316 = arith.addf %314, %315 : vector<16x8xf32>
    %cst_48 = arith.constant 0.000000e+00 : f32
    %317 = vector.broadcast %cst_48 : f32 to vector<16x8xf32>
    %318 = arith.cmpf oge, %316, %317 : vector<16x8xf32>
    %cst_49 = arith.constant 0.00999999977 : f32
    %319 = vector.broadcast %cst_49 : f32 to vector<16x8xf32>
    %320 = arith.mulf %319, %316 : vector<16x8xf32>
    %321 = arith.select %318, %316, %320 : vector<16x8xi1>, vector<16x8xf32>
    %322 = vector.broadcast %308 : vector<16x1xf32> to vector<16x8xf32>
    %323 = arith.mulf %322, %321 : vector<16x8xf32>
    %324 = arith.addf %307, %323 : vector<16x8xf32>
    %325 = vector.extract_strided_slice %11 {offsets = [0, 17], sizes = [16, 1], strides = [1, 1]} : vector<16x32xf32> to vector<16x1xf32>
    %326 = arith.index_cast %arg0 : i32 to index
    %c17 = arith.constant 17 : index
    %327 = memref.load %arg1[%326, %c17] : memref<2x128xf32, #tpu.memory_space<smem>>
    %328 = arith.index_cast %arg0 : i32 to index
    %c81 = arith.constant 81 : index
    %329 = memref.load %arg1[%328, %c81] : memref<2x128xf32, #tpu.memory_space<smem>>
    %330 = vector.broadcast %327 : f32 to vector<16x8xf32>
    %331 = arith.mulf %4, %330 : vector<16x8xf32>
    %332 = vector.broadcast %329 : f32 to vector<16x8xf32>
    %333 = arith.addf %331, %332 : vector<16x8xf32>
    %cst_50 = arith.constant 0.000000e+00 : f32
    %334 = vector.broadcast %cst_50 : f32 to vector<16x8xf32>
    %335 = arith.cmpf oge, %333, %334 : vector<16x8xf32>
    %cst_51 = arith.constant 0.00999999977 : f32
    %336 = vector.broadcast %cst_51 : f32 to vector<16x8xf32>
    %337 = arith.mulf %336, %333 : vector<16x8xf32>
    %338 = arith.select %335, %333, %337 : vector<16x8xi1>, vector<16x8xf32>
    %339 = vector.broadcast %325 : vector<16x1xf32> to vector<16x8xf32>
    %340 = arith.mulf %339, %338 : vector<16x8xf32>
    %341 = arith.addf %324, %340 : vector<16x8xf32>
    %342 = vector.extract_strided_slice %11 {offsets = [0, 18], sizes = [16, 1], strides = [1, 1]} : vector<16x32xf32> to vector<16x1xf32>
    %343 = arith.index_cast %arg0 : i32 to index
    %c18 = arith.constant 18 : index
    %344 = memref.load %arg1[%343, %c18] : memref<2x128xf32, #tpu.memory_space<smem>>
    %345 = arith.index_cast %arg0 : i32 to index
    %c82 = arith.constant 82 : index
    %346 = memref.load %arg1[%345, %c82] : memref<2x128xf32, #tpu.memory_space<smem>>
    %347 = vector.broadcast %344 : f32 to vector<16x8xf32>
    %348 = arith.mulf %4, %347 : vector<16x8xf32>
    %349 = vector.broadcast %346 : f32 to vector<16x8xf32>
    %350 = arith.addf %348, %349 : vector<16x8xf32>
    %cst_52 = arith.constant 0.000000e+00 : f32
    %351 = vector.broadcast %cst_52 : f32 to vector<16x8xf32>
    %352 = arith.cmpf oge, %350, %351 : vector<16x8xf32>
    %cst_53 = arith.constant 0.00999999977 : f32
    %353 = vector.broadcast %cst_53 : f32 to vector<16x8xf32>
    %354 = arith.mulf %353, %350 : vector<16x8xf32>
    %355 = arith.select %352, %350, %354 : vector<16x8xi1>, vector<16x8xf32>
    %356 = vector.broadcast %342 : vector<16x1xf32> to vector<16x8xf32>
    %357 = arith.mulf %356, %355 : vector<16x8xf32>
    %358 = arith.addf %341, %357 : vector<16x8xf32>
    %359 = vector.extract_strided_slice %11 {offsets = [0, 19], sizes = [16, 1], strides = [1, 1]} : vector<16x32xf32> to vector<16x1xf32>
    %360 = arith.index_cast %arg0 : i32 to index
    %c19 = arith.constant 19 : index
    %361 = memref.load %arg1[%360, %c19] : memref<2x128xf32, #tpu.memory_space<smem>>
    %362 = arith.index_cast %arg0 : i32 to index
    %c83 = arith.constant 83 : index
    %363 = memref.load %arg1[%362, %c83] : memref<2x128xf32, #tpu.memory_space<smem>>
    %364 = vector.broadcast %361 : f32 to vector<16x8xf32>
    %365 = arith.mulf %4, %364 : vector<16x8xf32>
    %366 = vector.broadcast %363 : f32 to vector<16x8xf32>
    %367 = arith.addf %365, %366 : vector<16x8xf32>
    %cst_54 = arith.constant 0.000000e+00 : f32
    %368 = vector.broadcast %cst_54 : f32 to vector<16x8xf32>
    %369 = arith.cmpf oge, %367, %368 : vector<16x8xf32>
    %cst_55 = arith.constant 0.00999999977 : f32
    %370 = vector.broadcast %cst_55 : f32 to vector<16x8xf32>
    %371 = arith.mulf %370, %367 : vector<16x8xf32>
    %372 = arith.select %369, %367, %371 : vector<16x8xi1>, vector<16x8xf32>
    %373 = vector.broadcast %359 : vector<16x1xf32> to vector<16x8xf32>
    %374 = arith.mulf %373, %372 : vector<16x8xf32>
    %375 = arith.addf %358, %374 : vector<16x8xf32>
    %376 = vector.extract_strided_slice %11 {offsets = [0, 20], sizes = [16, 1], strides = [1, 1]} : vector<16x32xf32> to vector<16x1xf32>
    %377 = arith.index_cast %arg0 : i32 to index
    %c20 = arith.constant 20 : index
    %378 = memref.load %arg1[%377, %c20] : memref<2x128xf32, #tpu.memory_space<smem>>
    %379 = arith.index_cast %arg0 : i32 to index
    %c84 = arith.constant 84 : index
    %380 = memref.load %arg1[%379, %c84] : memref<2x128xf32, #tpu.memory_space<smem>>
    %381 = vector.broadcast %378 : f32 to vector<16x8xf32>
    %382 = arith.mulf %4, %381 : vector<16x8xf32>
    %383 = vector.broadcast %380 : f32 to vector<16x8xf32>
    %384 = arith.addf %382, %383 : vector<16x8xf32>
    %cst_56 = arith.constant 0.000000e+00 : f32
    %385 = vector.broadcast %cst_56 : f32 to vector<16x8xf32>
    %386 = arith.cmpf oge, %384, %385 : vector<16x8xf32>
    %cst_57 = arith.constant 0.00999999977 : f32
    %387 = vector.broadcast %cst_57 : f32 to vector<16x8xf32>
    %388 = arith.mulf %387, %384 : vector<16x8xf32>
    %389 = arith.select %386, %384, %388 : vector<16x8xi1>, vector<16x8xf32>
    %390 = vector.broadcast %376 : vector<16x1xf32> to vector<16x8xf32>
    %391 = arith.mulf %390, %389 : vector<16x8xf32>
    %392 = arith.addf %375, %391 : vector<16x8xf32>
    %393 = vector.extract_strided_slice %11 {offsets = [0, 21], sizes = [16, 1], strides = [1, 1]} : vector<16x32xf32> to vector<16x1xf32>
    %394 = arith.index_cast %arg0 : i32 to index
    %c21 = arith.constant 21 : index
    %395 = memref.load %arg1[%394, %c21] : memref<2x128xf32, #tpu.memory_space<smem>>
    %396 = arith.index_cast %arg0 : i32 to index
    %c85 = arith.constant 85 : index
    %397 = memref.load %arg1[%396, %c85] : memref<2x128xf32, #tpu.memory_space<smem>>
    %398 = vector.broadcast %395 : f32 to vector<16x8xf32>
    %399 = arith.mulf %4, %398 : vector<16x8xf32>
    %400 = vector.broadcast %397 : f32 to vector<16x8xf32>
    %401 = arith.addf %399, %400 : vector<16x8xf32>
    %cst_58 = arith.constant 0.000000e+00 : f32
    %402 = vector.broadcast %cst_58 : f32 to vector<16x8xf32>
    %403 = arith.cmpf oge, %401, %402 : vector<16x8xf32>
    %cst_59 = arith.constant 0.00999999977 : f32
    %404 = vector.broadcast %cst_59 : f32 to vector<16x8xf32>
    %405 = arith.mulf %404, %401 : vector<16x8xf32>
    %406 = arith.select %403, %401, %405 : vector<16x8xi1>, vector<16x8xf32>
    %407 = vector.broadcast %393 : vector<16x1xf32> to vector<16x8xf32>
    %408 = arith.mulf %407, %406 : vector<16x8xf32>
    %409 = arith.addf %392, %408 : vector<16x8xf32>
    %410 = vector.extract_strided_slice %11 {offsets = [0, 22], sizes = [16, 1], strides = [1, 1]} : vector<16x32xf32> to vector<16x1xf32>
    %411 = arith.index_cast %arg0 : i32 to index
    %c22 = arith.constant 22 : index
    %412 = memref.load %arg1[%411, %c22] : memref<2x128xf32, #tpu.memory_space<smem>>
    %413 = arith.index_cast %arg0 : i32 to index
    %c86 = arith.constant 86 : index
    %414 = memref.load %arg1[%413, %c86] : memref<2x128xf32, #tpu.memory_space<smem>>
    %415 = vector.broadcast %412 : f32 to vector<16x8xf32>
    %416 = arith.mulf %4, %415 : vector<16x8xf32>
    %417 = vector.broadcast %414 : f32 to vector<16x8xf32>
    %418 = arith.addf %416, %417 : vector<16x8xf32>
    %cst_60 = arith.constant 0.000000e+00 : f32
    %419 = vector.broadcast %cst_60 : f32 to vector<16x8xf32>
    %420 = arith.cmpf oge, %418, %419 : vector<16x8xf32>
    %cst_61 = arith.constant 0.00999999977 : f32
    %421 = vector.broadcast %cst_61 : f32 to vector<16x8xf32>
    %422 = arith.mulf %421, %418 : vector<16x8xf32>
    %423 = arith.select %420, %418, %422 : vector<16x8xi1>, vector<16x8xf32>
    %424 = vector.broadcast %410 : vector<16x1xf32> to vector<16x8xf32>
    %425 = arith.mulf %424, %423 : vector<16x8xf32>
    %426 = arith.addf %409, %425 : vector<16x8xf32>
    %427 = vector.extract_strided_slice %11 {offsets = [0, 23], sizes = [16, 1], strides = [1, 1]} : vector<16x32xf32> to vector<16x1xf32>
    %428 = arith.index_cast %arg0 : i32 to index
    %c23 = arith.constant 23 : index
    %429 = memref.load %arg1[%428, %c23] : memref<2x128xf32, #tpu.memory_space<smem>>
    %430 = arith.index_cast %arg0 : i32 to index
    %c87 = arith.constant 87 : index
    %431 = memref.load %arg1[%430, %c87] : memref<2x128xf32, #tpu.memory_space<smem>>
    %432 = vector.broadcast %429 : f32 to vector<16x8xf32>
    %433 = arith.mulf %4, %432 : vector<16x8xf32>
    %434 = vector.broadcast %431 : f32 to vector<16x8xf32>
    %435 = arith.addf %433, %434 : vector<16x8xf32>
    %cst_62 = arith.constant 0.000000e+00 : f32
    %436 = vector.broadcast %cst_62 : f32 to vector<16x8xf32>
    %437 = arith.cmpf oge, %435, %436 : vector<16x8xf32>
    %cst_63 = arith.constant 0.00999999977 : f32
    %438 = vector.broadcast %cst_63 : f32 to vector<16x8xf32>
    %439 = arith.mulf %438, %435 : vector<16x8xf32>
    %440 = arith.select %437, %435, %439 : vector<16x8xi1>, vector<16x8xf32>
    %441 = vector.broadcast %427 : vector<16x1xf32> to vector<16x8xf32>
    %442 = arith.mulf %441, %440 : vector<16x8xf32>
    %443 = arith.addf %426, %442 : vector<16x8xf32>
    %cst_64 = arith.constant dense<0xFF800000> : vector<16xf32>
    %444 = vector.multi_reduction <maximumf>, %443, %cst_64 [1] : vector<16x8xf32> to vector<16xf32>
    %445 = vector.shape_cast %444 : vector<16xf32> to vector<16x1xf32>
    %446 = vector.broadcast %445 : vector<16x1xf32> to vector<16x8xf32>
    %447 = arith.subf %443, %446 : vector<16x8xf32>
    %448 = math.exp %447 : vector<16x8xf32>
    %cst_65 = arith.constant dense<0.000000e+00> : vector<16xf32>
    %449 = vector.multi_reduction <add>, %448, %cst_65 [1] : vector<16x8xf32> to vector<16xf32>
    %450 = vector.shape_cast %449 : vector<16xf32> to vector<16x1xf32>
    %451 = tpu.reciprocal %450 {approx = true} : vector<16x1xf32> -> vector<16x1xf32>
    %452 = vector.broadcast %451 : vector<16x1xf32> to vector<16x8xf32>
    %453 = arith.mulf %448, %452 : vector<16x8xf32>
    %cst_66 = arith.constant 0.000000e+00 : f32
    %454 = vector.broadcast %cst_66 : f32 to vector<16x8xf32>
    %455 = vector.extract_strided_slice %11 {offsets = [0, 24], sizes = [16, 1], strides = [1, 1]} : vector<16x32xf32> to vector<16x1xf32>
    %456 = arith.index_cast %arg0 : i32 to index
    %c24 = arith.constant 24 : index
    %457 = memref.load %arg1[%456, %c24] : memref<2x128xf32, #tpu.memory_space<smem>>
    %458 = arith.index_cast %arg0 : i32 to index
    %c88 = arith.constant 88 : index
    %459 = memref.load %arg1[%458, %c88] : memref<2x128xf32, #tpu.memory_space<smem>>
    %460 = vector.broadcast %457 : f32 to vector<16x8xf32>
    %461 = arith.mulf %4, %460 : vector<16x8xf32>
    %462 = vector.broadcast %459 : f32 to vector<16x8xf32>
    %463 = arith.addf %461, %462 : vector<16x8xf32>
    %cst_67 = arith.constant 0.000000e+00 : f32
    %464 = vector.broadcast %cst_67 : f32 to vector<16x8xf32>
    %465 = arith.cmpf oge, %463, %464 : vector<16x8xf32>
    %cst_68 = arith.constant 0.00999999977 : f32
    %466 = vector.broadcast %cst_68 : f32 to vector<16x8xf32>
    %467 = arith.mulf %466, %463 : vector<16x8xf32>
    %468 = arith.select %465, %463, %467 : vector<16x8xi1>, vector<16x8xf32>
    %469 = vector.broadcast %455 : vector<16x1xf32> to vector<16x8xf32>
    %470 = arith.mulf %469, %468 : vector<16x8xf32>
    %471 = arith.addf %454, %470 : vector<16x8xf32>
    %472 = vector.extract_strided_slice %11 {offsets = [0, 25], sizes = [16, 1], strides = [1, 1]} : vector<16x32xf32> to vector<16x1xf32>
    %473 = arith.index_cast %arg0 : i32 to index
    %c25 = arith.constant 25 : index
    %474 = memref.load %arg1[%473, %c25] : memref<2x128xf32, #tpu.memory_space<smem>>
    %475 = arith.index_cast %arg0 : i32 to index
    %c89 = arith.constant 89 : index
    %476 = memref.load %arg1[%475, %c89] : memref<2x128xf32, #tpu.memory_space<smem>>
    %477 = vector.broadcast %474 : f32 to vector<16x8xf32>
    %478 = arith.mulf %4, %477 : vector<16x8xf32>
    %479 = vector.broadcast %476 : f32 to vector<16x8xf32>
    %480 = arith.addf %478, %479 : vector<16x8xf32>
    %cst_69 = arith.constant 0.000000e+00 : f32
    %481 = vector.broadcast %cst_69 : f32 to vector<16x8xf32>
    %482 = arith.cmpf oge, %480, %481 : vector<16x8xf32>
    %cst_70 = arith.constant 0.00999999977 : f32
    %483 = vector.broadcast %cst_70 : f32 to vector<16x8xf32>
    %484 = arith.mulf %483, %480 : vector<16x8xf32>
    %485 = arith.select %482, %480, %484 : vector<16x8xi1>, vector<16x8xf32>
    %486 = vector.broadcast %472 : vector<16x1xf32> to vector<16x8xf32>
    %487 = arith.mulf %486, %485 : vector<16x8xf32>
    %488 = arith.addf %471, %487 : vector<16x8xf32>
    %489 = vector.extract_strided_slice %11 {offsets = [0, 26], sizes = [16, 1], strides = [1, 1]} : vector<16x32xf32> to vector<16x1xf32>
    %490 = arith.index_cast %arg0 : i32 to index
    %c26 = arith.constant 26 : index
    %491 = memref.load %arg1[%490, %c26] : memref<2x128xf32, #tpu.memory_space<smem>>
    %492 = arith.index_cast %arg0 : i32 to index
    %c90 = arith.constant 90 : index
    %493 = memref.load %arg1[%492, %c90] : memref<2x128xf32, #tpu.memory_space<smem>>
    %494 = vector.broadcast %491 : f32 to vector<16x8xf32>
    %495 = arith.mulf %4, %494 : vector<16x8xf32>
    %496 = vector.broadcast %493 : f32 to vector<16x8xf32>
    %497 = arith.addf %495, %496 : vector<16x8xf32>
    %cst_71 = arith.constant 0.000000e+00 : f32
    %498 = vector.broadcast %cst_71 : f32 to vector<16x8xf32>
    %499 = arith.cmpf oge, %497, %498 : vector<16x8xf32>
    %cst_72 = arith.constant 0.00999999977 : f32
    %500 = vector.broadcast %cst_72 : f32 to vector<16x8xf32>
    %501 = arith.mulf %500, %497 : vector<16x8xf32>
    %502 = arith.select %499, %497, %501 : vector<16x8xi1>, vector<16x8xf32>
    %503 = vector.broadcast %489 : vector<16x1xf32> to vector<16x8xf32>
    %504 = arith.mulf %503, %502 : vector<16x8xf32>
    %505 = arith.addf %488, %504 : vector<16x8xf32>
    %506 = vector.extract_strided_slice %11 {offsets = [0, 27], sizes = [16, 1], strides = [1, 1]} : vector<16x32xf32> to vector<16x1xf32>
    %507 = arith.index_cast %arg0 : i32 to index
    %c27 = arith.constant 27 : index
    %508 = memref.load %arg1[%507, %c27] : memref<2x128xf32, #tpu.memory_space<smem>>
    %509 = arith.index_cast %arg0 : i32 to index
    %c91 = arith.constant 91 : index
    %510 = memref.load %arg1[%509, %c91] : memref<2x128xf32, #tpu.memory_space<smem>>
    %511 = vector.broadcast %508 : f32 to vector<16x8xf32>
    %512 = arith.mulf %4, %511 : vector<16x8xf32>
    %513 = vector.broadcast %510 : f32 to vector<16x8xf32>
    %514 = arith.addf %512, %513 : vector<16x8xf32>
    %cst_73 = arith.constant 0.000000e+00 : f32
    %515 = vector.broadcast %cst_73 : f32 to vector<16x8xf32>
    %516 = arith.cmpf oge, %514, %515 : vector<16x8xf32>
    %cst_74 = arith.constant 0.00999999977 : f32
    %517 = vector.broadcast %cst_74 : f32 to vector<16x8xf32>
    %518 = arith.mulf %517, %514 : vector<16x8xf32>
    %519 = arith.select %516, %514, %518 : vector<16x8xi1>, vector<16x8xf32>
    %520 = vector.broadcast %506 : vector<16x1xf32> to vector<16x8xf32>
    %521 = arith.mulf %520, %519 : vector<16x8xf32>
    %522 = arith.addf %505, %521 : vector<16x8xf32>
    %523 = vector.extract_strided_slice %11 {offsets = [0, 28], sizes = [16, 1], strides = [1, 1]} : vector<16x32xf32> to vector<16x1xf32>
    %524 = arith.index_cast %arg0 : i32 to index
    %c28 = arith.constant 28 : index
    %525 = memref.load %arg1[%524, %c28] : memref<2x128xf32, #tpu.memory_space<smem>>
    %526 = arith.index_cast %arg0 : i32 to index
    %c92 = arith.constant 92 : index
    %527 = memref.load %arg1[%526, %c92] : memref<2x128xf32, #tpu.memory_space<smem>>
    %528 = vector.broadcast %525 : f32 to vector<16x8xf32>
    %529 = arith.mulf %4, %528 : vector<16x8xf32>
    %530 = vector.broadcast %527 : f32 to vector<16x8xf32>
    %531 = arith.addf %529, %530 : vector<16x8xf32>
    %cst_75 = arith.constant 0.000000e+00 : f32
    %532 = vector.broadcast %cst_75 : f32 to vector<16x8xf32>
    %533 = arith.cmpf oge, %531, %532 : vector<16x8xf32>
    %cst_76 = arith.constant 0.00999999977 : f32
    %534 = vector.broadcast %cst_76 : f32 to vector<16x8xf32>
    %535 = arith.mulf %534, %531 : vector<16x8xf32>
    %536 = arith.select %533, %531, %535 : vector<16x8xi1>, vector<16x8xf32>
    %537 = vector.broadcast %523 : vector<16x1xf32> to vector<16x8xf32>
    %538 = arith.mulf %537, %536 : vector<16x8xf32>
    %539 = arith.addf %522, %538 : vector<16x8xf32>
    %540 = vector.extract_strided_slice %11 {offsets = [0, 29], sizes = [16, 1], strides = [1, 1]} : vector<16x32xf32> to vector<16x1xf32>
    %541 = arith.index_cast %arg0 : i32 to index
    %c29 = arith.constant 29 : index
    %542 = memref.load %arg1[%541, %c29] : memref<2x128xf32, #tpu.memory_space<smem>>
    %543 = arith.index_cast %arg0 : i32 to index
    %c93 = arith.constant 93 : index
    %544 = memref.load %arg1[%543, %c93] : memref<2x128xf32, #tpu.memory_space<smem>>
    %545 = vector.broadcast %542 : f32 to vector<16x8xf32>
    %546 = arith.mulf %4, %545 : vector<16x8xf32>
    %547 = vector.broadcast %544 : f32 to vector<16x8xf32>
    %548 = arith.addf %546, %547 : vector<16x8xf32>
    %cst_77 = arith.constant 0.000000e+00 : f32
    %549 = vector.broadcast %cst_77 : f32 to vector<16x8xf32>
    %550 = arith.cmpf oge, %548, %549 : vector<16x8xf32>
    %cst_78 = arith.constant 0.00999999977 : f32
    %551 = vector.broadcast %cst_78 : f32 to vector<16x8xf32>
    %552 = arith.mulf %551, %548 : vector<16x8xf32>
    %553 = arith.select %550, %548, %552 : vector<16x8xi1>, vector<16x8xf32>
    %554 = vector.broadcast %540 : vector<16x1xf32> to vector<16x8xf32>
    %555 = arith.mulf %554, %553 : vector<16x8xf32>
    %556 = arith.addf %539, %555 : vector<16x8xf32>
    %557 = vector.extract_strided_slice %11 {offsets = [0, 30], sizes = [16, 1], strides = [1, 1]} : vector<16x32xf32> to vector<16x1xf32>
    %558 = arith.index_cast %arg0 : i32 to index
    %c30 = arith.constant 30 : index
    %559 = memref.load %arg1[%558, %c30] : memref<2x128xf32, #tpu.memory_space<smem>>
    %560 = arith.index_cast %arg0 : i32 to index
    %c94 = arith.constant 94 : index
    %561 = memref.load %arg1[%560, %c94] : memref<2x128xf32, #tpu.memory_space<smem>>
    %562 = vector.broadcast %559 : f32 to vector<16x8xf32>
    %563 = arith.mulf %4, %562 : vector<16x8xf32>
    %564 = vector.broadcast %561 : f32 to vector<16x8xf32>
    %565 = arith.addf %563, %564 : vector<16x8xf32>
    %cst_79 = arith.constant 0.000000e+00 : f32
    %566 = vector.broadcast %cst_79 : f32 to vector<16x8xf32>
    %567 = arith.cmpf oge, %565, %566 : vector<16x8xf32>
    %cst_80 = arith.constant 0.00999999977 : f32
    %568 = vector.broadcast %cst_80 : f32 to vector<16x8xf32>
    %569 = arith.mulf %568, %565 : vector<16x8xf32>
    %570 = arith.select %567, %565, %569 : vector<16x8xi1>, vector<16x8xf32>
    %571 = vector.broadcast %557 : vector<16x1xf32> to vector<16x8xf32>
    %572 = arith.mulf %571, %570 : vector<16x8xf32>
    %573 = arith.addf %556, %572 : vector<16x8xf32>
    %574 = vector.extract_strided_slice %11 {offsets = [0, 31], sizes = [16, 1], strides = [1, 1]} : vector<16x32xf32> to vector<16x1xf32>
    %575 = arith.index_cast %arg0 : i32 to index
    %c31 = arith.constant 31 : index
    %576 = memref.load %arg1[%575, %c31] : memref<2x128xf32, #tpu.memory_space<smem>>
    %577 = arith.index_cast %arg0 : i32 to index
    %c95 = arith.constant 95 : index
    %578 = memref.load %arg1[%577, %c95] : memref<2x128xf32, #tpu.memory_space<smem>>
    %579 = vector.broadcast %576 : f32 to vector<16x8xf32>
    %580 = arith.mulf %4, %579 : vector<16x8xf32>
    %581 = vector.broadcast %578 : f32 to vector<16x8xf32>
    %582 = arith.addf %580, %581 : vector<16x8xf32>
    %cst_81 = arith.constant 0.000000e+00 : f32
    %583 = vector.broadcast %cst_81 : f32 to vector<16x8xf32>
    %584 = arith.cmpf oge, %582, %583 : vector<16x8xf32>
    %cst_82 = arith.constant 0.00999999977 : f32
    %585 = vector.broadcast %cst_82 : f32 to vector<16x8xf32>
    %586 = arith.mulf %585, %582 : vector<16x8xf32>
    %587 = arith.select %584, %582, %586 : vector<16x8xi1>, vector<16x8xf32>
    %588 = vector.broadcast %574 : vector<16x1xf32> to vector<16x8xf32>
    %589 = arith.mulf %588, %587 : vector<16x8xf32>
    %590 = arith.addf %573, %589 : vector<16x8xf32>
    %cst_83 = arith.constant dense<0xFF800000> : vector<16xf32>
    %591 = vector.multi_reduction <maximumf>, %590, %cst_83 [1] : vector<16x8xf32> to vector<16xf32>
    %592 = vector.shape_cast %591 : vector<16xf32> to vector<16x1xf32>
    %593 = vector.broadcast %592 : vector<16x1xf32> to vector<16x8xf32>
    %594 = arith.subf %590, %593 : vector<16x8xf32>
    %595 = math.exp %594 : vector<16x8xf32>
    %cst_84 = arith.constant dense<0.000000e+00> : vector<16xf32>
    %596 = vector.multi_reduction <add>, %595, %cst_84 [1] : vector<16x8xf32> to vector<16xf32>
    %597 = vector.shape_cast %596 : vector<16xf32> to vector<16x1xf32>
    %598 = tpu.reciprocal %597 {approx = true} : vector<16x1xf32> -> vector<16x1xf32>
    %599 = vector.broadcast %598 : vector<16x1xf32> to vector<16x8xf32>
    %600 = arith.mulf %595, %599 : vector<16x8xf32>
    %601 = arith.index_cast %arg0 : i32 to index
    %c32 = arith.constant 32 : index
    %602 = memref.load %arg1[%601, %c32] : memref<2x128xf32, #tpu.memory_space<smem>>
    %603 = arith.index_cast %arg0 : i32 to index
    %c96 = arith.constant 96 : index
    %604 = memref.load %arg1[%603, %c96] : memref<2x128xf32, #tpu.memory_space<smem>>
    %605 = vector.broadcast %602 : f32 to vector<16x8xf32>
    %606 = arith.mulf %4, %605 : vector<16x8xf32>
    %607 = vector.broadcast %604 : f32 to vector<16x8xf32>
    %608 = arith.addf %606, %607 : vector<16x8xf32>
    %cst_85 = arith.constant 0.000000e+00 : f32
    %609 = vector.broadcast %cst_85 : f32 to vector<16x8xf32>
    %610 = arith.cmpf oge, %608, %609 : vector<16x8xf32>
    %cst_86 = arith.constant 0.00999999977 : f32
    %611 = vector.broadcast %cst_86 : f32 to vector<16x8xf32>
    %612 = arith.mulf %611, %608 : vector<16x8xf32>
    %613 = arith.select %610, %608, %612 : vector<16x8xi1>, vector<16x8xf32>
    %614 = arith.mulf %159, %613 : vector<16x8xf32>
    %cst_87 = arith.constant dense<0.000000e+00> : vector<16xf32>
    %615 = vector.multi_reduction <add>, %614, %cst_87 [1] : vector<16x8xf32> to vector<16xf32>
    %616 = vector.shape_cast %615 : vector<16xf32> to vector<16x1xf32>
    %617 = arith.index_cast %arg0 : i32 to index
    %c33 = arith.constant 33 : index
    %618 = memref.load %arg1[%617, %c33] : memref<2x128xf32, #tpu.memory_space<smem>>
    %619 = arith.index_cast %arg0 : i32 to index
    %c97 = arith.constant 97 : index
    %620 = memref.load %arg1[%619, %c97] : memref<2x128xf32, #tpu.memory_space<smem>>
    %621 = vector.broadcast %618 : f32 to vector<16x8xf32>
    %622 = arith.mulf %4, %621 : vector<16x8xf32>
    %623 = vector.broadcast %620 : f32 to vector<16x8xf32>
    %624 = arith.addf %622, %623 : vector<16x8xf32>
    %cst_88 = arith.constant 0.000000e+00 : f32
    %625 = vector.broadcast %cst_88 : f32 to vector<16x8xf32>
    %626 = arith.cmpf oge, %624, %625 : vector<16x8xf32>
    %cst_89 = arith.constant 0.00999999977 : f32
    %627 = vector.broadcast %cst_89 : f32 to vector<16x8xf32>
    %628 = arith.mulf %627, %624 : vector<16x8xf32>
    %629 = arith.select %626, %624, %628 : vector<16x8xi1>, vector<16x8xf32>
    %630 = arith.mulf %159, %629 : vector<16x8xf32>
    %cst_90 = arith.constant dense<0.000000e+00> : vector<16xf32>
    %631 = vector.multi_reduction <add>, %630, %cst_90 [1] : vector<16x8xf32> to vector<16xf32>
    %632 = vector.shape_cast %631 : vector<16xf32> to vector<16x1xf32>
    %633 = arith.index_cast %arg0 : i32 to index
    %c34 = arith.constant 34 : index
    %634 = memref.load %arg1[%633, %c34] : memref<2x128xf32, #tpu.memory_space<smem>>
    %635 = arith.index_cast %arg0 : i32 to index
    %c98 = arith.constant 98 : index
    %636 = memref.load %arg1[%635, %c98] : memref<2x128xf32, #tpu.memory_space<smem>>
    %637 = vector.broadcast %634 : f32 to vector<16x8xf32>
    %638 = arith.mulf %4, %637 : vector<16x8xf32>
    %639 = vector.broadcast %636 : f32 to vector<16x8xf32>
    %640 = arith.addf %638, %639 : vector<16x8xf32>
    %cst_91 = arith.constant 0.000000e+00 : f32
    %641 = vector.broadcast %cst_91 : f32 to vector<16x8xf32>
    %642 = arith.cmpf oge, %640, %641 : vector<16x8xf32>
    %cst_92 = arith.constant 0.00999999977 : f32
    %643 = vector.broadcast %cst_92 : f32 to vector<16x8xf32>
    %644 = arith.mulf %643, %640 : vector<16x8xf32>
    %645 = arith.select %642, %640, %644 : vector<16x8xi1>, vector<16x8xf32>
    %646 = arith.mulf %159, %645 : vector<16x8xf32>
    %cst_93 = arith.constant dense<0.000000e+00> : vector<16xf32>
    %647 = vector.multi_reduction <add>, %646, %cst_93 [1] : vector<16x8xf32> to vector<16xf32>
    %648 = vector.shape_cast %647 : vector<16xf32> to vector<16x1xf32>
    %649 = arith.index_cast %arg0 : i32 to index
    %c35 = arith.constant 35 : index
    %650 = memref.load %arg1[%649, %c35] : memref<2x128xf32, #tpu.memory_space<smem>>
    %651 = arith.index_cast %arg0 : i32 to index
    %c99 = arith.constant 99 : index
    %652 = memref.load %arg1[%651, %c99] : memref<2x128xf32, #tpu.memory_space<smem>>
    %653 = vector.broadcast %650 : f32 to vector<16x8xf32>
    %654 = arith.mulf %4, %653 : vector<16x8xf32>
    %655 = vector.broadcast %652 : f32 to vector<16x8xf32>
    %656 = arith.addf %654, %655 : vector<16x8xf32>
    %cst_94 = arith.constant 0.000000e+00 : f32
    %657 = vector.broadcast %cst_94 : f32 to vector<16x8xf32>
    %658 = arith.cmpf oge, %656, %657 : vector<16x8xf32>
    %cst_95 = arith.constant 0.00999999977 : f32
    %659 = vector.broadcast %cst_95 : f32 to vector<16x8xf32>
    %660 = arith.mulf %659, %656 : vector<16x8xf32>
    %661 = arith.select %658, %656, %660 : vector<16x8xi1>, vector<16x8xf32>
    %662 = arith.mulf %159, %661 : vector<16x8xf32>
    %cst_96 = arith.constant dense<0.000000e+00> : vector<16xf32>
    %663 = vector.multi_reduction <add>, %662, %cst_96 [1] : vector<16x8xf32> to vector<16xf32>
    %664 = vector.shape_cast %663 : vector<16xf32> to vector<16x1xf32>
    %665 = arith.index_cast %arg0 : i32 to index
    %c36 = arith.constant 36 : index
    %666 = memref.load %arg1[%665, %c36] : memref<2x128xf32, #tpu.memory_space<smem>>
    %667 = arith.index_cast %arg0 : i32 to index
    %c100 = arith.constant 100 : index
    %668 = memref.load %arg1[%667, %c100] : memref<2x128xf32, #tpu.memory_space<smem>>
    %669 = vector.broadcast %666 : f32 to vector<16x8xf32>
    %670 = arith.mulf %4, %669 : vector<16x8xf32>
    %671 = vector.broadcast %668 : f32 to vector<16x8xf32>
    %672 = arith.addf %670, %671 : vector<16x8xf32>
    %cst_97 = arith.constant 0.000000e+00 : f32
    %673 = vector.broadcast %cst_97 : f32 to vector<16x8xf32>
    %674 = arith.cmpf oge, %672, %673 : vector<16x8xf32>
    %cst_98 = arith.constant 0.00999999977 : f32
    %675 = vector.broadcast %cst_98 : f32 to vector<16x8xf32>
    %676 = arith.mulf %675, %672 : vector<16x8xf32>
    %677 = arith.select %674, %672, %676 : vector<16x8xi1>, vector<16x8xf32>
    %678 = arith.mulf %159, %677 : vector<16x8xf32>
    %cst_99 = arith.constant dense<0.000000e+00> : vector<16xf32>
    %679 = vector.multi_reduction <add>, %678, %cst_99 [1] : vector<16x8xf32> to vector<16xf32>
    %680 = vector.shape_cast %679 : vector<16xf32> to vector<16x1xf32>
    %681 = arith.index_cast %arg0 : i32 to index
    %c37 = arith.constant 37 : index
    %682 = memref.load %arg1[%681, %c37] : memref<2x128xf32, #tpu.memory_space<smem>>
    %683 = arith.index_cast %arg0 : i32 to index
    %c101 = arith.constant 101 : index
    %684 = memref.load %arg1[%683, %c101] : memref<2x128xf32, #tpu.memory_space<smem>>
    %685 = vector.broadcast %682 : f32 to vector<16x8xf32>
    %686 = arith.mulf %4, %685 : vector<16x8xf32>
    %687 = vector.broadcast %684 : f32 to vector<16x8xf32>
    %688 = arith.addf %686, %687 : vector<16x8xf32>
    %cst_100 = arith.constant 0.000000e+00 : f32
    %689 = vector.broadcast %cst_100 : f32 to vector<16x8xf32>
    %690 = arith.cmpf oge, %688, %689 : vector<16x8xf32>
    %cst_101 = arith.constant 0.00999999977 : f32
    %691 = vector.broadcast %cst_101 : f32 to vector<16x8xf32>
    %692 = arith.mulf %691, %688 : vector<16x8xf32>
    %693 = arith.select %690, %688, %692 : vector<16x8xi1>, vector<16x8xf32>
    %694 = arith.mulf %159, %693 : vector<16x8xf32>
    %cst_102 = arith.constant dense<0.000000e+00> : vector<16xf32>
    %695 = vector.multi_reduction <add>, %694, %cst_102 [1] : vector<16x8xf32> to vector<16xf32>
    %696 = vector.shape_cast %695 : vector<16xf32> to vector<16x1xf32>
    %697 = arith.index_cast %arg0 : i32 to index
    %c38 = arith.constant 38 : index
    %698 = memref.load %arg1[%697, %c38] : memref<2x128xf32, #tpu.memory_space<smem>>
    %699 = arith.index_cast %arg0 : i32 to index
    %c102 = arith.constant 102 : index
    %700 = memref.load %arg1[%699, %c102] : memref<2x128xf32, #tpu.memory_space<smem>>
    %701 = vector.broadcast %698 : f32 to vector<16x8xf32>
    %702 = arith.mulf %4, %701 : vector<16x8xf32>
    %703 = vector.broadcast %700 : f32 to vector<16x8xf32>
    %704 = arith.addf %702, %703 : vector<16x8xf32>
    %cst_103 = arith.constant 0.000000e+00 : f32
    %705 = vector.broadcast %cst_103 : f32 to vector<16x8xf32>
    %706 = arith.cmpf oge, %704, %705 : vector<16x8xf32>
    %cst_104 = arith.constant 0.00999999977 : f32
    %707 = vector.broadcast %cst_104 : f32 to vector<16x8xf32>
    %708 = arith.mulf %707, %704 : vector<16x8xf32>
    %709 = arith.select %706, %704, %708 : vector<16x8xi1>, vector<16x8xf32>
    %710 = arith.mulf %159, %709 : vector<16x8xf32>
    %cst_105 = arith.constant dense<0.000000e+00> : vector<16xf32>
    %711 = vector.multi_reduction <add>, %710, %cst_105 [1] : vector<16x8xf32> to vector<16xf32>
    %712 = vector.shape_cast %711 : vector<16xf32> to vector<16x1xf32>
    %713 = arith.index_cast %arg0 : i32 to index
    %c39 = arith.constant 39 : index
    %714 = memref.load %arg1[%713, %c39] : memref<2x128xf32, #tpu.memory_space<smem>>
    %715 = arith.index_cast %arg0 : i32 to index
    %c103 = arith.constant 103 : index
    %716 = memref.load %arg1[%715, %c103] : memref<2x128xf32, #tpu.memory_space<smem>>
    %717 = vector.broadcast %714 : f32 to vector<16x8xf32>
    %718 = arith.mulf %4, %717 : vector<16x8xf32>
    %719 = vector.broadcast %716 : f32 to vector<16x8xf32>
    %720 = arith.addf %718, %719 : vector<16x8xf32>
    %cst_106 = arith.constant 0.000000e+00 : f32
    %721 = vector.broadcast %cst_106 : f32 to vector<16x8xf32>
    %722 = arith.cmpf oge, %720, %721 : vector<16x8xf32>
    %cst_107 = arith.constant 0.00999999977 : f32
    %723 = vector.broadcast %cst_107 : f32 to vector<16x8xf32>
    %724 = arith.mulf %723, %720 : vector<16x8xf32>
    %725 = arith.select %722, %720, %724 : vector<16x8xi1>, vector<16x8xf32>
    %726 = arith.mulf %159, %725 : vector<16x8xf32>
    %cst_108 = arith.constant dense<0.000000e+00> : vector<16xf32>
    %727 = vector.multi_reduction <add>, %726, %cst_108 [1] : vector<16x8xf32> to vector<16xf32>
    %728 = vector.shape_cast %727 : vector<16xf32> to vector<16x1xf32>
    %729 = arith.index_cast %arg0 : i32 to index
    %c40 = arith.constant 40 : index
    %730 = memref.load %arg1[%729, %c40] : memref<2x128xf32, #tpu.memory_space<smem>>
    %731 = arith.index_cast %arg0 : i32 to index
    %c104 = arith.constant 104 : index
    %732 = memref.load %arg1[%731, %c104] : memref<2x128xf32, #tpu.memory_space<smem>>
    %733 = vector.broadcast %730 : f32 to vector<16x8xf32>
    %734 = arith.mulf %4, %733 : vector<16x8xf32>
    %735 = vector.broadcast %732 : f32 to vector<16x8xf32>
    %736 = arith.addf %734, %735 : vector<16x8xf32>
    %cst_109 = arith.constant 0.000000e+00 : f32
    %737 = vector.broadcast %cst_109 : f32 to vector<16x8xf32>
    %738 = arith.cmpf oge, %736, %737 : vector<16x8xf32>
    %cst_110 = arith.constant 0.00999999977 : f32
    %739 = vector.broadcast %cst_110 : f32 to vector<16x8xf32>
    %740 = arith.mulf %739, %736 : vector<16x8xf32>
    %741 = arith.select %738, %736, %740 : vector<16x8xi1>, vector<16x8xf32>
    %742 = arith.mulf %306, %741 : vector<16x8xf32>
    %cst_111 = arith.constant dense<0.000000e+00> : vector<16xf32>
    %743 = vector.multi_reduction <add>, %742, %cst_111 [1] : vector<16x8xf32> to vector<16xf32>
    %744 = vector.shape_cast %743 : vector<16xf32> to vector<16x1xf32>
    %745 = arith.index_cast %arg0 : i32 to index
    %c41 = arith.constant 41 : index
    %746 = memref.load %arg1[%745, %c41] : memref<2x128xf32, #tpu.memory_space<smem>>
    %747 = arith.index_cast %arg0 : i32 to index
    %c105 = arith.constant 105 : index
    %748 = memref.load %arg1[%747, %c105] : memref<2x128xf32, #tpu.memory_space<smem>>
    %749 = vector.broadcast %746 : f32 to vector<16x8xf32>
    %750 = arith.mulf %4, %749 : vector<16x8xf32>
    %751 = vector.broadcast %748 : f32 to vector<16x8xf32>
    %752 = arith.addf %750, %751 : vector<16x8xf32>
    %cst_112 = arith.constant 0.000000e+00 : f32
    %753 = vector.broadcast %cst_112 : f32 to vector<16x8xf32>
    %754 = arith.cmpf oge, %752, %753 : vector<16x8xf32>
    %cst_113 = arith.constant 0.00999999977 : f32
    %755 = vector.broadcast %cst_113 : f32 to vector<16x8xf32>
    %756 = arith.mulf %755, %752 : vector<16x8xf32>
    %757 = arith.select %754, %752, %756 : vector<16x8xi1>, vector<16x8xf32>
    %758 = arith.mulf %306, %757 : vector<16x8xf32>
    %cst_114 = arith.constant dense<0.000000e+00> : vector<16xf32>
    %759 = vector.multi_reduction <add>, %758, %cst_114 [1] : vector<16x8xf32> to vector<16xf32>
    %760 = vector.shape_cast %759 : vector<16xf32> to vector<16x1xf32>
    %761 = arith.index_cast %arg0 : i32 to index
    %c42 = arith.constant 42 : index
    %762 = memref.load %arg1[%761, %c42] : memref<2x128xf32, #tpu.memory_space<smem>>
    %763 = arith.index_cast %arg0 : i32 to index
    %c106 = arith.constant 106 : index
    %764 = memref.load %arg1[%763, %c106] : memref<2x128xf32, #tpu.memory_space<smem>>
    %765 = vector.broadcast %762 : f32 to vector<16x8xf32>
    %766 = arith.mulf %4, %765 : vector<16x8xf32>
    %767 = vector.broadcast %764 : f32 to vector<16x8xf32>
    %768 = arith.addf %766, %767 : vector<16x8xf32>
    %cst_115 = arith.constant 0.000000e+00 : f32
    %769 = vector.broadcast %cst_115 : f32 to vector<16x8xf32>
    %770 = arith.cmpf oge, %768, %769 : vector<16x8xf32>
    %cst_116 = arith.constant 0.00999999977 : f32
    %771 = vector.broadcast %cst_116 : f32 to vector<16x8xf32>
    %772 = arith.mulf %771, %768 : vector<16x8xf32>
    %773 = arith.select %770, %768, %772 : vector<16x8xi1>, vector<16x8xf32>
    %774 = arith.mulf %306, %773 : vector<16x8xf32>
    %cst_117 = arith.constant dense<0.000000e+00> : vector<16xf32>
    %775 = vector.multi_reduction <add>, %774, %cst_117 [1] : vector<16x8xf32> to vector<16xf32>
    %776 = vector.shape_cast %775 : vector<16xf32> to vector<16x1xf32>
    %777 = arith.index_cast %arg0 : i32 to index
    %c43 = arith.constant 43 : index
    %778 = memref.load %arg1[%777, %c43] : memref<2x128xf32, #tpu.memory_space<smem>>
    %779 = arith.index_cast %arg0 : i32 to index
    %c107 = arith.constant 107 : index
    %780 = memref.load %arg1[%779, %c107] : memref<2x128xf32, #tpu.memory_space<smem>>
    %781 = vector.broadcast %778 : f32 to vector<16x8xf32>
    %782 = arith.mulf %4, %781 : vector<16x8xf32>
    %783 = vector.broadcast %780 : f32 to vector<16x8xf32>
    %784 = arith.addf %782, %783 : vector<16x8xf32>
    %cst_118 = arith.constant 0.000000e+00 : f32
    %785 = vector.broadcast %cst_118 : f32 to vector<16x8xf32>
    %786 = arith.cmpf oge, %784, %785 : vector<16x8xf32>
    %cst_119 = arith.constant 0.00999999977 : f32
    %787 = vector.broadcast %cst_119 : f32 to vector<16x8xf32>
    %788 = arith.mulf %787, %784 : vector<16x8xf32>
    %789 = arith.select %786, %784, %788 : vector<16x8xi1>, vector<16x8xf32>
    %790 = arith.mulf %306, %789 : vector<16x8xf32>
    %cst_120 = arith.constant dense<0.000000e+00> : vector<16xf32>
    %791 = vector.multi_reduction <add>, %790, %cst_120 [1] : vector<16x8xf32> to vector<16xf32>
    %792 = vector.shape_cast %791 : vector<16xf32> to vector<16x1xf32>
    %793 = arith.index_cast %arg0 : i32 to index
    %c44 = arith.constant 44 : index
    %794 = memref.load %arg1[%793, %c44] : memref<2x128xf32, #tpu.memory_space<smem>>
    %795 = arith.index_cast %arg0 : i32 to index
    %c108 = arith.constant 108 : index
    %796 = memref.load %arg1[%795, %c108] : memref<2x128xf32, #tpu.memory_space<smem>>
    %797 = vector.broadcast %794 : f32 to vector<16x8xf32>
    %798 = arith.mulf %4, %797 : vector<16x8xf32>
    %799 = vector.broadcast %796 : f32 to vector<16x8xf32>
    %800 = arith.addf %798, %799 : vector<16x8xf32>
    %cst_121 = arith.constant 0.000000e+00 : f32
    %801 = vector.broadcast %cst_121 : f32 to vector<16x8xf32>
    %802 = arith.cmpf oge, %800, %801 : vector<16x8xf32>
    %cst_122 = arith.constant 0.00999999977 : f32
    %803 = vector.broadcast %cst_122 : f32 to vector<16x8xf32>
    %804 = arith.mulf %803, %800 : vector<16x8xf32>
    %805 = arith.select %802, %800, %804 : vector<16x8xi1>, vector<16x8xf32>
    %806 = arith.mulf %306, %805 : vector<16x8xf32>
    %cst_123 = arith.constant dense<0.000000e+00> : vector<16xf32>
    %807 = vector.multi_reduction <add>, %806, %cst_123 [1] : vector<16x8xf32> to vector<16xf32>
    %808 = vector.shape_cast %807 : vector<16xf32> to vector<16x1xf32>
    %809 = arith.index_cast %arg0 : i32 to index
    %c45 = arith.constant 45 : index
    %810 = memref.load %arg1[%809, %c45] : memref<2x128xf32, #tpu.memory_space<smem>>
    %811 = arith.index_cast %arg0 : i32 to index
    %c109 = arith.constant 109 : index
    %812 = memref.load %arg1[%811, %c109] : memref<2x128xf32, #tpu.memory_space<smem>>
    %813 = vector.broadcast %810 : f32 to vector<16x8xf32>
    %814 = arith.mulf %4, %813 : vector<16x8xf32>
    %815 = vector.broadcast %812 : f32 to vector<16x8xf32>
    %816 = arith.addf %814, %815 : vector<16x8xf32>
    %cst_124 = arith.constant 0.000000e+00 : f32
    %817 = vector.broadcast %cst_124 : f32 to vector<16x8xf32>
    %818 = arith.cmpf oge, %816, %817 : vector<16x8xf32>
    %cst_125 = arith.constant 0.00999999977 : f32
    %819 = vector.broadcast %cst_125 : f32 to vector<16x8xf32>
    %820 = arith.mulf %819, %816 : vector<16x8xf32>
    %821 = arith.select %818, %816, %820 : vector<16x8xi1>, vector<16x8xf32>
    %822 = arith.mulf %306, %821 : vector<16x8xf32>
    %cst_126 = arith.constant dense<0.000000e+00> : vector<16xf32>
    %823 = vector.multi_reduction <add>, %822, %cst_126 [1] : vector<16x8xf32> to vector<16xf32>
    %824 = vector.shape_cast %823 : vector<16xf32> to vector<16x1xf32>
    %825 = arith.index_cast %arg0 : i32 to index
    %c46 = arith.constant 46 : index
    %826 = memref.load %arg1[%825, %c46] : memref<2x128xf32, #tpu.memory_space<smem>>
    %827 = arith.index_cast %arg0 : i32 to index
    %c110 = arith.constant 110 : index
    %828 = memref.load %arg1[%827, %c110] : memref<2x128xf32, #tpu.memory_space<smem>>
    %829 = vector.broadcast %826 : f32 to vector<16x8xf32>
    %830 = arith.mulf %4, %829 : vector<16x8xf32>
    %831 = vector.broadcast %828 : f32 to vector<16x8xf32>
    %832 = arith.addf %830, %831 : vector<16x8xf32>
    %cst_127 = arith.constant 0.000000e+00 : f32
    %833 = vector.broadcast %cst_127 : f32 to vector<16x8xf32>
    %834 = arith.cmpf oge, %832, %833 : vector<16x8xf32>
    %cst_128 = arith.constant 0.00999999977 : f32
    %835 = vector.broadcast %cst_128 : f32 to vector<16x8xf32>
    %836 = arith.mulf %835, %832 : vector<16x8xf32>
    %837 = arith.select %834, %832, %836 : vector<16x8xi1>, vector<16x8xf32>
    %838 = arith.mulf %306, %837 : vector<16x8xf32>
    %cst_129 = arith.constant dense<0.000000e+00> : vector<16xf32>
    %839 = vector.multi_reduction <add>, %838, %cst_129 [1] : vector<16x8xf32> to vector<16xf32>
    %840 = vector.shape_cast %839 : vector<16xf32> to vector<16x1xf32>
    %841 = arith.index_cast %arg0 : i32 to index
    %c47 = arith.constant 47 : index
    %842 = memref.load %arg1[%841, %c47] : memref<2x128xf32, #tpu.memory_space<smem>>
    %843 = arith.index_cast %arg0 : i32 to index
    %c111 = arith.constant 111 : index
    %844 = memref.load %arg1[%843, %c111] : memref<2x128xf32, #tpu.memory_space<smem>>
    %845 = vector.broadcast %842 : f32 to vector<16x8xf32>
    %846 = arith.mulf %4, %845 : vector<16x8xf32>
    %847 = vector.broadcast %844 : f32 to vector<16x8xf32>
    %848 = arith.addf %846, %847 : vector<16x8xf32>
    %cst_130 = arith.constant 0.000000e+00 : f32
    %849 = vector.broadcast %cst_130 : f32 to vector<16x8xf32>
    %850 = arith.cmpf oge, %848, %849 : vector<16x8xf32>
    %cst_131 = arith.constant 0.00999999977 : f32
    %851 = vector.broadcast %cst_131 : f32 to vector<16x8xf32>
    %852 = arith.mulf %851, %848 : vector<16x8xf32>
    %853 = arith.select %850, %848, %852 : vector<16x8xi1>, vector<16x8xf32>
    %854 = arith.mulf %306, %853 : vector<16x8xf32>
    %cst_132 = arith.constant dense<0.000000e+00> : vector<16xf32>
    %855 = vector.multi_reduction <add>, %854, %cst_132 [1] : vector<16x8xf32> to vector<16xf32>
    %856 = vector.shape_cast %855 : vector<16xf32> to vector<16x1xf32>
    %857 = arith.index_cast %arg0 : i32 to index
    %c48 = arith.constant 48 : index
    %858 = memref.load %arg1[%857, %c48] : memref<2x128xf32, #tpu.memory_space<smem>>
    %859 = arith.index_cast %arg0 : i32 to index
    %c112 = arith.constant 112 : index
    %860 = memref.load %arg1[%859, %c112] : memref<2x128xf32, #tpu.memory_space<smem>>
    %861 = vector.broadcast %858 : f32 to vector<16x8xf32>
    %862 = arith.mulf %4, %861 : vector<16x8xf32>
    %863 = vector.broadcast %860 : f32 to vector<16x8xf32>
    %864 = arith.addf %862, %863 : vector<16x8xf32>
    %cst_133 = arith.constant 0.000000e+00 : f32
    %865 = vector.broadcast %cst_133 : f32 to vector<16x8xf32>
    %866 = arith.cmpf oge, %864, %865 : vector<16x8xf32>
    %cst_134 = arith.constant 0.00999999977 : f32
    %867 = vector.broadcast %cst_134 : f32 to vector<16x8xf32>
    %868 = arith.mulf %867, %864 : vector<16x8xf32>
    %869 = arith.select %866, %864, %868 : vector<16x8xi1>, vector<16x8xf32>
    %870 = arith.mulf %453, %869 : vector<16x8xf32>
    %cst_135 = arith.constant dense<0.000000e+00> : vector<16xf32>
    %871 = vector.multi_reduction <add>, %870, %cst_135 [1] : vector<16x8xf32> to vector<16xf32>
    %872 = vector.shape_cast %871 : vector<16xf32> to vector<16x1xf32>
    %873 = arith.index_cast %arg0 : i32 to index
    %c49 = arith.constant 49 : index
    %874 = memref.load %arg1[%873, %c49] : memref<2x128xf32, #tpu.memory_space<smem>>
    %875 = arith.index_cast %arg0 : i32 to index
    %c113 = arith.constant 113 : index
    %876 = memref.load %arg1[%875, %c113] : memref<2x128xf32, #tpu.memory_space<smem>>
    %877 = vector.broadcast %874 : f32 to vector<16x8xf32>
    %878 = arith.mulf %4, %877 : vector<16x8xf32>
    %879 = vector.broadcast %876 : f32 to vector<16x8xf32>
    %880 = arith.addf %878, %879 : vector<16x8xf32>
    %cst_136 = arith.constant 0.000000e+00 : f32
    %881 = vector.broadcast %cst_136 : f32 to vector<16x8xf32>
    %882 = arith.cmpf oge, %880, %881 : vector<16x8xf32>
    %cst_137 = arith.constant 0.00999999977 : f32
    %883 = vector.broadcast %cst_137 : f32 to vector<16x8xf32>
    %884 = arith.mulf %883, %880 : vector<16x8xf32>
    %885 = arith.select %882, %880, %884 : vector<16x8xi1>, vector<16x8xf32>
    %886 = arith.mulf %453, %885 : vector<16x8xf32>
    %cst_138 = arith.constant dense<0.000000e+00> : vector<16xf32>
    %887 = vector.multi_reduction <add>, %886, %cst_138 [1] : vector<16x8xf32> to vector<16xf32>
    %888 = vector.shape_cast %887 : vector<16xf32> to vector<16x1xf32>
    %889 = arith.index_cast %arg0 : i32 to index
    %c50 = arith.constant 50 : index
    %890 = memref.load %arg1[%889, %c50] : memref<2x128xf32, #tpu.memory_space<smem>>
    %891 = arith.index_cast %arg0 : i32 to index
    %c114 = arith.constant 114 : index
    %892 = memref.load %arg1[%891, %c114] : memref<2x128xf32, #tpu.memory_space<smem>>
    %893 = vector.broadcast %890 : f32 to vector<16x8xf32>
    %894 = arith.mulf %4, %893 : vector<16x8xf32>
    %895 = vector.broadcast %892 : f32 to vector<16x8xf32>
    %896 = arith.addf %894, %895 : vector<16x8xf32>
    %cst_139 = arith.constant 0.000000e+00 : f32
    %897 = vector.broadcast %cst_139 : f32 to vector<16x8xf32>
    %898 = arith.cmpf oge, %896, %897 : vector<16x8xf32>
    %cst_140 = arith.constant 0.00999999977 : f32
    %899 = vector.broadcast %cst_140 : f32 to vector<16x8xf32>
    %900 = arith.mulf %899, %896 : vector<16x8xf32>
    %901 = arith.select %898, %896, %900 : vector<16x8xi1>, vector<16x8xf32>
    %902 = arith.mulf %453, %901 : vector<16x8xf32>
    %cst_141 = arith.constant dense<0.000000e+00> : vector<16xf32>
    %903 = vector.multi_reduction <add>, %902, %cst_141 [1] : vector<16x8xf32> to vector<16xf32>
    %904 = vector.shape_cast %903 : vector<16xf32> to vector<16x1xf32>
    %905 = arith.index_cast %arg0 : i32 to index
    %c51 = arith.constant 51 : index
    %906 = memref.load %arg1[%905, %c51] : memref<2x128xf32, #tpu.memory_space<smem>>
    %907 = arith.index_cast %arg0 : i32 to index
    %c115 = arith.constant 115 : index
    %908 = memref.load %arg1[%907, %c115] : memref<2x128xf32, #tpu.memory_space<smem>>
    %909 = vector.broadcast %906 : f32 to vector<16x8xf32>
    %910 = arith.mulf %4, %909 : vector<16x8xf32>
    %911 = vector.broadcast %908 : f32 to vector<16x8xf32>
    %912 = arith.addf %910, %911 : vector<16x8xf32>
    %cst_142 = arith.constant 0.000000e+00 : f32
    %913 = vector.broadcast %cst_142 : f32 to vector<16x8xf32>
    %914 = arith.cmpf oge, %912, %913 : vector<16x8xf32>
    %cst_143 = arith.constant 0.00999999977 : f32
    %915 = vector.broadcast %cst_143 : f32 to vector<16x8xf32>
    %916 = arith.mulf %915, %912 : vector<16x8xf32>
    %917 = arith.select %914, %912, %916 : vector<16x8xi1>, vector<16x8xf32>
    %918 = arith.mulf %453, %917 : vector<16x8xf32>
    %cst_144 = arith.constant dense<0.000000e+00> : vector<16xf32>
    %919 = vector.multi_reduction <add>, %918, %cst_144 [1] : vector<16x8xf32> to vector<16xf32>
    %920 = vector.shape_cast %919 : vector<16xf32> to vector<16x1xf32>
    %921 = arith.index_cast %arg0 : i32 to index
    %c52 = arith.constant 52 : index
    %922 = memref.load %arg1[%921, %c52] : memref<2x128xf32, #tpu.memory_space<smem>>
    %923 = arith.index_cast %arg0 : i32 to index
    %c116 = arith.constant 116 : index
    %924 = memref.load %arg1[%923, %c116] : memref<2x128xf32, #tpu.memory_space<smem>>
    %925 = vector.broadcast %922 : f32 to vector<16x8xf32>
    %926 = arith.mulf %4, %925 : vector<16x8xf32>
    %927 = vector.broadcast %924 : f32 to vector<16x8xf32>
    %928 = arith.addf %926, %927 : vector<16x8xf32>
    %cst_145 = arith.constant 0.000000e+00 : f32
    %929 = vector.broadcast %cst_145 : f32 to vector<16x8xf32>
    %930 = arith.cmpf oge, %928, %929 : vector<16x8xf32>
    %cst_146 = arith.constant 0.00999999977 : f32
    %931 = vector.broadcast %cst_146 : f32 to vector<16x8xf32>
    %932 = arith.mulf %931, %928 : vector<16x8xf32>
    %933 = arith.select %930, %928, %932 : vector<16x8xi1>, vector<16x8xf32>
    %934 = arith.mulf %453, %933 : vector<16x8xf32>
    %cst_147 = arith.constant dense<0.000000e+00> : vector<16xf32>
    %935 = vector.multi_reduction <add>, %934, %cst_147 [1] : vector<16x8xf32> to vector<16xf32>
    %936 = vector.shape_cast %935 : vector<16xf32> to vector<16x1xf32>
    %937 = arith.index_cast %arg0 : i32 to index
    %c53 = arith.constant 53 : index
    %938 = memref.load %arg1[%937, %c53] : memref<2x128xf32, #tpu.memory_space<smem>>
    %939 = arith.index_cast %arg0 : i32 to index
    %c117 = arith.constant 117 : index
    %940 = memref.load %arg1[%939, %c117] : memref<2x128xf32, #tpu.memory_space<smem>>
    %941 = vector.broadcast %938 : f32 to vector<16x8xf32>
    %942 = arith.mulf %4, %941 : vector<16x8xf32>
    %943 = vector.broadcast %940 : f32 to vector<16x8xf32>
    %944 = arith.addf %942, %943 : vector<16x8xf32>
    %cst_148 = arith.constant 0.000000e+00 : f32
    %945 = vector.broadcast %cst_148 : f32 to vector<16x8xf32>
    %946 = arith.cmpf oge, %944, %945 : vector<16x8xf32>
    %cst_149 = arith.constant 0.00999999977 : f32
    %947 = vector.broadcast %cst_149 : f32 to vector<16x8xf32>
    %948 = arith.mulf %947, %944 : vector<16x8xf32>
    %949 = arith.select %946, %944, %948 : vector<16x8xi1>, vector<16x8xf32>
    %950 = arith.mulf %453, %949 : vector<16x8xf32>
    %cst_150 = arith.constant dense<0.000000e+00> : vector<16xf32>
    %951 = vector.multi_reduction <add>, %950, %cst_150 [1] : vector<16x8xf32> to vector<16xf32>
    %952 = vector.shape_cast %951 : vector<16xf32> to vector<16x1xf32>
    %953 = arith.index_cast %arg0 : i32 to index
    %c54 = arith.constant 54 : index
    %954 = memref.load %arg1[%953, %c54] : memref<2x128xf32, #tpu.memory_space<smem>>
    %955 = arith.index_cast %arg0 : i32 to index
    %c118 = arith.constant 118 : index
    %956 = memref.load %arg1[%955, %c118] : memref<2x128xf32, #tpu.memory_space<smem>>
    %957 = vector.broadcast %954 : f32 to vector<16x8xf32>
    %958 = arith.mulf %4, %957 : vector<16x8xf32>
    %959 = vector.broadcast %956 : f32 to vector<16x8xf32>
    %960 = arith.addf %958, %959 : vector<16x8xf32>
    %cst_151 = arith.constant 0.000000e+00 : f32
    %961 = vector.broadcast %cst_151 : f32 to vector<16x8xf32>
    %962 = arith.cmpf oge, %960, %961 : vector<16x8xf32>
    %cst_152 = arith.constant 0.00999999977 : f32
    %963 = vector.broadcast %cst_152 : f32 to vector<16x8xf32>
    %964 = arith.mulf %963, %960 : vector<16x8xf32>
    %965 = arith.select %962, %960, %964 : vector<16x8xi1>, vector<16x8xf32>
    %966 = arith.mulf %453, %965 : vector<16x8xf32>
    %cst_153 = arith.constant dense<0.000000e+00> : vector<16xf32>
    %967 = vector.multi_reduction <add>, %966, %cst_153 [1] : vector<16x8xf32> to vector<16xf32>
    %968 = vector.shape_cast %967 : vector<16xf32> to vector<16x1xf32>
    %969 = arith.index_cast %arg0 : i32 to index
    %c55 = arith.constant 55 : index
    %970 = memref.load %arg1[%969, %c55] : memref<2x128xf32, #tpu.memory_space<smem>>
    %971 = arith.index_cast %arg0 : i32 to index
    %c119 = arith.constant 119 : index
    %972 = memref.load %arg1[%971, %c119] : memref<2x128xf32, #tpu.memory_space<smem>>
    %973 = vector.broadcast %970 : f32 to vector<16x8xf32>
    %974 = arith.mulf %4, %973 : vector<16x8xf32>
    %975 = vector.broadcast %972 : f32 to vector<16x8xf32>
    %976 = arith.addf %974, %975 : vector<16x8xf32>
    %cst_154 = arith.constant 0.000000e+00 : f32
    %977 = vector.broadcast %cst_154 : f32 to vector<16x8xf32>
    %978 = arith.cmpf oge, %976, %977 : vector<16x8xf32>
    %cst_155 = arith.constant 0.00999999977 : f32
    %979 = vector.broadcast %cst_155 : f32 to vector<16x8xf32>
    %980 = arith.mulf %979, %976 : vector<16x8xf32>
    %981 = arith.select %978, %976, %980 : vector<16x8xi1>, vector<16x8xf32>
    %982 = arith.mulf %453, %981 : vector<16x8xf32>
    %cst_156 = arith.constant dense<0.000000e+00> : vector<16xf32>
    %983 = vector.multi_reduction <add>, %982, %cst_156 [1] : vector<16x8xf32> to vector<16xf32>
    %984 = vector.shape_cast %983 : vector<16xf32> to vector<16x1xf32>
    %985 = arith.index_cast %arg0 : i32 to index
    %c56 = arith.constant 56 : index
    %986 = memref.load %arg1[%985, %c56] : memref<2x128xf32, #tpu.memory_space<smem>>
    %987 = arith.index_cast %arg0 : i32 to index
    %c120 = arith.constant 120 : index
    %988 = memref.load %arg1[%987, %c120] : memref<2x128xf32, #tpu.memory_space<smem>>
    %989 = vector.broadcast %986 : f32 to vector<16x8xf32>
    %990 = arith.mulf %4, %989 : vector<16x8xf32>
    %991 = vector.broadcast %988 : f32 to vector<16x8xf32>
    %992 = arith.addf %990, %991 : vector<16x8xf32>
    %cst_157 = arith.constant 0.000000e+00 : f32
    %993 = vector.broadcast %cst_157 : f32 to vector<16x8xf32>
    %994 = arith.cmpf oge, %992, %993 : vector<16x8xf32>
    %cst_158 = arith.constant 0.00999999977 : f32
    %995 = vector.broadcast %cst_158 : f32 to vector<16x8xf32>
    %996 = arith.mulf %995, %992 : vector<16x8xf32>
    %997 = arith.select %994, %992, %996 : vector<16x8xi1>, vector<16x8xf32>
    %998 = arith.mulf %600, %997 : vector<16x8xf32>
    %cst_159 = arith.constant dense<0.000000e+00> : vector<16xf32>
    %999 = vector.multi_reduction <add>, %998, %cst_159 [1] : vector<16x8xf32> to vector<16xf32>
    %1000 = vector.shape_cast %999 : vector<16xf32> to vector<16x1xf32>
    %1001 = arith.index_cast %arg0 : i32 to index
    %c57 = arith.constant 57 : index
    %1002 = memref.load %arg1[%1001, %c57] : memref<2x128xf32, #tpu.memory_space<smem>>
    %1003 = arith.index_cast %arg0 : i32 to index
    %c121 = arith.constant 121 : index
    %1004 = memref.load %arg1[%1003, %c121] : memref<2x128xf32, #tpu.memory_space<smem>>
    %1005 = vector.broadcast %1002 : f32 to vector<16x8xf32>
    %1006 = arith.mulf %4, %1005 : vector<16x8xf32>
    %1007 = vector.broadcast %1004 : f32 to vector<16x8xf32>
    %1008 = arith.addf %1006, %1007 : vector<16x8xf32>
    %cst_160 = arith.constant 0.000000e+00 : f32
    %1009 = vector.broadcast %cst_160 : f32 to vector<16x8xf32>
    %1010 = arith.cmpf oge, %1008, %1009 : vector<16x8xf32>
    %cst_161 = arith.constant 0.00999999977 : f32
    %1011 = vector.broadcast %cst_161 : f32 to vector<16x8xf32>
    %1012 = arith.mulf %1011, %1008 : vector<16x8xf32>
    %1013 = arith.select %1010, %1008, %1012 : vector<16x8xi1>, vector<16x8xf32>
    %1014 = arith.mulf %600, %1013 : vector<16x8xf32>
    %cst_162 = arith.constant dense<0.000000e+00> : vector<16xf32>
    %1015 = vector.multi_reduction <add>, %1014, %cst_162 [1] : vector<16x8xf32> to vector<16xf32>
    %1016 = vector.shape_cast %1015 : vector<16xf32> to vector<16x1xf32>
    %1017 = arith.index_cast %arg0 : i32 to index
    %c58 = arith.constant 58 : index
    %1018 = memref.load %arg1[%1017, %c58] : memref<2x128xf32, #tpu.memory_space<smem>>
    %1019 = arith.index_cast %arg0 : i32 to index
    %c122 = arith.constant 122 : index
    %1020 = memref.load %arg1[%1019, %c122] : memref<2x128xf32, #tpu.memory_space<smem>>
    %1021 = vector.broadcast %1018 : f32 to vector<16x8xf32>
    %1022 = arith.mulf %4, %1021 : vector<16x8xf32>
    %1023 = vector.broadcast %1020 : f32 to vector<16x8xf32>
    %1024 = arith.addf %1022, %1023 : vector<16x8xf32>
    %cst_163 = arith.constant 0.000000e+00 : f32
    %1025 = vector.broadcast %cst_163 : f32 to vector<16x8xf32>
    %1026 = arith.cmpf oge, %1024, %1025 : vector<16x8xf32>
    %cst_164 = arith.constant 0.00999999977 : f32
    %1027 = vector.broadcast %cst_164 : f32 to vector<16x8xf32>
    %1028 = arith.mulf %1027, %1024 : vector<16x8xf32>
    %1029 = arith.select %1026, %1024, %1028 : vector<16x8xi1>, vector<16x8xf32>
    %1030 = arith.mulf %600, %1029 : vector<16x8xf32>
    %cst_165 = arith.constant dense<0.000000e+00> : vector<16xf32>
    %1031 = vector.multi_reduction <add>, %1030, %cst_165 [1] : vector<16x8xf32> to vector<16xf32>
    %1032 = vector.shape_cast %1031 : vector<16xf32> to vector<16x1xf32>
    %1033 = arith.index_cast %arg0 : i32 to index
    %c59 = arith.constant 59 : index
    %1034 = memref.load %arg1[%1033, %c59] : memref<2x128xf32, #tpu.memory_space<smem>>
    %1035 = arith.index_cast %arg0 : i32 to index
    %c123 = arith.constant 123 : index
    %1036 = memref.load %arg1[%1035, %c123] : memref<2x128xf32, #tpu.memory_space<smem>>
    %1037 = vector.broadcast %1034 : f32 to vector<16x8xf32>
    %1038 = arith.mulf %4, %1037 : vector<16x8xf32>
    %1039 = vector.broadcast %1036 : f32 to vector<16x8xf32>
    %1040 = arith.addf %1038, %1039 : vector<16x8xf32>
    %cst_166 = arith.constant 0.000000e+00 : f32
    %1041 = vector.broadcast %cst_166 : f32 to vector<16x8xf32>
    %1042 = arith.cmpf oge, %1040, %1041 : vector<16x8xf32>
    %cst_167 = arith.constant 0.00999999977 : f32
    %1043 = vector.broadcast %cst_167 : f32 to vector<16x8xf32>
    %1044 = arith.mulf %1043, %1040 : vector<16x8xf32>
    %1045 = arith.select %1042, %1040, %1044 : vector<16x8xi1>, vector<16x8xf32>
    %1046 = arith.mulf %600, %1045 : vector<16x8xf32>
    %cst_168 = arith.constant dense<0.000000e+00> : vector<16xf32>
    %1047 = vector.multi_reduction <add>, %1046, %cst_168 [1] : vector<16x8xf32> to vector<16xf32>
    %1048 = vector.shape_cast %1047 : vector<16xf32> to vector<16x1xf32>
    %1049 = arith.index_cast %arg0 : i32 to index
    %c60 = arith.constant 60 : index
    %1050 = memref.load %arg1[%1049, %c60] : memref<2x128xf32, #tpu.memory_space<smem>>
    %1051 = arith.index_cast %arg0 : i32 to index
    %c124 = arith.constant 124 : index
    %1052 = memref.load %arg1[%1051, %c124] : memref<2x128xf32, #tpu.memory_space<smem>>
    %1053 = vector.broadcast %1050 : f32 to vector<16x8xf32>
    %1054 = arith.mulf %4, %1053 : vector<16x8xf32>
    %1055 = vector.broadcast %1052 : f32 to vector<16x8xf32>
    %1056 = arith.addf %1054, %1055 : vector<16x8xf32>
    %cst_169 = arith.constant 0.000000e+00 : f32
    %1057 = vector.broadcast %cst_169 : f32 to vector<16x8xf32>
    %1058 = arith.cmpf oge, %1056, %1057 : vector<16x8xf32>
    %cst_170 = arith.constant 0.00999999977 : f32
    %1059 = vector.broadcast %cst_170 : f32 to vector<16x8xf32>
    %1060 = arith.mulf %1059, %1056 : vector<16x8xf32>
    %1061 = arith.select %1058, %1056, %1060 : vector<16x8xi1>, vector<16x8xf32>
    %1062 = arith.mulf %600, %1061 : vector<16x8xf32>
    %cst_171 = arith.constant dense<0.000000e+00> : vector<16xf32>
    %1063 = vector.multi_reduction <add>, %1062, %cst_171 [1] : vector<16x8xf32> to vector<16xf32>
    %1064 = vector.shape_cast %1063 : vector<16xf32> to vector<16x1xf32>
    %1065 = arith.index_cast %arg0 : i32 to index
    %c61 = arith.constant 61 : index
    %1066 = memref.load %arg1[%1065, %c61] : memref<2x128xf32, #tpu.memory_space<smem>>
    %1067 = arith.index_cast %arg0 : i32 to index
    %c125 = arith.constant 125 : index
    %1068 = memref.load %arg1[%1067, %c125] : memref<2x128xf32, #tpu.memory_space<smem>>
    %1069 = vector.broadcast %1066 : f32 to vector<16x8xf32>
    %1070 = arith.mulf %4, %1069 : vector<16x8xf32>
    %1071 = vector.broadcast %1068 : f32 to vector<16x8xf32>
    %1072 = arith.addf %1070, %1071 : vector<16x8xf32>
    %cst_172 = arith.constant 0.000000e+00 : f32
    %1073 = vector.broadcast %cst_172 : f32 to vector<16x8xf32>
    %1074 = arith.cmpf oge, %1072, %1073 : vector<16x8xf32>
    %cst_173 = arith.constant 0.00999999977 : f32
    %1075 = vector.broadcast %cst_173 : f32 to vector<16x8xf32>
    %1076 = arith.mulf %1075, %1072 : vector<16x8xf32>
    %1077 = arith.select %1074, %1072, %1076 : vector<16x8xi1>, vector<16x8xf32>
    %1078 = arith.mulf %600, %1077 : vector<16x8xf32>
    %cst_174 = arith.constant dense<0.000000e+00> : vector<16xf32>
    %1079 = vector.multi_reduction <add>, %1078, %cst_174 [1] : vector<16x8xf32> to vector<16xf32>
    %1080 = vector.shape_cast %1079 : vector<16xf32> to vector<16x1xf32>
    %1081 = arith.index_cast %arg0 : i32 to index
    %c62 = arith.constant 62 : index
    %1082 = memref.load %arg1[%1081, %c62] : memref<2x128xf32, #tpu.memory_space<smem>>
    %1083 = arith.index_cast %arg0 : i32 to index
    %c126 = arith.constant 126 : index
    %1084 = memref.load %arg1[%1083, %c126] : memref<2x128xf32, #tpu.memory_space<smem>>
    %1085 = vector.broadcast %1082 : f32 to vector<16x8xf32>
    %1086 = arith.mulf %4, %1085 : vector<16x8xf32>
    %1087 = vector.broadcast %1084 : f32 to vector<16x8xf32>
    %1088 = arith.addf %1086, %1087 : vector<16x8xf32>
    %cst_175 = arith.constant 0.000000e+00 : f32
    %1089 = vector.broadcast %cst_175 : f32 to vector<16x8xf32>
    %1090 = arith.cmpf oge, %1088, %1089 : vector<16x8xf32>
    %cst_176 = arith.constant 0.00999999977 : f32
    %1091 = vector.broadcast %cst_176 : f32 to vector<16x8xf32>
    %1092 = arith.mulf %1091, %1088 : vector<16x8xf32>
    %1093 = arith.select %1090, %1088, %1092 : vector<16x8xi1>, vector<16x8xf32>
    %1094 = arith.mulf %600, %1093 : vector<16x8xf32>
    %cst_177 = arith.constant dense<0.000000e+00> : vector<16xf32>
    %1095 = vector.multi_reduction <add>, %1094, %cst_177 [1] : vector<16x8xf32> to vector<16xf32>
    %1096 = vector.shape_cast %1095 : vector<16xf32> to vector<16x1xf32>
    %1097 = arith.index_cast %arg0 : i32 to index
    %c63 = arith.constant 63 : index
    %1098 = memref.load %arg1[%1097, %c63] : memref<2x128xf32, #tpu.memory_space<smem>>
    %1099 = arith.index_cast %arg0 : i32 to index
    %c127 = arith.constant 127 : index
    %1100 = memref.load %arg1[%1099, %c127] : memref<2x128xf32, #tpu.memory_space<smem>>
    %1101 = vector.broadcast %1098 : f32 to vector<16x8xf32>
    %1102 = arith.mulf %4, %1101 : vector<16x8xf32>
    %1103 = vector.broadcast %1100 : f32 to vector<16x8xf32>
    %1104 = arith.addf %1102, %1103 : vector<16x8xf32>
    %cst_178 = arith.constant 0.000000e+00 : f32
    %1105 = vector.broadcast %cst_178 : f32 to vector<16x8xf32>
    %1106 = arith.cmpf oge, %1104, %1105 : vector<16x8xf32>
    %cst_179 = arith.constant 0.00999999977 : f32
    %1107 = vector.broadcast %cst_179 : f32 to vector<16x8xf32>
    %1108 = arith.mulf %1107, %1104 : vector<16x8xf32>
    %1109 = arith.select %1106, %1104, %1108 : vector<16x8xi1>, vector<16x8xf32>
    %1110 = arith.mulf %600, %1109 : vector<16x8xf32>
    %cst_180 = arith.constant dense<0.000000e+00> : vector<16xf32>
    %1111 = vector.multi_reduction <add>, %1110, %cst_180 [1] : vector<16x8xf32> to vector<16xf32>
    %1112 = vector.shape_cast %1111 : vector<16xf32> to vector<16x1xf32>
    %1113 = tpu.concatenate %616, %632, %648, %664, %680, %696, %712, %728, %744, %760, %776, %792, %808, %824, %840, %856 in 1 : vector<16x1xf32>, vector<16x1xf32>, vector<16x1xf32>, vector<16x1xf32>, vector<16x1xf32>, vector<16x1xf32>, vector<16x1xf32>, vector<16x1xf32>, vector<16x1xf32>, vector<16x1xf32>, vector<16x1xf32>, vector<16x1xf32>, vector<16x1xf32>, vector<16x1xf32>, vector<16x1xf32>, vector<16x1xf32> -> vector<16x16xf32>
    %1114 = tpu.concatenate %872, %888, %904, %920, %936, %952, %968, %984, %1000, %1016, %1032, %1048, %1064, %1080, %1096, %1112 in 1 : vector<16x1xf32>, vector<16x1xf32>, vector<16x1xf32>, vector<16x1xf32>, vector<16x1xf32>, vector<16x1xf32>, vector<16x1xf32>, vector<16x1xf32>, vector<16x1xf32>, vector<16x1xf32>, vector<16x1xf32>, vector<16x1xf32>, vector<16x1xf32>, vector<16x1xf32>, vector<16x1xf32>, vector<16x1xf32> -> vector<16x16xf32>
    %1115 = tpu.concatenate %1113, %1114 in 1 : vector<16x16xf32>, vector<16x16xf32> -> vector<16x32xf32>
    %1116 = arith.addf %12, %1115 : vector<16x32xf32>
    %1117 = arith.truncf %1116 : vector<16x32xf32> to vector<16x32xbf16>
    %c0_181 = arith.constant 0 : index
    %c0_182 = arith.constant 0 : index
    %c0_183 = arith.constant 0 : index
    %1118 = vector.load %arg5[%c0_181, %c0_182, %c0_183] : memref<1x32x32xbf16, #tpu.memory_space<vmem>>, vector<1x32x32xbf16>
    %1119 = vector.shape_cast %1118 : vector<1x32x32xbf16> to vector<32x32xbf16>
    %cst_184 = arith.constant dense<0.000000e+00> : vector<16x32xf32>
    %1120 = tpu.matmul %1117, %1119, %cst_184 {dimension_numbers = #tpu.dot_dimension_numbers<[1], [0], [0], [1], [0, 0, 1, 1], [], []>} : vector<16x32xbf16>, vector<32x32xbf16>, vector<16x32xf32> -> vector<16x32xf32>
    %c0_185 = arith.constant 0 : index
    %c0_186 = arith.constant 0 : index
    %c0_187 = arith.constant 0 : index
    %1121 = vector.load %arg6[%c0_185, %c0_186, %c0_187] : memref<1x1x32xf32, #tpu.memory_space<vmem>>, vector<1x1x32xf32>
    %1122 = vector.shape_cast %1121 : vector<1x1x32xf32> to vector<1x32xf32>
    %1123 = vector.broadcast %1122 : vector<1x32xf32> to vector<16x32xf32>
    %1124 = arith.addf %1120, %1123 : vector<16x32xf32>
    %1125 = arith.addf %3, %1124 : vector<16x32xf32>
    %c0_188 = arith.constant 0 : index
    %c0_189 = arith.constant 0 : index
    %c0_190 = arith.constant 0 : index
    %1126 = vector.load %arg7[%c0_188, %c0_189, %c0_190] : memref<1x1x32xf32, #tpu.memory_space<vmem>>, vector<1x1x32xf32>
    %1127 = vector.shape_cast %1126 : vector<1x1x32xf32> to vector<1x32xf32>
    %c0_191 = arith.constant 0 : index
    %c0_192 = arith.constant 0 : index
    %c0_193 = arith.constant 0 : index
    %1128 = vector.load %arg8[%c0_191, %c0_192, %c0_193] : memref<1x1x32xf32, #tpu.memory_space<vmem>>, vector<1x1x32xf32>
    %1129 = vector.shape_cast %1128 : vector<1x1x32xf32> to vector<1x32xf32>
    %cst_194 = arith.constant dense<0.000000e+00> : vector<32xf32>
    %1130 = vector.multi_reduction <add>, %1125, %cst_194 [0] : vector<16x32xf32> to vector<32xf32>
    %1131 = vector.shape_cast %1130 : vector<32xf32> to vector<1x32xf32>
    %cst_195 = arith.constant 1.600000e+01 : f32
    %1132 = vector.broadcast %cst_195 : f32 to vector<1x32xf32>
    %1133 = arith.divf %1131, %1132 : vector<1x32xf32>
    %1134 = vector.broadcast %1133 : vector<1x32xf32> to vector<16x32xf32>
    %1135 = arith.subf %1125, %1134 : vector<16x32xf32>
    %1136 = arith.mulf %1135, %1135 : vector<16x32xf32>
    %cst_196 = arith.constant dense<0.000000e+00> : vector<32xf32>
    %1137 = vector.multi_reduction <add>, %1136, %cst_196 [0] : vector<16x32xf32> to vector<32xf32>
    %1138 = vector.shape_cast %1137 : vector<32xf32> to vector<1x32xf32>
    %cst_197 = arith.constant 1.600000e+01 : f32
    %1139 = vector.broadcast %cst_197 : f32 to vector<1x32xf32>
    %1140 = arith.divf %1138, %1139 : vector<1x32xf32>
    %1141 = vector.broadcast %1133 : vector<1x32xf32> to vector<16x32xf32>
    %1142 = arith.subf %1125, %1141 : vector<16x32xf32>
    %1143 = vector.broadcast %1127 : vector<1x32xf32> to vector<16x32xf32>
    %1144 = arith.mulf %1143, %1142 : vector<16x32xf32>
    %cst_198 = arith.constant 9.99999974E-6 : f32
    %1145 = vector.broadcast %cst_198 : f32 to vector<1x32xf32>
    %1146 = arith.addf %1140, %1145 : vector<1x32xf32>
    %1147 = math.rsqrt %1146 : vector<1x32xf32>
    %1148 = vector.broadcast %1147 : vector<1x32xf32> to vector<16x32xf32>
    %1149 = arith.mulf %1144, %1148 : vector<16x32xf32>
    %1150 = vector.broadcast %1129 : vector<1x32xf32> to vector<16x32xf32>
    %1151 = arith.addf %1149, %1150 : vector<16x32xf32>
    %1152 = arith.truncf %1151 : vector<16x32xf32> to vector<16x32xbf16>
    %c0_199 = arith.constant 0 : index
    %c0_200 = arith.constant 0 : index
    %c0_201 = arith.constant 0 : index
    %1153 = vector.load %arg11[%c0_199, %c0_200, %c0_201] : memref<1x32x512xbf16, #tpu.memory_space<vmem>>, vector<1x32x512xbf16>
    %1154 = vector.shape_cast %1153 : vector<1x32x512xbf16> to vector<32x512xbf16>
    %cst_202 = arith.constant dense<0.000000e+00> : vector<16x512xf32>
    %1155 = tpu.matmul %1152, %1154, %cst_202 {dimension_numbers = #tpu.dot_dimension_numbers<[1], [0], [0], [1], [0, 0, 1, 1], [], []>} : vector<16x32xbf16>, vector<32x512xbf16>, vector<16x512xf32> -> vector<16x512xf32>
    %c0_203 = arith.constant 0 : index
    %c0_204 = arith.constant 0 : index
    %c0_205 = arith.constant 0 : index
    %1156 = vector.load %arg12[%c0_203, %c0_204, %c0_205] : memref<1x1x512xf32, #tpu.memory_space<vmem>>, vector<1x1x512xf32>
    %1157 = vector.shape_cast %1156 : vector<1x1x512xf32> to vector<1x512xf32>
    %1158 = vector.broadcast %1157 : vector<1x512xf32> to vector<16x512xf32>
    %1159 = arith.addf %1155, %1158 : vector<16x512xf32>
    %cst_206 = arith.constant 0.000000e+00 : f32
    %1160 = vector.broadcast %cst_206 : f32 to vector<16x512xf32>
    %1161 = arith.maximumf %1159, %1160 : vector<16x512xf32>
    %1162 = arith.truncf %1161 : vector<16x512xf32> to vector<16x512xbf16>
    %c0_207 = arith.constant 0 : index
    %c0_208 = arith.constant 0 : index
    %c0_209 = arith.constant 0 : index
    %1163 = vector.load %arg13[%c0_207, %c0_208, %c0_209] : memref<1x512x32xbf16, #tpu.memory_space<vmem>>, vector<1x512x32xbf16>
    %1164 = vector.shape_cast %1163 : vector<1x512x32xbf16> to vector<512x32xbf16>
    %cst_210 = arith.constant dense<0.000000e+00> : vector<16x32xf32>
    %1165 = tpu.matmul %1162, %1164, %cst_210 {dimension_numbers = #tpu.dot_dimension_numbers<[1], [0], [0], [1], [0, 0, 1, 1], [], []>} : vector<16x512xbf16>, vector<512x32xbf16>, vector<16x32xf32> -> vector<16x32xf32>
    %c0_211 = arith.constant 0 : index
    %c0_212 = arith.constant 0 : index
    %c0_213 = arith.constant 0 : index
    %1166 = vector.load %arg14[%c0_211, %c0_212, %c0_213] : memref<1x1x32xf32, #tpu.memory_space<vmem>>, vector<1x1x32xf32>
    %1167 = vector.shape_cast %1166 : vector<1x1x32xf32> to vector<1x32xf32>
    %1168 = vector.broadcast %1167 : vector<1x32xf32> to vector<16x32xf32>
    %1169 = arith.addf %1165, %1168 : vector<16x32xf32>
    %1170 = arith.addf %1151, %1169 : vector<16x32xf32>
    %c0_214 = arith.constant 0 : index
    %c0_215 = arith.constant 0 : index
    %c0_216 = arith.constant 0 : index
    %1171 = vector.load %arg9[%c0_214, %c0_215, %c0_216] : memref<1x1x32xf32, #tpu.memory_space<vmem>>, vector<1x1x32xf32>
    %1172 = vector.shape_cast %1171 : vector<1x1x32xf32> to vector<1x32xf32>
    %c0_217 = arith.constant 0 : index
    %c0_218 = arith.constant 0 : index
    %c0_219 = arith.constant 0 : index
    %1173 = vector.load %arg10[%c0_217, %c0_218, %c0_219] : memref<1x1x32xf32, #tpu.memory_space<vmem>>, vector<1x1x32xf32>
    %1174 = vector.shape_cast %1173 : vector<1x1x32xf32> to vector<1x32xf32>
    %cst_220 = arith.constant dense<0.000000e+00> : vector<32xf32>
    %1175 = vector.multi_reduction <add>, %1170, %cst_220 [0] : vector<16x32xf32> to vector<32xf32>
    %1176 = vector.shape_cast %1175 : vector<32xf32> to vector<1x32xf32>
    %cst_221 = arith.constant 1.600000e+01 : f32
    %1177 = vector.broadcast %cst_221 : f32 to vector<1x32xf32>
    %1178 = arith.divf %1176, %1177 : vector<1x32xf32>
    %1179 = vector.broadcast %1178 : vector<1x32xf32> to vector<16x32xf32>
    %1180 = arith.subf %1170, %1179 : vector<16x32xf32>
    %1181 = arith.mulf %1180, %1180 : vector<16x32xf32>
    %cst_222 = arith.constant dense<0.000000e+00> : vector<32xf32>
    %1182 = vector.multi_reduction <add>, %1181, %cst_222 [0] : vector<16x32xf32> to vector<32xf32>
    %1183 = vector.shape_cast %1182 : vector<32xf32> to vector<1x32xf32>
    %cst_223 = arith.constant 1.600000e+01 : f32
    %1184 = vector.broadcast %cst_223 : f32 to vector<1x32xf32>
    %1185 = arith.divf %1183, %1184 : vector<1x32xf32>
    %1186 = vector.broadcast %1178 : vector<1x32xf32> to vector<16x32xf32>
    %1187 = arith.subf %1170, %1186 : vector<16x32xf32>
    %1188 = vector.broadcast %1172 : vector<1x32xf32> to vector<16x32xf32>
    %1189 = arith.mulf %1188, %1187 : vector<16x32xf32>
    %cst_224 = arith.constant 9.99999974E-6 : f32
    %1190 = vector.broadcast %cst_224 : f32 to vector<1x32xf32>
    %1191 = arith.addf %1185, %1190 : vector<1x32xf32>
    %1192 = math.rsqrt %1191 : vector<1x32xf32>
    %1193 = vector.broadcast %1192 : vector<1x32xf32> to vector<16x32xf32>
    %1194 = arith.mulf %1189, %1193 : vector<16x32xf32>
    %1195 = vector.broadcast %1174 : vector<1x32xf32> to vector<16x32xf32>
    %1196 = arith.addf %1194, %1195 : vector<16x32xf32>
    %c0_225 = arith.constant 0 : index
    %c0_226 = arith.constant 0 : index
    %1197 = vector.load %arg17[%c0_225, %c0_226] : memref<16x32xf32, #tpu.memory_space<vmem>>, vector<16x32xf32>
    tpu.vector_store %arg17[%c0_225, %c0_226], %1196 {strides = array<i32>} : memref<16x32xf32, #tpu.memory_space<vmem>>, vector<16x32xf32>,
    %c1_i32 = arith.constant 1 : i32
    %1198 = arith.cmpi eq, %arg0, %c1_i32 : i32
    %1199 = arith.extui %1198 : i1 to i32
    %c0_i32_227 = arith.constant 0 : i32
    %1200 = arith.cmpi ne, %1199, %c0_i32_227 : i32
    scf.if %1200 {
      %c0_228 = arith.constant 0 : index
      %c0_229 = arith.constant 0 : index
      %1201 = vector.load %arg15[%c0_228, %c0_229] : memref<16x32xf32, #tpu.memory_space<vmem>>, vector<16x32xf32>
      tpu.vector_store %arg15[%c0_228, %c0_229], %1196 {strides = array<i32>} : memref<16x32xf32, #tpu.memory_space<vmem>>, vector<16x32xf32>,
      %1202 = vector.extract_strided_slice %1196 {offsets = [0, 0], sizes = [8, 32], strides = [1, 1]} : vector<16x32xf32> to vector<8x32xf32>
      %cst_230 = arith.constant dense<0.000000e+00> : vector<32xf32>
      %1203 = vector.multi_reduction <add>, %1202, %cst_230 [0] : vector<8x32xf32> to vector<32xf32>
      %1204 = vector.shape_cast %1203 : vector<32xf32> to vector<1x32xf32>
      %cst_231 = arith.constant 1.250000e-01 : f32
      %1205 = vector.broadcast %cst_231 : f32 to vector<1x32xf32>
      %1206 = arith.mulf %1204, %1205 : vector<1x32xf32>
      %c0_232 = arith.constant 0 : index
      %c0_233 = arith.constant 0 : index
      %1207 = vector.load %arg16[%c0_232, %c0_233] : memref<2x32xf32, #tpu.memory_space<vmem>>, vector<1x32xf32>
      tpu.vector_store %arg16[%c0_232, %c0_233], %1206 {strides = array<i32>} : memref<2x32xf32, #tpu.memory_space<vmem>>, vector<1x32xf32>,
      %1208 = vector.extract_strided_slice %1196 {offsets = [8, 0], sizes = [8, 32], strides = [1, 1]} : vector<16x32xf32> to vector<8x32xf32>
      %cst_234 = arith.constant dense<0.000000e+00> : vector<32xf32>
      %1209 = vector.multi_reduction <add>, %1208, %cst_234 [0] : vector<8x32xf32> to vector<32xf32>
      %1210 = vector.shape_cast %1209 : vector<32xf32> to vector<1x32xf32>
      %cst_235 = arith.constant 1.250000e-01 : f32
      %1211 = vector.broadcast %cst_235 : f32 to vector<1x32xf32>
      %1212 = arith.mulf %1210, %1211 : vector<1x32xf32>
      %c1_236 = arith.constant 1 : index
      %c0_237 = arith.constant 0 : index
      %1213 = vector.load %arg16[%c1_236, %c0_237] : memref<2x32xf32, #tpu.memory_space<vmem>>, vector<1x32xf32>
      tpu.vector_store %arg16[%c1_236, %c0_237], %1212 {strides = array<i32>} : memref<2x32xf32, #tpu.memory_space<vmem>>, vector<1x32xf32>,
    } else {
    }
    return
  }
  func.func @transform_0(%arg0: i32) -> (i32, i32) {
    %c0_i32 = arith.constant 0 : i32
    %c0_i32_0 = arith.constant 0 : i32
    %c0_i32_1 = arith.constant 0 : i32
    return %c0_i32, %c0_i32_0 : i32, i32
  }
  func.func @transform_1(%arg0: i32) -> (i32, i32) {
    %c0_i32 = arith.constant 0 : i32
    %c0_i32_0 = arith.constant 0 : i32
    %c0_i32_1 = arith.constant 0 : i32
    return %c0_i32, %c0_i32_0 : i32, i32
  }
  func.func @transform_2(%arg0: i32) -> (i32, i32) {
    %c0_i32 = arith.constant 0 : i32
    %c0_i32_0 = arith.constant 0 : i32
    %c0_i32_1 = arith.constant 0 : i32
    return %c0_i32, %c0_i32_0 : i32, i32
  }
  func.func @transform_3(%arg0: i32) -> (i32, i32, i32) {
    %c0_i32 = arith.constant 0 : i32
    %c0_i32_0 = arith.constant 0 : i32
    %c0_i32_1 = arith.constant 0 : i32
    return %arg0, %c0_i32, %c0_i32_0 : i32, i32, i32
  }
  func.func @transform_4(%arg0: i32) -> (i32, i32, i32) {
    %c0_i32 = arith.constant 0 : i32
    %c0_i32_0 = arith.constant 0 : i32
    %c0_i32_1 = arith.constant 0 : i32
    return %arg0, %c0_i32, %c0_i32_0 : i32, i32, i32
  }
  func.func @transform_5(%arg0: i32) -> (i32, i32, i32) {
    %c0_i32 = arith.constant 0 : i32
    %c0_i32_0 = arith.constant 0 : i32
    %c0_i32_1 = arith.constant 0 : i32
    return %arg0, %c0_i32, %c0_i32_0 : i32, i32, i32
  }
  func.func @transform_6(%arg0: i32) -> (i32, i32, i32) {
    %c0_i32 = arith.constant 0 : i32
    %c0_i32_0 = arith.constant 0 : i32
    %c0_i32_1 = arith.constant 0 : i32
    return %arg0, %c0_i32, %c0_i32_0 : i32, i32, i32
  }
  func.func @transform_7(%arg0: i32) -> (i32, i32, i32) {
    %c0_i32 = arith.constant 0 : i32
    %c0_i32_0 = arith.constant 0 : i32
    %c0_i32_1 = arith.constant 0 : i32
    return %arg0, %c0_i32, %c0_i32_0 : i32, i32, i32
  }
  func.func @transform_8(%arg0: i32) -> (i32, i32, i32) {
    %c0_i32 = arith.constant 0 : i32
    %c0_i32_0 = arith.constant 0 : i32
    %c0_i32_1 = arith.constant 0 : i32
    return %arg0, %c0_i32, %c0_i32_0 : i32, i32, i32
  }
  func.func @transform_9(%arg0: i32) -> (i32, i32, i32) {
    %c0_i32 = arith.constant 0 : i32
    %c0_i32_0 = arith.constant 0 : i32
    %c0_i32_1 = arith.constant 0 : i32
    return %arg0, %c0_i32, %c0_i32_0 : i32, i32, i32
  }
  func.func @transform_10(%arg0: i32) -> (i32, i32, i32) {
    %c0_i32 = arith.constant 0 : i32
    %c0_i32_0 = arith.constant 0 : i32
    %c0_i32_1 = arith.constant 0 : i32
    return %arg0, %c0_i32, %c0_i32_0 : i32, i32, i32
  }
  func.func @transform_11(%arg0: i32) -> (i32, i32, i32) {
    %c0_i32 = arith.constant 0 : i32
    %c0_i32_0 = arith.constant 0 : i32
    %c0_i32_1 = arith.constant 0 : i32
    return %arg0, %c0_i32, %c0_i32_0 : i32, i32, i32
  }
  func.func @transform_12(%arg0: i32) -> (i32, i32, i32) {
    %c0_i32 = arith.constant 0 : i32
    %c0_i32_0 = arith.constant 0 : i32
    %c0_i32_1 = arith.constant 0 : i32
    return %arg0, %c0_i32, %c0_i32_0 : i32, i32, i32
  }
  func.func @transform_13(%arg0: i32) -> (i32, i32, i32) {
    %c0_i32 = arith.constant 0 : i32
    %c0_i32_0 = arith.constant 0 : i32
    %c0_i32_1 = arith.constant 0 : i32
    return %arg0, %c0_i32, %c0_i32_0 : i32, i32, i32
  }
  func.func @transform_14(%arg0: i32) -> (i32, i32) {
    %c0_i32 = arith.constant 0 : i32
    %c0_i32_0 = arith.constant 0 : i32
    %c0_i32_1 = arith.constant 0 : i32
    return %c0_i32, %c0_i32_0 : i32, i32
  }
  func.func @transform_15(%arg0: i32) -> (i32, i32) {
    %c0_i32 = arith.constant 0 : i32
    %c0_i32_0 = arith.constant 0 : i32
    %c0_i32_1 = arith.constant 0 : i32
    return %c0_i32, %c0_i32_0 : i32, i32
  }
}

</mosaic_0001>

<bundles_post_ra>
// kernel: edge_weighted_graph_encoder.1
= control target key start
LH: loop header
LB: loop body
LE: loop exit
PB: predicated region body
PF: predicated region fallthrough
CT: control target
= control target key end

     0   :  { %s6132_s0 = inlined_call_operand.vmem [shape: f32[2,128], index: 0, kind: input, shape index: {}]   ;;  %s6133_s1 = inlined_call_operand.vmem [shape: f32[16,32], index: 1, kind: input, shape index: {}]   ;;  %s6134_s2 = inlined_call_operand.vmem [shape: f32[16,8], index: 2, kind: input, shape index: {}]   ;;  %s6135_s3 = inlined_call_operand.vmem [shape: bf16[2,32,64], index: 3, kind: input, shape index: {}]   ;;  %s6136_s4 = inlined_call_operand.vmem [shape: bf16[2,32,32], index: 4, kind: input, shape index: {}]   ;;  %s6137_s5 = inlined_call_operand.vmem [shape: f32[2,1,32], index: 5, kind: input, shape index: {}]   ;;  %s6138_s6 = inlined_call_operand.vmem [shape: f32[2,1,32], index: 6, kind: input, shape index: {}]   ;;  %s6139_s7 = inlined_call_operand.vmem [shape: f32[2,1,32], index: 7, kind: input, shape index: {}]   ;;  %s6140_s8 = inlined_call_operand.vmem [shape: f32[2,1,32], index: 8, kind: input, shape index: {}]   ;;  %s6141_s9 = inlined_call_operand.vmem [shape: f32[2,1,32], index: 9, kind: input, shape index: {}]   ;;  %s6142_s10 = inlined_call_operand.vmem [shape: bf16[2,32,512], index: 10, kind: input, shape index: {}]   ;;  %s6143_s11 = inlined_call_operand.vmem [shape: f32[2,1,512], index: 11, kind: input, shape index: {}]   ;;  %s6144_s12 = inlined_call_operand.vmem [shape: bf16[2,512,32], index: 12, kind: input, shape index: {}]   ;;  %s6145_s13 = inlined_call_operand.vmem [shape: f32[2,1,32], index: 13, kind: input, shape index: {}]   ;;  %s6146_s14 = inlined_call_operand.hbm [shape: f32[16,32], index: 14, kind: output, shape index: {0}]   ;;  %s6147_s15 = inlined_call_operand.hbm [shape: f32[2,32], index: 15, kind: output, shape index: {1}]  }
   0x1   :  { %6241 = sst [smem:[#allocation37_spill]] %s6132_s0 }
   0x2   :  { %6242 = sst [smem:[#allocation38_spill]] %s6133_s1 }
   0x3   :  { %6243 = sst [smem:[#allocation39_spill]] %s6134_s2 }
   0x4   :  { %6244 = sst [smem:[#allocation40_spill]] %s6135_s3 }
   0x5   :  { %6245 = sst [smem:[#allocation41_spill]] %s6136_s4 }
   0x6   :  { %6246 = sst [smem:[#allocation42_spill]] %s6137_s5 }
   0x7   :  { %6247 = sst [smem:[#allocation43_spill]] %s6138_s6 }
   0x8   :  { %6248 = sst [smem:[#allocation44_spill]] %s6139_s7 }
   0x9   :  { %6249 = sst [smem:[#allocation45_spill]] %s6140_s8 }
   0xa   :  { %6250 = sst [smem:[#allocation46_spill]] %s6141_s9 }
   0xb   :  { %6251 = sst [smem:[#allocation47_spill]] %s6142_s10 }
   0xc   :  { %6252 = sst [smem:[#allocation48_spill]] %s6143_s11 }
   0xd   :  { %6253 = sst [smem:[#allocation49_spill]] %s6144_s12 }
   0xe   :  { %6254 = sst [smem:[#allocation50_spill]] %s6145_s13 }
   0xf   :  { %6255 = sst [smem:[#allocation51_spill]] %s6146_s14 }
  0x10   :  { %6256 = sst [smem:[#allocation52_spill]] %s6147_s15 }
  0x11   :  { %21 = vsyncpa [#allocation5], 0 }
  0x12   :  { %22 = vsyncpa [#allocation4], 0 }
  0x13   :  { %23 = vsyncpa [#allocation8], 0  ;;  %s4064_s18 = smov 0  }
  0x14 LB: > { %6257 = sst [smem:[#allocation12_spill]] %s3940_s18  ;;  %s4070_s19 = sadd.s32 4294967295, %s3940_s18   ;;  %s3940_s18 = sphi %s4064_s18, %s29_s18  }
  0x15   : > { %6258 = sst [smem:[#allocation13_spill]] %s4070_s19  ;;  %p3480_p0 = scmp.ge.s32.totalorder %s3940_s18, 1 }
  0x16   : > { %p425_p1 = scmp.lt.s32.totalorder %s3940_s18, 3  ;;  %s6259_s0 = sld [smem:[#allocation37_spill]] }
  0x17   : > { %p3643_p4 = scmp.eq.s32.totalorder %s4070_s19, 0 }
  0x18   : > { %p4078_p3 = pnand %p3480_p0, %p425_p1 }
  0x1a   : > { %p3639_p5 = pneg %p4078_p3 }
  0x1c   : > { %s438_s22 = sshll.u32 %s6259_s0, 4  ;;  %p3640_p6 = pnand %p3643_p4, %p3639_p5  ;;  %s439_s22 = int_to_ptr.vmem [resolvable:$true] %s438_s22 }
  0x1d   : > { %s3855_s24 = scalar_lea.vmem %s439_s22, 32  ;;  %p3863_p11 = scmp.lt.s32.totalorder %s439_s22, %s439_s22 }
  0x1e   : > { %p3856_p7 = scmp.ne.s32.totalorder %s439_s22, %s3855_s24  ;;  %p3857_p8 = pneg %p3640_p6 }
  0x1f   : > { %p3864_p12 = scmp.lt.s32.totalorder %s3855_s24, %s3855_s24 }
  0x20   : > { %p3858_p9 = pnand %p3857_p8, %p3856_p7 }
  0x21   : > { %p3865_p13 = por %p3864_p12, %p3863_p11 }
  0x22   : > { %p3859_p10 = pneg %p3858_p9 }
  0x24   : > { %p3866_p2 = pnand %p3865_p13, %p3859_p10 }
  0x26   : > { %3869 = shalt.err (!%p3866_p2)
}
  0x27   : > { %s3942_s25 = smov [#allocation3]   ;;  %532 = sbr.rel (%p4078_p3) target bundleno = 2286 (0x8ee), region = 76 }
  0x28   : > { %3642 = dma.vmem_to_smem (!%p3640_p6), %s439_s22, 32, %s3942_s25, [#allocation5]  }
  0x2e   : > { %3927 = dma.done.wait (%p3643_p4), [#allocation5], 32  }
  0x2f   : > { %3929 = vsyncadd (%p3643_p4), [#allocation5], 4294967264 }
  0x30   : > { %538 = sfence }
  0x31   : > { %p613_p0 = scmp.lt.s32.totalorder %s4070_s19, 1  ;;  %s6263_s3 = sld [smem:[#allocation40_spill]] }
  0x32   : > { %s6264_s4 = sld [smem:[#allocation41_spill]]  ;;  %s6270_s10 = sld [smem:[#allocation47_spill]] }
  0x33   : > { %s4095_s26 = scalar_select %p613_p0, %s4070_s19, 1 }
  0x34   : > { %s6272_s11 = sld [smem:[#allocation48_spill]]  ;;  %s6275_s12 = sld [smem:[#allocation49_spill]] }
  0x35   : > { %6261 = sst [smem:[#allocation14_spill]] %s4095_s26  ;;  %s3557_s27 = sshll.u32 %s4095_s26, 4 }
  0x36   : > { %s3491_s21 = sshll.u32 %s4095_s26, 2  ;;  %s3560_s18 = sshll.u32 %s4095_s26, 8 }
  0x37   : > { %s617_s20 = scalar_lea.vmem %s6263_s3, %s3557_s27  ;;  %s3559_s3 = sshll.u32 %s4095_s26, 6 }
  0x38   : > { %s4108_s23 = scalar_lea.vmem %s6264_s4, %s3557_s27  ;;  %s4131_s4 = scalar_lea.vmem %s6270_s10, %s3559_s3 }
  0x39   : > { %6265 = sst [smem:[#allocation15_spill]] %s4108_s23  ;;  %p6277_p1 = scmp.ne.s32.totalorder %s4070_s19, 0 }
  0x3a   : > { %6271 = sst [smem:[#allocation16_spill]] %s4131_s4  ;;  %s4136_s15 = scalar_lea.vmem %s6272_s11, %s3491_s21  ;;  %vm662_vm0 = vcmask (!%p6277_p1), 261120  }
  0x3b   : > { %6273 = sst [smem:[#allocation17_spill]] %s4136_s15  ;;  %s4146_s16 = scalar_lea.vmem %s6275_s12, %s3560_s18 }
  0x3c   : > { %6276 = sst [smem:[#allocation18_spill]] %s4146_s16  ;;  %659 = sbr.rel (%p6277_p1) target bundleno = 69 (0x45), region = 84 }
  0x3d   : > { %s6278_s1 = sld [smem:[#allocation38_spill]] (!%p6277_p1) }
  0x43   : > { %v660_v0 = vld [vmem:[%s6278_s1] sm:$0xff]  ;;  %v661_v1 = vld [vmem:[%s6278_s1 + $0x8] sm:$0xff] }
  0x44   : > { %663 = vst.msk [vmem:[#allocation2] sm:$0xff] %vm662_vm0, %v660_v0  ;;  %664 = vst.msk [vmem:[#allocation2 + $0x8] sm:$0xff] %vm662_vm0, %v661_v1 }
  0x45 PF: > { %v3764_v2 = vld [vmem:[%s617_s20] sm:$0xff]   ;;  %v6157_v3 = vmov 0.0   ;;  %v3765_v4 = vld [vmem:[%s617_s20 + $0x8] sm:$0xff]   ;;  %vm3944_vm1 = vmmov 0   ;;  %vm6237_vm2 = vcmask 261120   ;;  %v3945_v8 = vmov 17  }
  0x46   : > { %3611 = vmatprep.subr.bf16.mxu0 %v6157_v3  ;;  %3619 = vmatprep.subr.bf16.mxu1 %v6157_v3  ;;  %v3946_v9 = vmov 16   ;;  %v6179_v10 = vmov 0   ;;  %v3948_v16 = vmov 19   ;;  %v3949_v17 = vmov 18   ;;  %s4201_s14 = sshll.u32 %s4070_s19, 7 }
  0x47   : > { %3612 = vmatpush3.bf16.msra.mxu0 %v3764_v2  ;;  %3615 = vmatprep.mubr.msk.bf16.mxu0 %vm3944_vm1, %v6157_v3  ;;  %v3950_v18 = vmov 20   ;;  %v3951_v19 = vmov 24   ;;  %v3952_v20 = vmov 25   ;;  %v3953_v21 = vmov 26   ;;  %s1228_s20 = sadd.s32 16, %s4201_s14  ;;  %s1230_s29 = sadd.s32 80, %s4201_s14 }
  0x48   : > { %3613 = vmatprep.subr.bf16.mxu0 %v6157_v3  ;;  %3623 = vmatprep.mubr.msk.bf16.mxu1 %vm3944_vm1, %v6157_v3  ;;  %v3954_v22 = vmov 21   ;;  %v3955_v23 = vmov 23   ;;  %v3956_v24 = vmov 22   ;;  %v3957_v25 = vmov 30   ;;  %s4211_s24 = sld [smem:[#allocation3 + %s1228_s20]]  ;;  %s1312_s18 = sadd.s32 19, %s4201_s14 }
  0x49   : > { %3700 = vset.pattern.permute.xlu1 %v3945_v8  ;;  %3699 = vset.pattern.permute.xlu0 %v3946_v9  ;;  %v3958_v26 = vmov 27   ;;  %v3959_v27 = vmov 1   ;;  %v3960_v28 = vmov 28   ;;  %v3961_v29 = vmov 4   ;;  %s4213_s25 = sld [smem:[#allocation3 + %s1230_s29]]  ;;  %s1314_s2 = sadd.s32 83, %s4201_s14 }
  0x4a   : > { %v3962_v30 = vmov 29   ;;  %v3963_v31 = vmov 5   ;;  %v3964_v32 = vmov 31   ;;  %v3965_v33 = vmov 11   ;;  %s4221_s30 = sld [smem:[#allocation3 + %s1312_s18]]  ;;  %s1502_s27 = sadd.s32 25, %s4201_s14 }
  0x4b   : > { %v665_v5 = vld [vmem:[#allocation2] sm:$0xff]  ;;  %v666_v6 = vld [vmem:[#allocation2 + $0x8] sm:$0xff]  ;;  %3614 = vmatpush3.bf16.msra.mxu0 %v3765_v4  ;;  %s4223_s3 = sld [smem:[#allocation3 + %s1314_s2]]  ;;  %v3966_v36 = vmov 13   ;;  %s1504_s29 = sadd.s32 89, %s4201_s14  ;;  %v3967_v42 = vmov 2  }
  0x4c   : > { %v669_v7 = vpack.c.bf16 %v666_v6, %v665_v5  ;;  %s6279_s20 = sld [smem:[#allocation39_spill]]  ;;  %s1396_s21 = sadd.s32 22, %s4201_s14  ;;  %v3968_v47 = vmov 3   ;;  %v3969_v52 = vmov 8   ;;  %v3970_v57 = vmov 9  }
  0x4d   : > { %s4241_s18 = sld [smem:[#allocation3 + %s1502_s27]]  ;;  %s1398_s27 = sadd.s32 86, %s4201_s14  ;;  %v3971_v62 = vmov 10   ;;  %v3972_v2 = vmov 6   ;;  %v3973_v4 = vmov 7   ;;  %v3974_v5 = vmov 12  }
  0x4e   : > { %3616 = vmatmul.mubr.msk.bf16.vlgmr.msra.gmra.mrb[0].mxu0 %vm6237_vm2, %v669_v7  ;;  %v1232_v35 = vstv %s4211_s24  ;;  %s4247_s2 = sld [smem:[#allocation3 + %s1504_s29]]  ;;  %s1586_s17 = sadd.s32 28, %s4201_s14  ;;  %v3975_v6 = vmov 14   ;;  %vm959_vm15 = vcmask 64512   ;;  %vm2526_vm2 = vcmask 113664  }
  0x4f   : > { %2809 = vmatprep.mubr.bf16.mxu0 %v6179_v10  ;;  %v1235_v38 = vstv %s4213_s25  ;;  %s4262_s22 = sld [smem:[#allocation3 + %s1396_s21]]  ;;  %s1588_s28 = sadd.s32 92, %s4201_s14 }
  0x50   : > { %v1316_v41 = vstv %s4221_s30  ;;  %s4268_s29 = sld [smem:[#allocation3 + %s1398_s27]]  ;;  %s1670_s0 = sadd.s32 31, %s4201_s14 }
  0x51   : > { %v1319_v44 = vstv %s4223_s3  ;;  %s4281_s21 = sld [smem:[#allocation3 + %s1586_s17]]  ;;  %s1672_s1 = sadd.s32 95, %s4201_s14 }
  0x52   : > { %v4229_v34 = vld [vmem:[%s6279_s20 + $0x8] sm:$0xff]  ;;  %s4287_s27 = sld [smem:[#allocation3 + %s1588_s28]]  ;;  %s1258_s11 = sadd.s32 81, %s4201_s14  ;;  %v4371_v7 = vld [vmem:[%s6279_s20] sm:$0xff] }
  0x53   : > { %v1234_v37 = vmul.f32 %v1232_v35, %v4229_v34  ;;  %v1318_v43 = vmul.f32 %v1316_v41, %v4229_v34  ;;  %v1506_v46 = vstv %s4241_s18  ;;  %s4299_s17 = sld [smem:[#allocation3 + %s1670_s0]]  ;;  %s1256_s0 = sadd.s32 17, %s4201_s14 }
  0x54   : > { %v1508_v48 = vmul.f32 %v1506_v46, %v4229_v34  ;;  %v1509_v49 = vstv %s4247_s2  ;;  %s4305_s28 = sld [smem:[#allocation3 + %s1672_s1]]  ;;  %s1284_s1 = sadd.s32 18, %s4201_s14 }
  0x55   : > { %v4245_v39 = vadd.f32 %v1235_v38, %v1234_v37  ;;  %v4266_v45 = vadd.f32 %v1319_v44, %v1318_v43  ;;  %v1400_v51 = vstv %s4262_s22  ;;  %s4354_s10 = sld [smem:[#allocation3 + %s1256_s0]]  ;;  %s1286_s19 = sadd.s32 82, %s4201_s14 }
  0x56   : > { %v4285_v50 = vadd.f32 %v1509_v49, %v1508_v48  ;;  %v1402_v53 = vmul.f32 %v1400_v51, %v4229_v34  ;;  %v1403_v54 = vstv %s4268_s29  ;;  %s4357_s12 = sld [smem:[#allocation3 + %s1284_s1]]  ;;  %s1340_s0 = sadd.s32 20, %s4201_s14 }
  0x57   : > { %v1590_v56 = vstv %s4281_s21  ;;  %s4362_s9 = sld [smem:[#allocation3 + %s1258_s11]]  ;;  %s1368_s11 = sadd.s32 21, %s4201_s14 }
  0x58   : > { %v4303_v55 = vadd.f32 %v1403_v54, %v1402_v53  ;;  %v1592_v58 = vmul.f32 %v1590_v56, %v4229_v34  ;;  %v1593_v59 = vstv %s4287_s27  ;;  %s4364_s8 = sld [smem:[#allocation3 + %s1286_s19]]  ;;  %s1342_s13 = sadd.s32 84, %s4201_s14 }
  0x59   : > { %v1674_v61 = vstv %s4299_s17  ;;  %s4377_s19 = sld [smem:[#allocation3 + %s1340_s0]]  ;;  %s1370_s0 = sadd.s32 85, %s4201_s14 }
  0x5a   : > { %v4318_v60 = vadd.f32 %v1593_v59, %v1592_v58  ;;  %v1676_v63 = vmul.f32 %v1674_v61, %v4229_v34  ;;  %v1677_v0 = vstv %s4305_s28  ;;  %s4387_s1 = sld [smem:[#allocation3 + %s1368_s11]]  ;;  %s1474_s24 = sadd.s32 24, %s4201_s14 }
  0x5b   : > { %s4396_s15 = sld [smem:[#allocation3 + %s1342_s13]]  ;;  %s1424_s11 = sadd.s32 23, %s4201_s14 }
  0x5c   : > { %v4330_v1 = vadd.f32 %v1677_v0, %v1676_v63  ;;  %s4404_s7 = sld [smem:[#allocation3 + %s1370_s0]]  ;;  %s1426_s0 = sadd.s32 87, %s4201_s14 }
  0x5d   : > { %s4413_s25 = sld [smem:[#allocation3 + %s1474_s24]]  ;;  %s1476_s30 = sadd.s32 88, %s4201_s14 }
  0x5e   : > { %s4415_s13 = sld [smem:[#allocation3 + %s1424_s11]]  ;;  %s1530_s6 = sadd.s32 26, %s4201_s14 }
  0x5f   : > { %s4428_s24 = sld [smem:[#allocation3 + %s1426_s0]]  ;;  %s1558_s11 = sadd.s32 27, %s4201_s14 }
  0x60   : > { %s4432_s3 = sld [smem:[#allocation3 + %s1476_s30]]  ;;  %s1532_s0 = sadd.s32 90, %s4201_s14 }
  0x61   : > { %v1347_v48 = vstv %s4396_s15  ;;  %s4434_s5 = sld [smem:[#allocation3 + %s1530_s6]]  ;;  %s1560_s6 = sadd.s32 91, %s4201_s14 }
  0x62   : > { %s4444_s26 = sld [smem:[#allocation3 + %s1558_s11]]  ;;  %s1614_s11 = sadd.s32 29, %s4201_s14 }
  0x63   : > { %s4449_s30 = sld [smem:[#allocation3 + %s1532_s0]]  ;;  %s1642_s0 = sadd.s32 30, %s4201_s14 }
  0x64   : > { %6280 = sst [smem:[#allocation19_spill]] %s4415_s13  ;;  %s1644_s29 = sadd.s32 94, %s4201_s14 }
  0x65   : > { %6281 = sst [smem:[#allocation20_spill]] %s4428_s24  ;;  %s763_s21 = sadd.s32 1, %s4201_s14 }
  0x66   : > { %s4470_s22 = sld [smem:[#allocation3 + %s1560_s6]]  ;;  %s1616_s6 = sadd.s32 93, %s4201_s14 }
  0x67   : > { %s4480_s18 = sld [smem:[#allocation3 + %s1614_s11]]  ;;  %s765_s27 = sadd.s32 65, %s4201_s14 }
  0x68   : > { %s4488_s16 = sld [smem:[#allocation3 + %s1642_s0]]  ;;  %s847_s17 = sadd.s32 4, %s4201_s14 }
  0x69   : > { %s4501_s2 = sld [smem:[#allocation3 + %s1616_s6]]  ;;  %s875_s0 = sadd.s32 5, %s4201_s14 }
  0x6a   : > { %s4506_s11 = sld [smem:[#allocation3 + %s1644_s29]]  ;;  %s1066_s29 = sadd.s32 11, %s4201_s14 }
  0x6b   : > { %s4584_s28 = sld [smem:[#allocation3 + %s763_s21]]  ;;  %s849_s23 = sadd.s32 68, %s4201_s14 }
  0x6c   : > { %6282 = sst [smem:[#allocation21_spill]] %s4470_s22  ;;  %s877_s21 = sadd.s32 69, %s4201_s14 }
  0x6d   : > { %6283 = sst [smem:[#allocation22_spill]] %s4480_s18 }
  0x6e   : > { %6284 = sst [smem:[#allocation23_spill]] %s4488_s16 }
  0x6f   : > { %6285 = sst [smem:[#allocation24_spill]] %s4501_s2 }
  0x70   : > { %6286 = sst [smem:[#allocation25_spill]] %s4506_s11 }
  0x71   : > { %6287 = sst [smem:[#allocation26_spill]] %s4584_s28 }
  0x72   : > { %s4587_s6 = sld [smem:[#allocation3 + %s765_s27]] }
  0x73   : > { %s4591_s4 = sld [smem:[#allocation3 + %s847_s17]] }
  0x74   : > { %s4600_s27 = sld [smem:[#allocation3 + %s1066_s29]] }
  0x75   : > { %s4605_s17 = sld [smem:[#allocation3 + %s849_s23]]  ;;  %s735_s23 = sadd.s32 64, %s4201_s14 }
  0x76   : > { %s4615_s29 = sld [smem:[#allocation3 + %s4201_s14]] }
  0x78   : > { %6288 = sst [smem:[#allocation27_spill]] %s4587_s6 }
  0x79   : > { %6289 = sst [smem:[#allocation28_spill]] %s4591_s4 }
  0x7a   : > { %6291 = sst [smem:[#allocation30_spill]] %s4600_s27 }
 0x121   : > { %v4165_v11 = vpop.f32.mrb[0].mxu0 }
 0x122   : > { %v4168_v12 = vmul.f32 0.35355338, %v4165_v11  ;;  %v3617_v13 = vpop.f32.mrb[1].mxu0 }
 0x123   : > { %v4170_v14 = vpop.f32.mrb[2].mxu0 }
 0x124   : > { %1273 = vperm.xlu1 %3700, %v4168_v12   ;;  %1245 = vperm.xlu0 %3699, %v4168_v12   ;;  %v3618_v15 = vpop.f32.mrb[3].mxu0  ;;  %v4251_v40 = vmul.f32 0.35355338, %v4170_v14 }
 0x125   : > { %v1233_v15 = vmul.f32 %v1232_v35, %v4371_v7 }
 0x128   : > { %3702 = vset.pattern.permute.xlu1 %v3948_v16  ;;  %3701 = vset.pattern.permute.xlu0 %v3949_v17 }
 0x129   : > { %1329 = vperm.xlu1 %3702, %v4168_v12   ;;  %1301 = vperm.xlu0 %3701, %v4168_v12  }
 0x12d   : > { %3703 = vset.pattern.permute.xlu1 %v3950_v18  ;;  %3704 = vset.pattern.permute.xlu0 %v3951_v19 }
 0x12e   : > { %1357 = vperm.xlu1 %3703, %v4168_v12   ;;  %1491 = vperm.xlu0 %3704, %v4168_v12  }
 0x132   : > { %3705 = vset.pattern.permute.xlu1 %v3952_v20  ;;  %3707 = vset.pattern.permute.xlu0 %v3953_v21 }
 0x133   : > { %1519 = vperm.xlu1 %3705, %v4168_v12   ;;  %1547 = vperm.xlu0 %3707, %v4168_v12  }
 0x137   : > { %3706 = vset.pattern.permute.xlu1 %v3954_v22  ;;  %3710 = vset.pattern.permute.xlu0 %v3955_v23 }
 0x138   : > { %1385 = vperm.xlu1 %3706, %v4168_v12   ;;  %1441 = vperm.xlu0 %3710, %v4168_v12  }
 0x13c   : > { %3708 = vset.pattern.permute.xlu1 %v3956_v24  ;;  %3713 = vset.pattern.permute.xlu0 %v3957_v25 }
 0x13d   : > { %1413 = vperm.xlu1 %3708, %v4168_v12   ;;  %1659 = vperm.xlu0 %3713, %v4168_v12  }
 0x141   : > { %3709 = vset.pattern.permute.xlu1 %v3958_v26  ;;  %3716 = vset.pattern.permute.xlu0 %v3959_v27 }
 0x142   : > { %1575 = vperm.xlu1 %3709, %v4168_v12   ;;  %780 = vperm.xlu0 %3716, %v4168_v12  }
 0x146   : > { %3711 = vset.pattern.permute.xlu1 %v3960_v28  ;;  %3719 = vset.pattern.permute.xlu0 %v3961_v29 }
 0x147   : > { %1603 = vperm.xlu1 %3711, %v4168_v12   ;;  %864 = vperm.xlu0 %3719, %v4168_v12  }
 0x14b   : > { %3712 = vset.pattern.permute.xlu1 %v3962_v30  ;;  %3722 = vset.pattern.permute.xlu0 %v3963_v31 }
 0x14c   : > { %1631 = vperm.xlu1 %3712, %v4168_v12   ;;  %892 = vperm.xlu0 %3722, %v4168_v12  }
 0x150   : > { %3714 = vset.pattern.permute.xlu1 %v3964_v32  ;;  %3725 = vset.pattern.permute.xlu0 %v3965_v33 }
 0x151   : > { %1687 = vperm.xlu1 %3714, %v4168_v12   ;;  %1083 = vperm.xlu0 %3725, %v4168_v12  }
 0x155   : > { %3715 = vset.pattern.permute.xlu1 %v6179_v10  ;;  %3728 = vset.pattern.permute.xlu0 %v3966_v36 }
 0x156   : > { %751 = vperm.xlu1 %3715, %v4168_v12   ;;  %1139 = vperm.xlu0 %3728, %v4168_v12  }
 0x15a   : > { %3717 = vset.pattern.permute.xlu1 %v3967_v42  ;;  %3730 = vset.pattern.permute.xlu0 %v3946_v9  ;;  %v1288_v9 = vstv %s4357_s12  ;;  %s1012_s12 = sadd.s32 73, %s4201_s14 }
 0x15b   : > { %808 = vperm.xlu1 %3717, %v4168_v12   ;;  %1249 = vperm.xlu0 %3730, %v4251_v40  }
 0x15f   : > { %3718 = vset.pattern.permute.xlu1 %v3968_v47  ;;  %3733 = vset.pattern.permute.xlu0 %v3948_v16  ;;  %v1263_v16 = vstv %s4362_s9 }
 0x160   : > { %836 = vperm.xlu1 %3718, %v4168_v12   ;;  %1333 = vperm.xlu0 %3733, %v4251_v40  }
 0x164   : > { %3720 = vset.pattern.permute.xlu1 %v3969_v52  ;;  %3736 = vset.pattern.permute.xlu0 %v3952_v20  ;;  %v1236_v20 = vadd.f32 %v1235_v38, %v1233_v15  ;;  %v1372_v38 = vstv %s4387_s1 }
 0x165   : > { %999 = vperm.xlu1 %3720, %v4168_v12   ;;  %1523 = vperm.xlu0 %3736, %v4251_v40  }
 0x166   : > { %v1240_v37 = vmul.f32 0.01, %v1236_v20  ;;  %vm1238_vm4 = vcmp.ge.f32.partialorder %v1236_v20, 0.0 }
 0x168   : > { %v1242_v53 = vsel %vm1238_vm4, %v1236_v20, %v1240_v37  ;;  %v1507_v37 = vmul.f32 %v1506_v46, %v4371_v7  ;;  %v6162_v46 = vstv %s4434_s5 }
 0x169   : > { %3721 = vset.pattern.permute.xlu1 %v3970_v57  ;;  %3739 = vset.pattern.permute.xlu0 %v3956_v24  ;;  %v1317_v24 = vmul.f32 %v1316_v41, %v4371_v7 }
 0x16a   : > { %1027 = vperm.xlu1 %3721, %v4168_v12   ;;  %1417 = vperm.xlu0 %3739, %v4251_v40  }
 0x16e   : > { %3723 = vset.pattern.permute.xlu1 %v3971_v62  ;;  %3742 = vset.pattern.permute.xlu0 %v3960_v28 }
 0x16f   : > { %1055 = vperm.xlu1 %3723, %v4168_v12   ;;  %1607 = vperm.xlu0 %3742, %v4251_v40  }
 0x173   : > { %3724 = vset.pattern.permute.xlu1 %v3972_v2  ;;  %3746 = vset.pattern.permute.xlu0 %v3964_v32 }
 0x174   : > { %920 = vperm.xlu1 %3724, %v4168_v12   ;;  %1691 = vperm.xlu0 %3746, %v4251_v40  }
 0x178   : > { %3726 = vset.pattern.permute.xlu1 %v3973_v4  ;;  %3749 = vset.pattern.permute.xlu0 %v3967_v42 }
 0x179   : > { %948 = vperm.xlu1 %3726, %v4168_v12   ;;  %812 = vperm.xlu0 %3749, %v4251_v40  }
 0x17d   : > { %3727 = vset.pattern.permute.xlu1 %v3974_v5  ;;  %3752 = vset.pattern.permute.xlu0 %v3969_v52 }
 0x17e   : > { %1111 = vperm.xlu1 %3727, %v4168_v12   ;;  %1003 = vperm.xlu0 %3752, %v4251_v40  }
 0x182   : > { %3729 = vset.pattern.permute.xlu1 %v3975_v6  ;;  %3755 = vset.pattern.permute.xlu0 %v3971_v62  ;;  %v6163_v62 = vstv %s4404_s7 }
 0x183   : > { %1167 = vperm.xlu1 %3729, %v4168_v12   ;;  %1059 = vperm.xlu0 %3755, %v4251_v40  }
 0x187   : > { %3731 = vset.pattern.permute.xlu1 %v3945_v8  ;;  %3758 = vset.pattern.permute.xlu0 %v3973_v4  ;;  %v1260_v8 = vstv %s4354_s10  ;;  %s984_s10 = sadd.s32 72, %s4201_s14 }
 0x188   : > { %1277 = vperm.xlu1 %3731, %v4251_v40   ;;  %952 = vperm.xlu0 %3758, %v4251_v40   ;;  %v1261_v13 = vmul.f32 %v1260_v8, %v4371_v7  ;;  %s4700_s9 = sld [smem:[#allocation3 + %s984_s10]] }
 0x189   : > { %s4724_s10 = sld [smem:[#allocation3 + %s1012_s12]] }
 0x18c   : > { %3732 = vset.pattern.permute.xlu1 %v3949_v17  ;;  %3761 = vset.pattern.permute.xlu0 %v3975_v6  ;;  %v1289_v17 = vmul.f32 %v1288_v9, %v4371_v7 }
 0x18d   : > { %1305 = vperm.xlu1 %3732, %v4251_v40   ;;  %1171 = vperm.xlu0 %3761, %v4251_v40  }
 0x191   : > { %3734 = vset.pattern.permute.xlu1 %v3950_v18  ;;  %3763 = vset.pattern.permute.xlu0 %v3964_v32  ;;  %v1291_v18 = vstv %s4364_s8  ;;  %v1344_v32 = vstv %s4377_s19 }
 0x192   : > { %1361 = vperm.xlu1 %3734, %v4251_v40   ;;  %v1292_v28 = vadd.f32 %v1291_v18, %v1289_v17  ;;  %v1345_v43 = vmul.f32 %v1344_v32, %v4371_v7  ;;  %v6164_v17 = vstv %s4413_s25 }
 0x194   : > { %v1296_v42 = vmul.f32 0.01, %v1292_v28  ;;  %vm1294_vm5 = vcmp.ge.f32.partialorder %v1292_v28, 0.0  ;;  %v1348_v6 = vadd.f32 %v1347_v48, %v1345_v43  ;;  %v6158_v43 = vstv %s4428_s24  ;;  %s4633_s24 = sld [smem:[#allocation3 + %s735_s23]]  ;;  %s982_s23 = sadd.s32 8, %s4201_s14 }
 0x196   : > { %3735 = vset.pattern.permute.xlu1 %v3951_v19  ;;  %v1264_v19 = vadd.f32 %v1263_v16, %v1261_v13  ;;  %v1298_v4 = vsel %vm1294_vm5, %v1292_v28, %v1296_v42  ;;  %vm1350_vm7 = vcmp.ge.f32.partialorder %v1348_v6, 0.0 }
 0x197   : > { %1495 = vperm.xlu1 %3735, %v4251_v40  }
 0x198   : > { %v1268_v35 = vmul.f32 0.01, %v1264_v19  ;;  %vm1266_vm3 = vcmp.ge.f32.partialorder %v1264_v19, 0.0 }
 0x19a   : > { %v1270_v52 = vsel %vm1266_vm3, %v1264_v19, %v1268_v35  ;;  %v6159_v19 = vstv %s4415_s13  ;;  %s1124_s13 = sadd.s32 77, %s4201_s14 }
 0x19b   : > { %3737 = vset.pattern.permute.xlu1 %v3954_v22 }
 0x19c   : > { %1389 = vperm.xlu1 %3737, %v4251_v40  }
 0x1a0   : > { %3738 = vset.pattern.permute.xlu1 %v3953_v21 }
 0x1a1   : > { %1551 = vperm.xlu1 %3738, %v4251_v40  }
 0x1a3   : > { %v1274_v22 = vpop.permute.xlu1 %1273  ;;  %v1246_v21 = vpop.permute.xlu0 %1245 }
 0x1a4   : > { %v1252_v13 = vmul.f32 %v1246_v21, %v1242_v53  ;;  %v1479_v21 = vmul.f32 %v6164_v17, %v4371_v7 }
 0x1a5   : > { %3740 = vset.pattern.permute.xlu1 %v3958_v26  ;;  %v1320_v26 = vadd.f32 %v1319_v44, %v1317_v24  ;;  %v1373_v44 = vmul.f32 %v1372_v38, %v4371_v7  ;;  %v1401_v24 = vmul.f32 %v1400_v51, %v4371_v7  ;;  %v1429_v51 = vmul.f32 %v6159_v19, %v4371_v7 }
 0x1a6   : > { %1579 = vperm.xlu1 %3740, %v4251_v40  }
 0x1a7   : > { %v1324_v63 = vmul.f32 0.01, %v1320_v26  ;;  %vm1322_vm6 = vcmp.ge.f32.partialorder %v1320_v26, 0.0  ;;  %v1376_v20 = vadd.f32 %v6163_v62, %v1373_v44  ;;  %v1404_v44 = vadd.f32 %v1403_v54, %v1401_v24 }
 0x1a8   : > { %v1330_v41 = vpop.permute.xlu1 %1329  ;;  %v1302_v58 = vpop.permute.xlu0 %1301  ;;  %v1535_v24 = vmul.f32 %v6162_v46, %v4371_v7 }
 0x1a9   : > { %v1308_v28 = vmul.f32 %v1302_v58, %v1298_v4  ;;  %v1326_v42 = vsel %vm1322_vm6, %v1320_v26, %v1324_v63  ;;  %v1380_v58 = vmul.f32 0.01, %v1376_v20  ;;  %vm1378_vm8 = vcmp.ge.f32.partialorder %v1376_v20, 0.0 }
 0x1aa   : > { %3741 = vset.pattern.permute.xlu1 %v3955_v23  ;;  %v1280_v23 = vmul.f32 %v1274_v22, %v1270_v52  ;;  %v1352_v22 = vmul.f32 0.01, %v1348_v6  ;;  %v6161_v52 = vstv %s4432_s3  ;;  %v1510_v63 = vadd.f32 %v1509_v49, %v1507_v37 }
 0x1ab   : > { %1445 = vperm.xlu1 %3741, %v4251_v40   ;;  %v1336_v3 = vmul.f32 %v1330_v41, %v1326_v42  ;;  %v1482_v54 = vadd.f32 %v6161_v52, %v1479_v21  ;;  %vm1406_vm9 = vcmp.ge.f32.partialorder %v1404_v44, 0.0  ;;  %v1565_v42 = vstv %s4470_s22 }
 0x1ac   : > { %v1354_v26 = vsel %vm1350_vm7, %v1348_v6, %v1352_v22  ;;  %v1537_v6 = vstv %s4449_s30  ;;  %vm1512_vm10 = vcmp.ge.f32.partialorder %v1510_v63, 0.0  ;;  %s6300_s30 = sld [smem:[#allocation19_spill]] }
 0x1ad   : > { %v1358_v15 = vpop.permute.xlu1 %1357  ;;  %v4461_v35 = vpop.permute.xlu0 %1491  ;;  %vm1484_vm12 = vcmp.ge.f32.partialorder %v1482_v54, 0.0 }
 0x1ae   : > { %v1364_v41 = vmul.f32 %v1358_v15, %v1354_v26  ;;  %v1486_v15 = vmul.f32 0.01, %v1482_v54 }
 0x1af   : > { %3743 = vset.pattern.permute.xlu1 %v3962_v30  ;;  %v1282_v30 = vadd.f32 %v1280_v23, %v1252_v13  ;;  %v1432_v23 = vadd.f32 %v6158_v43, %v1429_v51  ;;  %v6160_v13 = vstv %s4444_s26  ;;  %v1514_v51 = vmul.f32 0.01, %v1510_v63 }
 0x1b0   : > { %1635 = vperm.xlu1 %3743, %v4251_v40   ;;  %v1563_v21 = vmul.f32 %v6160_v13, %v4371_v7  ;;  %v1618_v43 = vstv %s4480_s18  ;;  %s1122_s18 = sadd.s32 13, %s4201_s14 }
 0x1b1   : > { %v1310_v4 = vadd.f32 %v1308_v28, %v1282_v30  ;;  %v1408_v28 = vmul.f32 0.01, %v1404_v44  ;;  %v1436_v30 = vmul.f32 0.01, %v1432_v23  ;;  %vm1434_vm11 = vcmp.ge.f32.partialorder %v1432_v23, 0.0 }
 0x1b2   : > { %v4475_v53 = vpop.permute.xlu1 %1519  ;;  %v4499_v49 = vpop.permute.xlu0 %1547 }
 0x1b3   : > { %v1338_v22 = vadd.f32 %v1336_v3, %v1310_v4  ;;  %v1591_v3 = vmul.f32 %v1590_v56, %v4371_v7  ;;  %v1538_v4 = vadd.f32 %v1537_v6, %v1535_v24  ;;  %v1410_v26 = vsel %vm1406_vm9, %v1404_v44, %v1408_v28 }
 0x1b4   : > { %3744 = vset.pattern.permute.xlu1 %v3957_v25  ;;  %v1382_v25 = vsel %vm1378_vm8, %v1376_v20, %v1380_v58  ;;  %v3976_v58 = vmov 15   ;;  %v1438_v13 = vsel %vm1434_vm11, %v1432_v23, %v1436_v30  ;;  %v6206_v56 = vstv %s4488_s16  ;;  %s1068_s16 = sadd.s32 75, %s4201_s14 }
 0x1b5   : > { %1663 = vperm.xlu1 %3744, %v4251_v40   ;;  %v1366_v19 = vadd.f32 %v1364_v41, %v1338_v22  ;;  %v1594_v24 = vadd.f32 %v1593_v59, %v1591_v3  ;;  %v1488_v44 = vsel %vm1484_vm12, %v1482_v54, %v1486_v15  ;;  %vm1540_vm13 = vcmp.ge.f32.partialorder %v1538_v4, 0.0 }
 0x1b6   : > { %v1542_v28 = vmul.f32 0.01, %v1538_v4  ;;  %v6197_v41 = vstv %s4506_s11  ;;  %s4595_s11 = sld [smem:[#allocation3 + %s875_s0]]  ;;  %vm1239_vm11 = vcmp.ge.f32.partialorder %v4245_v39, 0.0 }
 0x1b7   : > { %v1386_v37 = vpop.permute.xlu1 %1385  ;;  %v1442_v52 = vpop.permute.xlu0 %1441  ;;  %vm1596_vm0 = vcmp.ge.f32.partialorder %v1594_v24, 0.0  ;;  %s4608_s0 = sld [smem:[#allocation3 + %s877_s21]] }
 0x1b8   : > { %v1392_v20 = vmul.f32 %v1386_v37, %v1382_v25  ;;  %v1566_v25 = vadd.f32 %v1565_v42, %v1563_v21  ;;  %v1516_v37 = vsel %vm1512_vm10, %v1510_v63, %v1514_v51  ;;  %v6210_v63 = vstv %s4501_s2  ;;  %s4610_s2 = sld [smem:[#allocation3 + %s1068_s16]]  ;;  %s791_s16 = sadd.s32 2, %s4201_s14 }
 0x1b9   : > { %3745 = vset.pattern.permute.xlu1 %v3976_v58  ;;  %v1448_v23 = vmul.f32 %v1442_v52, %v1438_v13  ;;  %v1598_v51 = vmul.f32 0.01, %v1594_v24  ;;  %v1544_v52 = vsel %vm1540_vm13, %v1538_v4, %v1542_v28  ;;  %s4629_s21 = sld [smem:[#allocation3 + %s1122_s18]]  ;;  %s819_s18 = sadd.s32 3, %s4201_s14  ;;  %vm1323_vm13 = vcmp.ge.f32.partialorder %v4266_v45, 0.0 }
 0x1ba   : > { %1195 = vperm.xlu1 %3745, %v4168_v12   ;;  %v1394_v62 = vadd.f32 %v1392_v20, %v1366_v19  ;;  %v1619_v12 = vmul.f32 %v1618_v43, %v4371_v7  ;;  %v1647_v19 = vmul.f32 %v6206_v56, %v4371_v7  ;;  %v1570_v59 = vmul.f32 0.01, %v1566_v25  ;;  %s4639_s22 = sld [smem:[#allocation3 + %s791_s16]] }
 0x1bb   : > { %vm1568_vm14 = vcmp.ge.f32.partialorder %v1566_v25, 0.0  ;;  %s4660_s16 = sld [smem:[#allocation3 + %s1124_s13]]  ;;  %s1010_s13 = sadd.s32 9, %s4201_s14 }
 0x1bc   : > { %v1414_v46 = vpop.permute.xlu1 %1413  ;;  %v1622_v30 = vadd.f32 %v6210_v63, %v1619_v12  ;;  %v1572_v13 = vsel %vm1568_vm14, %v1566_v25, %v1570_v59  ;;  %6290 = sst [smem:[#allocation29_spill]] %s4595_s11 }
 0x1bd   : > { %v1420_v17 = vmul.f32 %v1414_v46, %v1410_v26  ;;  %v1526_v46 = vmul.f32 %v4475_v53, %v1516_v37  ;;  %v1650_v53 = vadd.f32 %v6197_v41, %v1647_v19  ;;  %v1554_v26 = vmul.f32 %v4499_v49, %v1544_v52 }
 0x1be   : > { %3747 = vset.pattern.permute.xlu1 %v6179_v10  ;;  %v1626_v15 = vmul.f32 0.01, %v1622_v30  ;;  %vm1624_vm1 = vcmp.ge.f32.partialorder %v1622_v30, 0.0  ;;  %v6203_v41 = vstv %s4724_s10 }
 0x1bf   : > { %v1422_v22 = vadd.f32 %v1420_v17, %v1394_v62  ;;  %756 = vperm.xlu1 %3747, %v4251_v40   ;;  %v1498_v62 = vmul.f32 %v4461_v35, %v1488_v44  ;;  %v1675_v17 = vmul.f32 %v1674_v61, %v4371_v7  ;;  %v1600_v35 = vsel %vm1596_vm0, %v1594_v24, %v1598_v51  ;;  %6292 = sst [smem:[#allocation31_spill]] %s4629_s21 }
 0x1c0   : > { %v1654_v12 = vmul.f32 0.01, %v1650_v53  ;;  %vm1652_vm3 = vcmp.ge.f32.partialorder %v1650_v53, 0.0  ;;  %v1628_v44 = vsel %vm1624_vm1, %v1622_v30, %v1626_v15  ;;  %v6181_v15 = vstv %s4600_s27  ;;  %s4669_s27 = sld [smem:[#allocation3 + %s819_s18]] }
 0x1c1   : > { %v1576_v54 = vpop.permute.xlu1 %1575  ;;  %v4533_v21 = vadd.f32 %v1448_v23, %v1422_v22  ;;  %v1528_v3 = vadd.f32 %v1526_v46, %v1498_v62  ;;  %v1678_v4 = vadd.f32 %v1677_v0, %v1675_v17  ;;  %v1660_v22 = vpop.permute.xlu0 %1659  ;;  %6293 = sst [smem:[#allocation32_spill]] %s4660_s16 }
 0x1c2   : > { %v1582_v37 = vmul.f32 %v1576_v54, %v1572_v13  ;;  %v1656_v24 = vsel %vm1652_vm3, %v1650_v53, %v1654_v12  ;;  %vm1513_vm3 = vcmp.ge.f32.partialorder %v4285_v50, 0.0 }
 0x1c3   : > { %3748 = vset.pattern.permute.xlu1 %v3959_v27  ;;  %v1452_v20 = vsel %vm959_vm15, %v4533_v21, -inf  ;;  %v1556_v25 = vadd.f32 %v1554_v26, %v1528_v3  ;;  %v1682_v23 = vmul.f32 0.01, %v1678_v4  ;;  %vm1680_vm4 = vcmp.ge.f32.partialorder %v1678_v4, 0.0 }
 0x1c4   : > { %784 = vperm.xlu1 %3748, %v4251_v40   ;;  %1453 = vmax.xlane.f32.xlu0 %v1452_v20  ;;  %v1666_v0 = vmul.f32 %v1660_v22, %v1656_v24  ;;  %v6185_v3 = vstv %s4595_s11  ;;  %v1262_v24 = vmul.f32 %v1260_v8, %v4229_v34 }
 0x1c5   : > { %v1584_v28 = vadd.f32 %v1582_v37, %v1556_v25  ;;  %v1684_v54 = vsel %vm1680_vm4, %v1678_v4, %v1682_v23  ;;  %v6184_v37 = vstv %s4605_s17  ;;  %v6183_v25 = vstv %s4608_s0 }
 0x1c6   : > { %v1604_v61 = vpop.permute.xlu1 %1603  ;;  %v6195_v23 = vstv %s4615_s29 }
 0x1c7   : > { %v1610_v27 = vmul.f32 %v1604_v61, %v1600_v35  ;;  %v6194_v35 = vstv %s4587_s6  ;;  %v880_v61 = vmul.f32 %v6185_v3, %v4371_v7  ;;  %s4674_s6 = sld [smem:[#allocation3 + %s982_s23]] }
 0x1c8   : > { %3750 = vset.pattern.permute.xlu1 %v3968_v47  ;;  %s4696_s23 = sld [smem:[#allocation3 + %s1010_s13]]  ;;  %s1040_s13 = sadd.s32 74, %s4201_s14 }
 0x1c9   : > { %840 = vperm.xlu1 %3750, %v4251_v40   ;;  %v1612_v49 = vadd.f32 %v1610_v27, %v1584_v28  ;;  %v1071_v27 = vmul.f32 %v6181_v15, %v4371_v7  ;;  %s4734_s8 = sld [smem:[#allocation3 + %s1040_s13]]  ;;  %s905_s13 = sadd.s32 70, %s4201_s14 }
 0x1ca   : > { %s4783_s19 = sld [smem:[#allocation3 + %s905_s13]]  ;;  %s933_s13 = sadd.s32 71, %s4201_s14 }
 0x1cb   : > { %v1632_v19 = vpop.permute.xlu1 %1631  ;;  %s4807_s1 = sld [smem:[#allocation3 + %s933_s13]]  ;;  %s1152_s13 = sadd.s32 78, %s4201_s14 }
 0x1cc   : > { %v1638_v59 = vmul.f32 %v1632_v19, %v1628_v44  ;;  %v6180_v44 = vstv %s4610_s2  ;;  %v883_v19 = vadd.f32 %v6183_v25, %v880_v61  ;;  %v6191_v25 = vstv %s4669_s27 }
 0x1cd   : > { %3751 = vset.pattern.permute.xlu1 %v3961_v29 }
 0x1ce   : > { %v1640_v46 = vadd.f32 %v1638_v59, %v1612_v49  ;;  %868 = vperm.xlu1 %3751, %v4251_v40   ;;  %v1074_v49 = vadd.f32 %v6180_v44, %v1071_v27  ;;  %v738_v59 = vmul.f32 %v6195_v23, %v4371_v7  ;;  %vm885_vm7 = vcmp.ge.f32.partialorder %v883_v19, 0.0 }
 0x1cf   : > { %v6186_v27 = vstv %s4660_s16  ;;  %s931_s16 = sadd.s32 7, %s4201_s14 }
 0x1d0   : > { %v1688_v51 = vpop.permute.xlu1 %1687  ;;  %v1668_v47 = vadd.f32 %v1666_v0, %v1640_v46  ;;  %v6189_v0 = vstv %s4633_s24  ;;  %v6182_v46 = vstv %s4629_s21  ;;  %vm1076_vm8 = vcmp.ge.f32.partialorder %v1074_v49, 0.0  ;;  %s4786_s21 = sld [smem:[#allocation3 + %s931_s16]]  ;;  %s1096_s16 = sadd.s32 76, %s4201_s14 }
 0x1d1   : > { %v1694_v62 = vmul.f32 %v1688_v51, %v1684_v54  ;;  %v1265_v54 = vadd.f32 %v1263_v16, %v1262_v24  ;;  %v1290_v51 = vmul.f32 %v1288_v9, %v4229_v34  ;;  %v1078_v9 = vmul.f32 0.01, %v1074_v49 }
 0x1d2   : > { %3753 = vset.pattern.permute.xlu1 %v3970_v57  ;;  %v1127_v61 = vmul.f32 %v6182_v46, %v4371_v7 }
 0x1d3   : > { %1031 = vperm.xlu1 %3753, %v4251_v40   ;;  %v4557_v30 = vadd.f32 %v1694_v62, %v1668_v47  ;;  %v1269_v44 = vmul.f32 0.01, %v1265_v54  ;;  %v1293_v15 = vadd.f32 %v1291_v18, %v1290_v51  ;;  %vm1267_vm9 = vcmp.ge.f32.partialorder %v1265_v54, 0.0 }
 0x1d4   : > { %v1241_v18 = vmul.f32 0.01, %v4245_v39  ;;  %v6190_v51 = vstv %s4674_s6 }
 0x1d5   : > { %v4559_v17 = vpop.permute.xlu1 %751  ;;  %v1698_v29 = vsel %vm959_vm15, %v4557_v30, -inf  ;;  %vm1295_vm12 = vcmp.ge.f32.partialorder %v1293_v15, 0.0 }
 0x1d6   : > { %1699 = vmax.xlane.f32.xlu0 %v1698_v29  ;;  %v6192_v29 = vstv %s4639_s22 }
 0x1d7   : > { %3754 = vset.pattern.permute.xlu1 %v3963_v31  ;;  %v4579_v31 = vpop.permute.xlu0 %780  ;;  %v796_v24 = vmul.f32 %v6192_v29, %v4371_v7 }
 0x1d8   : > { %896 = vperm.xlu1 %3754, %v4251_v40  }
 0x1da   : > { %v4565_v52 = vpop.permute.xlu1 %808 }
 0x1dc   : > { %3756 = vset.pattern.permute.xlu1 %v3972_v2 }
 0x1dd   : > { %924 = vperm.xlu1 %3756, %v4251_v40  }
 0x1df   : > { %v4569_v57 = vpop.permute.xlu1 %836 }
 0x1e1   : > { %3757 = vset.pattern.permute.xlu1 %v3965_v33  ;;  %v4598_v33 = vpop.permute.xlu0 %864 }
 0x1e2   : > { %1087 = vperm.xlu1 %3757, %v4251_v40  }
 0x1e4   : > { %v4573_v53 = vpop.permute.xlu1 %999 }
 0x1e5   : > { %v4622_v20 = vpop.permute.xlu0 %892 }
 0x1e6   : > { %3759 = vset.pattern.permute.xlu1 %v3974_v5  ;;  %v6196_v5 = vstv %s4584_s28  ;;  %s793_s28 = sadd.s32 66, %s4201_s14 }
 0x1e7   : > { %1115 = vperm.xlu1 %3759, %v4251_v40   ;;  %s4662_s11 = sld [smem:[#allocation3 + %s793_s28]]  ;;  %s1038_s28 = sadd.s32 10, %s4201_s14 }
 0x1e9   : > { %v4582_v2 = vpop.permute.xlu1 %1027  ;;  %v4657_v28 = vpop.permute.xlu0 %1083 }
 0x1eb   : > { %3760 = vset.pattern.permute.xlu1 %v3966_v36 }
 0x1ec   : > { %1143 = vperm.xlu1 %3760, %v4251_v40  }
 0x1ed   : > { %v4698_v16 = vpop.permute.xlu0 %1139  ;;  %v6188_v46 = vstv %s4662_s11 }
 0x1ee   : > { %v4603_v36 = vpop.permute.xlu1 %1055 }
 0x1f0   : > { %3762 = vset.pattern.permute.xlu1 %v3976_v58  ;;  %v6187_v58 = vstv %s4591_s4  ;;  %s821_s4 = sadd.s32 67, %s4201_s14 }
 0x1f1   : > { %1199 = vperm.xlu1 %3762, %v4251_v40   ;;  %v768_v40 = vmul.f32 %v6196_v5, %v4371_v7  ;;  %v852_v26 = vmul.f32 %v6187_v58, %v4371_v7  ;;  %s4694_s18 = sld [smem:[#allocation3 + %s821_s4]] }
 0x1f2   : > { %s4708_s4 = sld [smem:[#allocation3 + %s1038_s28]]  ;;  %s903_s28 = sadd.s32 6, %s4201_s14 }
 0x1f3   : > { %v4619_v13 = vpop.permute.xlu1 %920  ;;  %v771_v12 = vadd.f32 %v6194_v35, %v768_v40  ;;  %v855_v22 = vadd.f32 %v6184_v37, %v852_v26  ;;  %v887_v40 = vmul.f32 0.01, %v883_v19  ;;  %v741_v26 = vadd.f32 %v6189_v0, %v738_v59  ;;  %s4758_s12 = sld [smem:[#allocation3 + %s903_s28]]  ;;  %s1094_s28 = sadd.s32 12, %s4201_s14 }
 0x1f4   : > { %v1325_v0 = vmul.f32 0.01, %v4266_v45  ;;  %s4800_s15 = sld [smem:[#allocation3 + %s1094_s28]] }
 0x1f5   : > { %vm773_vm5 = vcmp.ge.f32.partialorder %v771_v12, 0.0  ;;  %v775_v47 = vmul.f32 0.01, %v771_v12  ;;  %v859_v62 = vmul.f32 0.01, %v855_v22  ;;  %vm857_vm6 = vcmp.ge.f32.partialorder %v855_v22, 0.0 }
 0x1f6   : > { %v4730_v3 = vsel %vm885_vm7, %v883_v19, %v887_v40  ;;  %vm743_vm10 = vcmp.ge.f32.partialorder %v741_v26, 0.0  ;;  %v1250_v19 = vpop.permute.xlu0 %1249  ;;  %v1271_v40 = vsel %vm1267_vm9, %v1265_v54, %v1269_v44  ;;  %v6202_v44 = vstv %s4700_s9  ;;  %s4817_s28 = sld [smem:[#allocation3 + %s1096_s16]] }
 0x1f7   : > { %v4720_v59 = vsel %vm773_vm5, %v771_v12, %v775_v47  ;;  %v4727_v37 = vsel %vm857_vm6, %v855_v22, %v859_v62  ;;  %v4737_v12 = vsel %vm1076_vm8, %v1074_v49, %v1078_v9  ;;  %v4741_v47 = vadd.f32 %v6186_v27, %v1127_v61  ;;  %s6302_s16 = sld [smem:[#allocation20_spill]] }
 0x1f8   : > { %v4647_v4 = vpop.permute.xlu1 %948  ;;  %v799_v22 = vadd.f32 %v6188_v46, %v796_v24  ;;  %v824_v62 = vmul.f32 %v6191_v25, %v4371_v7  ;;  %v1297_v49 = vmul.f32 0.01, %v1293_v15  ;;  %v6205_v9 = vstv %s4694_s18 }
 0x1f9   : > { %v987_v61 = vmul.f32 %v6190_v51, %v4371_v7  ;;  %v6198_v27 = vstv %s4696_s23  ;;  %v745_v24 = vmul.f32 0.01, %v741_v26  ;;  %v1243_v46 = vsel %vm1239_vm11, %v4245_v39, %v1241_v18 }
 0x1fa   : > { %v6201_v54 = vstv %s4708_s4  ;;  %v1346_v25 = vmul.f32 %v1344_v32, %v4229_v34  ;;  %v803_v29 = vmul.f32 0.01, %v799_v22  ;;  %v827_v39 = vadd.f32 %v6205_v9, %v824_v62  ;;  %v1334_v62 = vpop.permute.xlu0 %1333 }
 0x1fb   : > { %v1015_v18 = vmul.f32 %v6198_v27, %v4371_v7  ;;  %v1299_v35 = vsel %vm1295_vm12, %v1293_v15, %v1297_v49  ;;  %vm801_vm14 = vcmp.ge.f32.partialorder %v799_v22, 0.0  ;;  %v1253_v23 = vmul.f32 %v1250_v19, %v1243_v46 }
 0x1fc   : > { %v990_v5 = vadd.f32 %v6202_v44, %v987_v61  ;;  %v1327_v32 = vsel %vm1323_vm13, %v4266_v45, %v1325_v0  ;;  %v6200_v27 = vstv %s4734_s8  ;;  %v1374_v45 = vmul.f32 %v1372_v38, %v4229_v34 }
 0x1fd   : > { %v4683_v8 = vpop.permute.xlu1 %1111  ;;  %v4794_v0 = vsel %vm801_vm14, %v799_v22, %v803_v29  ;;  %vm829_vm0 = vcmp.ge.f32.partialorder %v827_v39, 0.0  ;;  %v831_v49 = vmul.f32 0.01, %v827_v39  ;;  %v1018_v61 = vadd.f32 %v6203_v41, %v1015_v18 }
 0x1fe   : > { %vm992_vm1 = vcmp.ge.f32.partialorder %v990_v5, 0.0  ;;  %v6294_v18 = vstv %s4413_s25  ;;  %vm1407_vm6 = vcmp.ge.f32.partialorder %v4303_v55, 0.0  ;;  %vm1597_vm9 = vcmp.ge.f32.partialorder %v4318_v60, 0.0  ;;  %s6309_s25 = sld [smem:[#allocation25_spill]] }
 0x1ff   : > { %vm1020_vm5 = vcmp.ge.f32.partialorder %v1018_v61, 0.0  ;;  %v787_v63 = vmul.f32 %v4579_v31, %v4720_v59 }
 0x202   : > { %v4715_v10 = vpop.permute.xlu1 %1167 }
 0x207   : > { %v1278_v58 = vpop.permute.xlu1 %1277 }
 0x208   : > { %v1281_v51 = vmul.f32 %v1278_v58, %v1271_v40  ;;  %v4776_v58 = vsel %vm743_vm10, %v741_v26, %v745_v24  ;;  %v1043_v40 = vmul.f32 %v6201_v54, %v4371_v7  ;;  %v1349_v26 = vadd.f32 %v1347_v48, %v1346_v25 }
 0x209   : > { %v1337_v24 = vmul.f32 %v1334_v62, %v1327_v32  ;;  %v6204_v25 = vstv %s4758_s12  ;;  %v1480_v32 = vmul.f32 %v6294_v18, %v4229_v34  ;;  %v6295_v62 = vstv %s4404_s7  ;;  %s4884_s7 = sld [smem:[#allocation3 + %s1152_s13]] }
 0x20a   : > { %v1283_v46 = vadd.f32 %v1281_v51, %v1253_v23  ;;  %v994_v23 = vmul.f32 0.01, %v990_v5  ;;  %v1046_v38 = vadd.f32 %v6200_v27, %v1043_v40  ;;  %v1353_v29 = vmul.f32 0.01, %v1349_v26  ;;  %s6305_s13 = sld [smem:[#allocation24_spill]] }
 0x20b   : > { %vm1351_vm4 = vcmp.ge.f32.partialorder %v1349_v26, 0.0  ;;  %v6296_v40 = vstv %s4434_s5  ;;  %s1150_s5 = sadd.s32 14, %s4201_s14 }
 0x20c   : > { %v1306_v15 = vpop.permute.xlu1 %1305  ;;  %v1536_v27 = vmul.f32 %v6296_v40, %v4229_v34  ;;  %v4822_v54 = vsel %vm992_vm1, %v990_v5, %v994_v23  ;;  %v4833_v34 = vpop.permute.xlu0 %1523  ;;  %v6209_v5 = vstv %s4786_s21  ;;  %v6297_v23 = vstv %s4432_s3 }
 0x20d   : > { %v1309_v19 = vmul.f32 %v1306_v15, %v1299_v35  ;;  %v1515_v35 = vmul.f32 0.01, %v4285_v50  ;;  %v1377_v15 = vadd.f32 %v6295_v62, %v1374_v45  ;;  %v1409_v45 = vmul.f32 0.01, %v4303_v55 }
 0x20e   : > { %vm1048_vm7 = vcmp.ge.f32.partialorder %v1046_v38, 0.0  ;;  %v1539_v44 = vadd.f32 %v1537_v6, %v1536_v27 }
 0x20f   : > { %v1311_v48 = vadd.f32 %v1309_v19, %v1283_v46  ;;  %v4815_v46 = vsel %vm829_vm0, %v827_v39, %v831_v49  ;;  %v1022_v19 = vmul.f32 0.01, %v1018_v61  ;;  %v1050_v39 = vmul.f32 0.01, %v1046_v38 }
 0x210   : > { %v908_v49 = vmul.f32 %v6204_v25, %v4371_v7  ;;  %v1381_v18 = vmul.f32 0.01, %v1377_v15  ;;  %vm1379_vm8 = vcmp.ge.f32.partialorder %v1377_v15, 0.0  ;;  %v1411_v41 = vsel %vm1407_vm6, %v4303_v55, %v1409_v45 }
 0x211   : > { %v1362_v51 = vpop.permute.xlu1 %1361  ;;  %v1339_v22 = vadd.f32 %v1337_v24, %v1311_v48  ;;  %v4825_v24 = vsel %vm1513_vm3, %v4285_v50, %v1515_v35  ;;  %v6208_v48 = vstv %s4783_s19  ;;  %v1355_v50 = vsel %vm1351_vm4, %v1349_v26, %v1353_v29 }
 0x212   : > { %v1483_v35 = vadd.f32 %v6297_v23, %v1480_v32  ;;  %v4838_v62 = vsel %vm1020_vm5, %v1018_v61, %v1022_v19  ;;  %v6207_v26 = vstv %s4800_s15  ;;  %v4849_v61 = vld [vmem:[%s6279_s20 + $0x8] sm:$0xff]  ;;  %v6298_v29 = vstv %s4444_s26  ;;  %s4867_s26 = sld [smem:[#allocation3 + %s1150_s5]]  ;;  %s1178_s5 = sadd.s32 15, %s4201_s14 }
 0x213   : > { %v1564_v32 = vmul.f32 %v4849_v61, %v6298_v29  ;;  %v1599_v19 = vmul.f32 0.01, %v4318_v60  ;;  %v911_v6 = vadd.f32 %v6208_v48, %v908_v49  ;;  %v936_v55 = vmul.f32 %v6209_v5, %v4371_v7  ;;  %s4894_s3 = sld [smem:[#allocation3 + %s1178_s5]] }
 0x214   : > { %v1365_v27 = vmul.f32 %v1362_v51, %v1355_v50  ;;  %v4860_v45 = vsel %vm1048_vm7, %v1046_v38, %v1050_v39  ;;  %v938_v23 = vstv %s4807_s1  ;;  %v1487_v25 = vmul.f32 0.01, %v1483_v35  ;;  %v1418_v50 = vpop.permute.xlu0 %1417 }
 0x215   : > { %v1383_v9 = vsel %vm1379_vm8, %v1377_v15, %v1381_v18  ;;  %v1099_v56 = vmul.f32 %v6207_v26, %v4371_v7  ;;  %v1101_v29 = vstv %s4817_s28  ;;  %vm1485_vm10 = vcmp.ge.f32.partialorder %v1483_v35, 0.0 }
 0x216   : > { %v1496_v40 = vpop.permute.xlu1 %1495  ;;  %v1543_v49 = vmul.f32 0.01, %v1539_v44  ;;  %v759_v51 = vmul.f32 %v4559_v17, %v4776_v58  ;;  %vm1541_vm11 = vcmp.ge.f32.partialorder %v1539_v44, 0.0  ;;  %v1567_v39 = vadd.f32 %v1565_v42, %v1564_v32 }
 0x217   : > { %v6301_v15 = vstv %s6300_s30  ;;  %vm913_vm12 = vcmp.ge.f32.partialorder %v911_v6, 0.0  ;;  %v939_v26 = vadd.f32 %v938_v23, %v936_v55  ;;  %v1367_v48 = vadd.f32 %v1365_v27, %v1339_v22  ;;  %s1180_s30 = sadd.s32 79, %s4201_s14 }
 0x218   : > { %v1430_v18 = vmul.f32 %v4849_v61, %v6301_v15  ;;  %v815_v17 = vmul.f32 %v4565_v52, %v4794_v0  ;;  %v915_v58 = vmul.f32 0.01, %v911_v6  ;;  %v1489_v42 = vsel %vm1485_vm10, %v1483_v35, %v1487_v25  ;;  %s4907_s5 = sld [smem:[#allocation3 + %s1180_s30]] }
 0x219   : > { %v1421_v32 = vmul.f32 %v1418_v50, %v1411_v41  ;;  %v1102_v15 = vadd.f32 %v1101_v29, %v1099_v56  ;;  %v789_v22 = vadd.f32 %v787_v63, %v759_v51  ;;  %v843_v31 = vmul.f32 %v4569_v57, %v4815_v46  ;;  %s6311_s30 = sld [smem:[#allocation26_spill]] }
 0x21a   : > { %v1571_v59 = vmul.f32 0.01, %v1567_v39  ;;  %v6304_v52 = vstv %s6302_s16  ;;  %v943_v27 = vmul.f32 0.01, %v939_v26  ;;  %v1499_v25 = vmul.f32 %v1496_v40, %v1489_v42  ;;  %s6306_s16 = sld [smem:[#allocation23_spill]] }
 0x21b   : > { %v1390_v38 = vpop.permute.xlu1 %1389  ;;  %v1433_v0 = vadd.f32 %v6304_v52, %v1430_v18  ;;  %vm1569_vm13 = vcmp.ge.f32.partialorder %v1567_v39, 0.0  ;;  %v817_v35 = vadd.f32 %v815_v17, %v789_v22  ;;  %vm941_vm14 = vcmp.ge.f32.partialorder %v939_v26, 0.0 }
 0x21c   : > { %v1393_v5 = vmul.f32 %v1390_v38, %v1383_v9  ;;  %v1545_v9 = vsel %vm1541_vm11, %v1539_v44, %v1543_v49  ;;  %v1601_v44 = vsel %vm1597_vm9, %v4318_v60, %v1599_v19  ;;  %v1620_v63 = vmul.f32 %v4849_v61, %v1618_v43 }
 0x21d   : > { %v1527_v57 = vmul.f32 %v4833_v34, %v4825_v24  ;;  %v917_v46 = vsel %vm913_vm12, %v911_v6, %v915_v58  ;;  %v845_v40 = vadd.f32 %v843_v31, %v817_v35  ;;  %v1106_v49 = vmul.f32 0.01, %v1102_v15  ;;  %v1608_v24 = vpop.permute.xlu0 %1607 }
 0x21e   : > { %v1395_v55 = vadd.f32 %v1393_v5, %v1367_v48  ;;  %v1154_v48 = vstv %s4867_s26  ;;  %v1573_v51 = vsel %vm1569_vm13, %v1567_v39, %v1571_v59  ;;  %v1437_v60 = vmul.f32 0.01, %v1433_v0 }
 0x21f   : > { %v945_v19 = vsel %vm941_vm14, %v939_v26, %v943_v27  ;;  %vm1104_vm0 = vcmp.ge.f32.partialorder %v1102_v15, 0.0  ;;  %v1529_v50 = vadd.f32 %v1527_v57, %v1499_v25  ;;  %vm1435_vm1 = vcmp.ge.f32.partialorder %v1433_v0, 0.0 }
 0x220   : > { %v1552_v41 = vpop.permute.xlu1 %1551  ;;  %v1423_v56 = vadd.f32 %v1421_v32, %v1395_v55  ;;  %v871_v43 = vmul.f32 %v4598_v33, %v4727_v37  ;;  %v1155_v34 = vmul.f32 %v1154_v48, %v4371_v7  ;;  %v1157_v6 = vstv %s4884_s7 }
 0x221   : > { %v1555_v5 = vmul.f32 %v1552_v41, %v1545_v9  ;;  %v6307_v18 = vstv %s6305_s13  ;;  %v1034_v26 = vmul.f32 %v4582_v2, %v4838_v62  ;;  %v6308_v42 = vstv %s6306_s16  ;;  %s6312_s13 = sld [smem:[#allocation27_spill]]  ;;  %s6314_s16 = sld [smem:[#allocation28_spill]] }
 0x222   : > { %v1623_v39 = vadd.f32 %v6307_v18, %v1620_v63  ;;  %v1648_v32 = vmul.f32 %v4849_v61, %v6308_v42  ;;  %v873_v55 = vadd.f32 %v871_v43, %v845_v40  ;;  %v1108_v33 = vsel %vm1104_vm0, %v1102_v15, %v1106_v49 }
 0x223   : > { %v1557_v17 = vadd.f32 %v1555_v5, %v1529_v50  ;;  %v1439_v37 = vsel %vm1435_vm1, %v1433_v0, %v1437_v60  ;;  %v1182_v9 = vstv %s4894_s3  ;;  %v1006_v22 = vmul.f32 %v4573_v53, %v4822_v54  ;;  %s2202_s3 = sadd.s32 116, %s4201_s14 }
 0x224   : > { %v1062_v31 = vmul.f32 %v4603_v36, %v4860_v45  ;;  %v1611_v59 = vmul.f32 %v1608_v24, %v1601_v44  ;;  %v899_v2 = vmul.f32 %v4622_v20, %v4730_v3  ;;  %v927_v62 = vmul.f32 %v4619_v13, %v917_v46 }
 0x225   : > { %v1580_v38 = vpop.permute.xlu1 %1579  ;;  %v1158_v27 = vadd.f32 %v1157_v6, %v1155_v34  ;;  %vm1625_vm3 = vcmp.ge.f32.partialorder %v1623_v39, 0.0  ;;  %v1036_v15 = vadd.f32 %v1034_v26, %v1006_v22  ;;  %v1627_v25 = vmul.f32 0.01, %v1623_v39 }
 0x226   : > { %v1583_v58 = vmul.f32 %v1580_v38, %v1573_v51  ;;  %v6310_v53 = vstv %s6309_s25  ;;  %v901_v35 = vadd.f32 %v899_v2, %v873_v55  ;;  %v955_v36 = vmul.f32 %v4647_v4, %v945_v19  ;;  %s6317_s25 = sld [smem:[#allocation29_spill]] }
 0x227   : > { %v1651_v54 = vadd.f32 %v6310_v53, %v1648_v32  ;;  %v1183_v44 = vmul.f32 %v1182_v9, %v4371_v7  ;;  %vm1132_vm4 = vcmp.ge.f32.partialorder %v4741_v47, 0.0  ;;  %v1064_v13 = vadd.f32 %v1062_v31, %v1036_v15  ;;  %v1692_v7 = vpop.permute.xlu0 %1691 }
 0x228   : > { %v1585_v52 = vadd.f32 %v1583_v58, %v1557_v17  ;;  %v1185_v20 = vstv %s4907_s5  ;;  %v1134_v3 = vmul.f32 0.01, %v4741_v47  ;;  %v929_v63 = vadd.f32 %v927_v62, %v901_v35  ;;  %s2224_s5 = sadd.s32 53, %s4201_s14 }
 0x229   : > { %v1162_v57 = vmul.f32 0.01, %v1158_v27  ;;  %v1090_v5 = vmul.f32 %v4657_v28, %v4737_v12  ;;  %v1118_v4 = vmul.f32 %v4683_v8, %v1108_v33  ;;  %v1629_v40 = vsel %vm1625_vm3, %v1623_v39, %v1627_v25 }
 0x22a   : > { %v1446_v0 = vpop.permute.xlu1 %1445  ;;  %v1613_v41 = vadd.f32 %v1611_v59, %v1585_v52  ;;  %v1655_v49 = vmul.f32 0.01, %v1651_v54  ;;  %vm1653_vm5 = vcmp.ge.f32.partialorder %v1651_v54, 0.0  ;;  %v4949_v19 = vadd.f32 %v955_v36, %v929_v63 }
 0x22b   : > { %v1449_v45 = vmul.f32 %v1446_v0, %v1439_v37  ;;  %v1186_v50 = vadd.f32 %v1185_v20, %v1183_v44  ;;  %v1092_v43 = vadd.f32 %v1090_v5, %v1064_v13  ;;  %vm1160_vm6 = vcmp.ge.f32.partialorder %v1158_v27, 0.0  ;;  %v4962_v58 = vpop.permute.xlu0 %812 }
 0x22c   : > { %v1136_v28 = vsel %vm1132_vm4, %v4741_v47, %v1134_v3  ;;  %vm1681_vm7 = vcmp.ge.f32.partialorder %v4330_v1, 0.0  ;;  %v1657_v24 = vsel %vm1653_vm5, %v1651_v54, %v1655_v49  ;;  %v1164_v34 = vsel %vm1160_vm6, %v1158_v27, %v1162_v57 }
 0x22d   : > { %v4941_v46 = vadd.f32 %v1449_v45, %v1423_v56  ;;  %v1683_v56 = vmul.f32 0.01, %v4330_v1  ;;  %v1120_v12 = vadd.f32 %v1118_v4, %v1092_v43  ;;  %v960_v38 = vsel %vm959_vm15, %v4949_v19, -inf }
 0x22e   : > { %v1190_v18 = vmul.f32 0.01, %v1186_v50  ;;  %v1146_v39 = vmul.f32 %v4698_v16, %v1136_v28  ;;  %vm1188_vm8 = vcmp.ge.f32.partialorder %v1186_v50, 0.0  ;;  %v1174_v55 = vmul.f32 %v4715_v10, %v1164_v34 }
 0x22f   : > { %v1636_v51 = vpop.permute.xlu1 %1635  ;;  %v1455_v60 = vsel %vm959_vm15, %v4941_v46, -inf  ;;  %v1685_v26 = vsel %vm1681_vm7, %v4330_v1, %v1683_v56  ;;  %v4967_v52 = vpop.permute.xlu0 %1003  ;;  %v6313_v15 = vstv %s6311_s30  ;;  %v6315_v25 = vstv %s4615_s29  ;;  %s2130_s29 = sadd.s32 113, %s4201_s14  ;;  %s5158_s30 = sld [smem:[#allocation3 + %s2202_s3]] }
 0x230   : > { %1456 = vmax.xlane.f32.xlu1 %v1455_v60  ;;  %v1639_v8 = vmul.f32 %v1636_v51, %v1629_v40  ;;  %v1148_v32 = vadd.f32 %v1146_v39, %v1120_v12  ;;  %v1695_v33 = vmul.f32 %v1692_v7, %v1685_v26  ;;  %v1192_v22 = vsel %vm1188_vm8, %v1186_v50, %v1190_v18  ;;  %s2322_s3 = sadd.s32 121, %s4201_s14 }
 0x231   : > { %v769_v0 = vmul.f32 %v4849_v61, %v6313_v15  ;;  %v6316_v54 = vstv %s6312_s13  ;;  %v6318_v45 = vstv %s4639_s22  ;;  %v6319_v13 = vstv %s4633_s24  ;;  %s6332_s24 = sld [smem:[#allocation30_spill]]  ;;  %s6337_s22 = sld [smem:[#allocation31_spill]] }
 0x232   : > { %v1641_v47 = vadd.f32 %v1639_v8, %v1613_v41  ;;  %v1176_v1 = vadd.f32 %v1174_v55, %v1148_v32  ;;  %v739_v41 = vmul.f32 %v4849_v61, %v6315_v25  ;;  %v797_v44 = vmul.f32 %v4849_v61, %v6318_v45  ;;  %s5161_s13 = sld [smem:[#allocation3 + %s2224_s5]]  ;;  %s2344_s5 = sadd.s32 58, %s4201_s14 }
 0x233   : > { %v4981_v53 = vpop.permute.xlu0 %1059  ;;  %v772_v35 = vadd.f32 %v6316_v54, %v769_v0  ;;  %v6320_v57 = vstv %s4669_s27  ;;  %v6321_v40 = vstv %s4662_s11  ;;  %v6322_v60 = vstv %s6314_s16  ;;  %s6342_s11 = sld [smem:[#allocation32_spill]]  ;;  %s2226_s16 = sadd.s32 117, %s4201_s14 }
 0x234   : > { %v1664_v17 = vpop.permute.xlu1 %1663  ;;  %961 = vmax.xlane.f32.xlu1 %v960_v38  ;;  %v742_v3 = vadd.f32 %v6319_v13, %v739_v41  ;;  %v825_v5 = vmul.f32 %v4849_v61, %v6320_v57  ;;  %v800_v49 = vadd.f32 %v6321_v40, %v797_v44  ;;  %v853_v50 = vmul.f32 %v4849_v61, %v6322_v60 }
 0x235   : > { %v1667_v42 = vmul.f32 %v1664_v17, %v1657_v24  ;;  %v776_v63 = vmul.f32 0.01, %v772_v35  ;;  %vm774_vm9 = vcmp.ge.f32.partialorder %v772_v35, 0.0  ;;  %v6323_v43 = vstv %s4694_s18 }
 0x236   : > { %v746_v7 = vmul.f32 0.01, %v742_v3  ;;  %vm744_vm10 = vcmp.ge.f32.partialorder %v742_v3, 0.0  ;;  %v828_v28 = vadd.f32 %v6323_v43, %v825_v5  ;;  %v6324_v8 = vstv %s6317_s25  ;;  %s2248_s25 = sadd.s32 54, %s4201_s14 }
 0x237   : > { %v1669_v37 = vadd.f32 %v1667_v42, %v1641_v47  ;;  %v4993_v4 = vpop.permute.xlu0 %952  ;;  %v778_v56 = vsel %vm774_vm9, %v772_v35, %v776_v63  ;;  %v881_v12 = vmul.f32 %v4849_v61, %v6324_v8  ;;  %v804_v24 = vmul.f32 0.01, %v800_v49 }
 0x238   : > { %v748_v34 = vsel %vm744_vm10, %v742_v3, %v746_v7  ;;  %v6325_v38 = vstv %s4605_s17  ;;  %vm802_vm11 = vcmp.ge.f32.partialorder %v800_v49, 0.0  ;;  %v832_v47 = vmul.f32 0.01, %v828_v28  ;;  %s2106_s17 = sadd.s32 112, %s4201_s14 }
 0x239   : > { %v1196_v31 = vpop.permute.xlu1 %1195  ;;  %v4965_v16 = vadd.f32 %v1695_v33, %v1669_v37  ;;  %v856_v18 = vadd.f32 %v6325_v38, %v853_v50  ;;  %v6326_v42 = vstv %s4608_s0  ;;  %v6327_v55 = vstv %s4758_s12  ;;  %s5113_s18 = sld [smem:[#allocation3 + %s2106_s17]] }
 0x23a   : > { %v1202_v59 = vmul.f32 %v1196_v31, %v1192_v22  ;;  %v884_v32 = vadd.f32 %v6326_v42, %v881_v12  ;;  %v909_v33 = vmul.f32 %v4849_v61, %v6327_v55  ;;  %vm830_vm12 = vcmp.ge.f32.partialorder %v828_v28, 0.0 }
 0x23b   : > { %v1701_v2 = vsel %vm959_vm15, %v4965_v16, -inf  ;;  %v5007_v39 = vpop.permute.xlu0 %1171  ;;  %v806_v22 = vsel %vm802_vm11, %v800_v49, %v804_v24  ;;  %v6328_v31 = vstv %s4786_s21  ;;  %v6330_v15 = vstv %s4674_s6  ;;  %s2128_s6 = sadd.s32 49, %s4201_s14  ;;  %s2152_s21 = sadd.s32 50, %s4201_s14 }
 0x23c   : > { %1702 = vmax.xlane.f32.xlu0 %v1701_v2  ;;  %v4971_v10 = vadd.f32 %v1202_v59, %v1176_v1  ;;  %v937_v1 = vmul.f32 %v4849_v61, %v6328_v31  ;;  %v860_v59 = vmul.f32 0.01, %v856_v18  ;;  %v6329_v2 = vstv %s4696_s23  ;;  %s5109_s0 = sld [smem:[#allocation3 + %s2128_s6]] }
 0x23d   : > { %v988_v0 = vmul.f32 %v4849_v61, %v6330_v15  ;;  %vm858_vm13 = vcmp.ge.f32.partialorder %v856_v18, 0.0  ;;  %v6331_v45 = vstv %s4783_s19  ;;  %v816_v13 = vmul.f32 %v4962_v58, %v806_v22  ;;  %s5115_s23 = sld [smem:[#allocation3 + %s2130_s29]]  ;;  %s2178_s19 = sadd.s32 115, %s4201_s14 }
 0x23e   : > { %v757_v62 = vpop.permute.xlu1 %756  ;;  %v1206_v27 = vsel %vm959_vm15, %v4971_v10, -inf  ;;  %v912_v44 = vadd.f32 %v6331_v45, %v909_v33  ;;  %vm886_vm14 = vcmp.ge.f32.partialorder %v884_v32, 0.0  ;;  %v940_v3 = vadd.f32 %v938_v23, %v937_v1  ;;  %s5141_s26 = sld [smem:[#allocation3 + %s2178_s19]]  ;;  %s2274_s29 = sadd.s32 119, %s4201_s14 }
 0x23f   : > { %1207 = vmax.xlane.f32.xlu1 %v1206_v27  ;;  %v760_v37 = vmul.f32 %v757_v62, %v748_v34  ;;  %v1016_v27 = vmul.f32 %v4849_v61, %v6329_v2  ;;  %v834_v62 = vsel %vm830_vm12, %v828_v28, %v832_v47  ;;  %v862_v63 = vsel %vm858_vm13, %v856_v18, %v860_v59  ;;  %s2298_s19 = sadd.s32 120, %s4201_s14 }
 0x240   : > { %v6333_v5 = vstv %s4724_s10  ;;  %v6334_v49 = vstv %s4700_s9  ;;  %v916_v58 = vmul.f32 0.01, %v912_v44  ;;  %vm914_vm0 = vcmp.ge.f32.partialorder %v912_v44, 0.0  ;;  %s2154_s9 = sadd.s32 114, %s4201_s14  ;;  %s2176_s10 = sadd.s32 51, %s4201_s14 }
 0x241   : > { %v1019_v40 = vadd.f32 %v6333_v5, %v1016_v27  ;;  %v991_v7 = vadd.f32 %v6334_v49, %v988_v0  ;;  %v6336_v23 = vstv %s6332_s24  ;;  %vm942_vm1 = vcmp.ge.f32.partialorder %v940_v3, 0.0  ;;  %s5124_s12 = sld [smem:[#allocation3 + %s2176_s10]] }
 0x242   : > { %v1072_v12 = vmul.f32 %v4849_v61, %v6336_v23  ;;  %v944_v24 = vmul.f32 0.01, %v940_v3  ;;  %v6338_v18 = vstv %s4800_s15  ;;  %v6339_v42 = vstv %s4734_s8  ;;  %s5122_s8 = sld [smem:[#allocation3 + %s2154_s9]]  ;;  %s2200_s15 = sadd.s32 52, %s4201_s14 }
 0x243   : > { %v785_v36 = vpop.permute.xlu1 %784  ;;  %v1023_v34 = vmul.f32 0.01, %v1019_v40  ;;  %vm1021_vm3 = vcmp.ge.f32.partialorder %v1019_v40, 0.0  ;;  %v995_v47 = vmul.f32 0.01, %v991_v7  ;;  %vm993_vm4 = vcmp.ge.f32.partialorder %v991_v7, 0.0 }
 0x244   : > { %v788_v26 = vmul.f32 %v785_v36, %v778_v56  ;;  %v888_v36 = vmul.f32 0.01, %v884_v32  ;;  %v6340_v33 = vstv %s4610_s2  ;;  %v946_v22 = vsel %vm942_vm1, %v940_v3, %v944_v24  ;;  %s2104_s2 = sadd.s32 48, %s4201_s14  ;;  %s5143_s7 = sld [smem:[#allocation3 + %s2200_s15]] }
 0x245   : > { %v1025_v31 = vsel %vm1021_vm3, %v1019_v40, %v1023_v34  ;;  %v6341_v15 = vstv %s6337_s22  ;;  %s5106_s27 = sld [smem:[#allocation3 + %s2104_s2]]  ;;  %s2272_s2 = sadd.s32 55, %s4201_s14 }
 0x246   : > { %v790_v25 = vadd.f32 %v788_v26, %v760_v37  ;;  %v890_v43 = vsel %vm886_vm14, %v884_v32, %v888_v36  ;;  %v1100_v26 = vmul.f32 %v4849_v61, %v6338_v18  ;;  %v918_v32 = vsel %vm914_vm0, %v912_v44, %v916_v58  ;;  %s5172_s24 = sld [smem:[#allocation3 + %s2226_s16]]  ;;  %s2320_s15 = sadd.s32 57, %s4201_s14 }
 0x247   : > { %v1075_v37 = vadd.f32 %v6340_v33, %v1072_v12  ;;  %v1128_v0 = vmul.f32 %v4849_v61, %v6341_v15  ;;  %s5174_s22 = sld [smem:[#allocation3 + %s2248_s25]] }
 0x248   : > { %v841_v51 = vpop.permute.xlu1 %840  ;;  %v818_v60 = vadd.f32 %v816_v13, %v790_v25  ;;  %v1103_v27 = vadd.f32 %v1101_v29, %v1100_v26  ;;  %v997_v25 = vsel %vm993_vm4, %v991_v7, %v995_v47  ;;  %s5191_s17 = sld [smem:[#allocation3 + %s2272_s2]]  ;;  %s2368_s2 = sadd.s32 59, %s4201_s14 }
 0x249   : > { %v844_v50 = vmul.f32 %v841_v51, %v834_v62  ;;  %v956_v62 = vmul.f32 %v4993_v4, %v946_v22  ;;  %v1079_v45 = vmul.f32 0.01, %v1075_v37  ;;  %vm1077_vm6 = vcmp.ge.f32.partialorder %v1075_v37, 0.0  ;;  %s5208_s9 = sld [smem:[#allocation3 + %s2274_s29]] }
 0x24a   : > { %v6343_v4 = vstv %s6342_s11  ;;  %v1007_v40 = vmul.f32 %v4967_v52, %v997_v25  ;;  %vm1105_vm7 = vcmp.ge.f32.partialorder %v1103_v27, 0.0  ;;  %s2250_s11 = sadd.s32 118, %s4201_s14  ;;  %s5224_s1 = sld [smem:[#allocation3 + %s2298_s19]] }
 0x24b   : > { %v846_v38 = vadd.f32 %v844_v50, %v818_v60  ;;  %v1131_v5 = vadd.f32 %v6343_v4, %v1128_v0  ;;  %v1081_v7 = vsel %vm1077_vm6, %v1075_v37, %v1079_v45  ;;  %v5132_v4 = vld [vmem:[%s6279_s20] sm:$0xff]  ;;  %s5189_s6 = sld [smem:[#allocation3 + %s2250_s11]]  ;;  %s2346_s11 = sadd.s32 122, %s4201_s14 }
 0x24c   : > { %s5226_s28 = sld [smem:[#allocation3 + %s2320_s15]]  ;;  %s2370_s19 = sadd.s32 123, %s4201_s14 }
 0x24d   : > { %v869_v17 = vpop.permute.xlu1 %868  ;;  %vm1133_vm8 = vcmp.ge.f32.partialorder %v1131_v5, 0.0  ;;  %v1135_v52 = vmul.f32 0.01, %v1131_v5  ;;  %s5239_s16 = sld [smem:[#allocation3 + %s2322_s3]]  ;;  %s2392_s15 = sadd.s32 60, %s4201_s14 }
 0x24e   : > { %v872_v28 = vmul.f32 %v869_v17, %v862_v63  ;;  %s5241_s25 = sld [smem:[#allocation3 + %s2344_s5]] }
 0x24f   : > { %v1137_v24 = vsel %vm1133_vm8, %v1131_v5, %v1135_v52  ;;  %s5254_s29 = sld [smem:[#allocation3 + %s2346_s11]]  ;;  %s2394_s11 = sadd.s32 124, %s4201_s14 }
 0x250   : > { %v874_v55 = vadd.f32 %v872_v28, %v846_v38  ;;  %6344 = sst [smem:[#allocation21_spill]] %s5224_s1 }
 0x251   : > { %v1454_v41 = vpop.xlane.xlu0 %1453  ;;  %s5269_s3 = sld [smem:[#allocation3 + %s2370_s19]] }
 0x252   : > { %v1458_v54 = vsub.f32 %v4533_v21, %v1454_v41  ;;  %v1032_v35 = vpop.permute.xlu1 %1031  ;;  %v6335_v21 = vstv %s4708_s4  ;;  %s5118_s4 = sld [smem:[#allocation3 + %s2152_s21]]  ;;  %s2296_s21 = sadd.s32 56, %s4201_s14 }
 0x253   : > { %v1044_v56 = vmul.f32 %v4849_v61, %v6335_v21  ;;  %v1035_v13 = vmul.f32 %v1032_v35, %v1025_v31  ;;  %s5210_s10 = sld [smem:[#allocation3 + %s2296_s21]] }
 0x254   : > { %v1460_v57 = vmul.f32 1.442695, %v1458_v54  ;;  %v1156_v54 = vmul.f32 %v4849_v61, %v1154_v48  ;;  %v1184_v48 = vmul.f32 %v4849_v61, %v1182_v9  ;;  %6345 = sst [smem:[#allocation19_spill]] %s5226_s28 }
 0x255   : > { %v1047_v17 = vadd.f32 %v6339_v42, %v1044_v56  ;;  %v1037_v21 = vadd.f32 %v1035_v13, %v1007_v40  ;;  %6346 = sst [smem:[#allocation20_spill]] %s5239_s16 }
 0x256   : > { %3812 = vpow2.f32 %v1460_v57  ;;  %v1107_v57 = vmul.f32 0.01, %v1103_v27  ;;  %v1159_v35 = vadd.f32 %v1157_v6, %v1156_v54  ;;  %6347 = sst [smem:[#allocation22_spill]] %s5241_s25 }
 0x257   : > { %v897_v8 = vpop.permute.xlu1 %896  ;;  %v1051_v41 = vmul.f32 0.01, %v1047_v17  ;;  %vm1049_vm5 = vcmp.ge.f32.partialorder %v1047_v17, 0.0  ;;  %6348 = sst [smem:[#allocation24_spill]] %s5254_s29 }
 0x258   : > { %v900_v51 = vmul.f32 %v897_v8, %v890_v43  ;;  %v1109_v43 = vsel %vm1105_vm7, %v1103_v27, %v1107_v57  ;;  %v1187_v8 = vadd.f32 %v1185_v20, %v1184_v48  ;;  %v1163_v6 = vmul.f32 0.01, %v1159_v35  ;;  %s5256_s21 = sld [smem:[#allocation3 + %s2368_s2]]  ;;  %s2416_s2 = sadd.s32 61, %s4201_s14 }
 0x259   : > { %v1053_v49 = vsel %vm1049_vm5, %v1047_v17, %v1051_v41  ;;  %vm1161_vm9 = vcmp.ge.f32.partialorder %v1159_v35, 0.0  ;;  %v2132_v57 = vstv %s5109_s0  ;;  %v2111_v48 = vstv %s5113_s18  ;;  %6350 = sst [smem:[#allocation25_spill]] %s5269_s3  ;;  %s1818_s18 = sadd.s32 100, %s4201_s14 }
 0x25a   : > { %v902_v59 = vadd.f32 %v900_v51, %v874_v55  ;;  %v1063_v58 = vmul.f32 %v4981_v53, %v1053_v49  ;;  %v1191_v38 = vmul.f32 0.01, %v1187_v8  ;;  %vm1189_vm10 = vcmp.ge.f32.partialorder %v1187_v8, 0.0  ;;  %s5271_s5 = sld [smem:[#allocation3 + %s2392_s15]] }
 0x25b   : > { %v2133_v49 = vmul.f32 %v5132_v4, %v2132_v57  ;;  %s5288_s19 = sld [smem:[#allocation3 + %s2394_s11]] }
 0x25c   : > { %v925_v1 = vpop.permute.xlu1 %924  ;;  %v1065_v23 = vadd.f32 %v1063_v58, %v1037_v21  ;;  %v1193_v42 = vsel %vm1189_vm10, %v1187_v8, %v1191_v38  ;;  %v2180_v58 = vstv %s5124_s12  ;;  %s5290_s15 = sld [smem:[#allocation3 + %s2416_s2]]  ;;  %s1842_s12 = sadd.s32 101, %s4201_s14 }
 0x25d   : > { %v928_v2 = vmul.f32 %v925_v1, %v918_v32 }
 0x25e   : > { %6349 = sst [smem:[#allocation23_spill]] %s5256_s21 }
 0x25f   : > { %v930_v36 = vadd.f32 %v928_v2, %v902_v59 }
 0x260   : > { %v5055_v44 = vpop.eup %3812  ;;  %6351 = sst [smem:[#allocation26_spill]] %s5271_s5 }
 0x261   : > { %v1088_v29 = vpop.permute.xlu1 %1087  ;;  %v1464_v3 = vsel %vm959_vm15, %v5055_v44, 0.0  ;;  %v5059_v63 = vadd.f32 %v956_v62, %v930_v36  ;;  %6352 = sst [smem:[#allocation27_spill]] %s5288_s19 }
 0x262   : > { %1465 = vadd.xlane.f32.xlu1 %v1464_v3  ;;  %v1091_v28 = vmul.f32 %v1088_v29, %v1081_v7  ;;  %v2108_v3 = vstv %s5106_s27  ;;  %v2135_v7 = vstv %s5115_s23  ;;  %6353 = sst [smem:[#allocation28_spill]] %s5290_s15  ;;  %s1794_s27 = sadd.s32 99, %s4201_s14 }
 0x263   : > { %v1700_v60 = vpop.xlane.xlu0 %1699  ;;  %v963_v50 = vsel %vm959_vm15, %v5059_v63, -inf  ;;  %v2109_v5 = vmul.f32 %v5132_v4, %v2108_v3  ;;  %s1840_s23 = sadd.s32 37, %s4201_s14 }
 0x264   : > { %v1704_v56 = vsub.f32 %v4557_v30, %v1700_v60  ;;  %964 = vmax.xlane.f32.xlu0 %v963_v50  ;;  %v1093_v34 = vadd.f32 %v1091_v28, %v1065_v23  ;;  %v1165_v30 = vsel %vm1161_vm9, %v1159_v35, %v1163_v6  ;;  %v2156_v60 = vstv %s5118_s4  ;;  %s5423_s4 = sld [smem:[#allocation3 + %s1794_s27]] }
 0x265   : > { %v1175_v53 = vmul.f32 %v5007_v39, %v1165_v30  ;;  %v2112_v21 = vadd.f32 %v2111_v48, %v2109_v5  ;;  %v2157_v52 = vmul.f32 %v5132_v4, %v2156_v60  ;;  %v2159_v28 = vstv %s5122_s8  ;;  %s5442_s8 = sld [smem:[#allocation3 + %s1818_s18]]  ;;  %s1914_s18 = sadd.s32 104, %s4201_s14 }
 0x266   : > { %v1706_v61 = vmul.f32 1.442695, %v1704_v56  ;;  %v1116_v9 = vpop.permute.xlu1 %1115  ;;  %v2183_v6 = vstv %s5141_s26  ;;  %v2204_v23 = vstv %s5143_s7  ;;  %s1864_s7 = sadd.s32 38, %s4201_s14  ;;  %s5464_s26 = sld [smem:[#allocation3 + %s1842_s12]] }
 0x267   : > { %v1119_v12 = vmul.f32 %v1116_v9, %v1109_v43  ;;  %v2136_v43 = vadd.f32 %v2135_v7, %v2133_v49  ;;  %vm2114_vm11 = vcmp.ge.f32.partialorder %v2112_v21, 0.0  ;;  %v2160_v8 = vadd.f32 %v2159_v28, %v2157_v52 }
 0x268   : > { %3814 = vpow2.f32 %v1706_v61  ;;  %v2181_v61 = vmul.f32 %v5132_v4, %v2180_v58  ;;  %v2205_v30 = vmul.f32 %v5132_v4, %v2204_v23 }
 0x269   : > { %v1121_v18 = vadd.f32 %v1119_v12, %v1093_v34  ;;  %v2140_v9 = vmul.f32 0.01, %v2136_v43  ;;  %vm2138_vm12 = vcmp.ge.f32.partialorder %v2136_v43, 0.0  ;;  %vm2162_vm13 = vcmp.ge.f32.partialorder %v2160_v8, 0.0 }
 0x26a   : > { %v2184_v38 = vadd.f32 %v2183_v6, %v2181_v61 }
 0x26b   : > { %v1144_v51 = vpop.permute.xlu1 %1143 }
 0x26c   : > { %v1147_v26 = vmul.f32 %v1144_v51, %v1137_v24  ;;  %v2142_v51 = vsel %vm2138_vm12, %v2136_v43, %v2140_v9  ;;  %vm2186_vm14 = vcmp.ge.f32.partialorder %v2184_v38, 0.0 }
 0x26e   : > { %v1149_v47 = vadd.f32 %v1147_v26, %v1121_v18  ;;  %v2164_v18 = vmul.f32 0.01, %v2160_v8  ;;  %v2207_v26 = vstv %s5158_s30  ;;  %s5466_s30 = sld [smem:[#allocation3 + %s1864_s7]]  ;;  %s1960_s7 = sadd.s32 42, %s4201_s14 }
 0x270   : > { %v1200_v17 = vpop.permute.xlu1 %1199  ;;  %v1177_v32 = vadd.f32 %v1175_v53, %v1149_v47  ;;  %v2228_v47 = vstv %s5161_s13  ;;  %s5451_s13 = sld [smem:[#allocation3 + %s1840_s23]] }
 0x271   : > { %v1203_v20 = vmul.f32 %v1200_v17, %v1193_v42  ;;  %v2188_v17 = vmul.f32 0.01, %v2184_v38  ;;  %s5533_s23 = sld [smem:[#allocation3 + %s1914_s18]] }
 0x272   : > { %v5076_v55 = vpop.eup %3814 }
 0x273   : > { %v1710_v33 = vsel %vm959_vm15, %v5076_v55, 0.0  ;;  %v5080_v37 = vadd.f32 %v1203_v20, %v1177_v32  ;;  %v2208_v32 = vadd.f32 %v2207_v26, %v2205_v30 }
 0x274   : > { %1711 = vadd.xlane.f32.xlu1 %v1710_v33  ;;  %v2166_v33 = vsel %vm2162_vm13, %v2160_v8, %v2164_v18  ;;  %v2303_v8 = vstv %s5224_s1  ;;  %s2440_s1 = sadd.s32 62, %s4201_s14 }
 0x275   : > { %v1209_v22 = vsel %vm959_vm15, %v5080_v37, -inf  ;;  %vm2210_vm0 = vcmp.ge.f32.partialorder %v2208_v32, 0.0  ;;  %s5308_s2 = sld [smem:[#allocation3 + %s2440_s1]] }
 0x276   : > { %1210 = vmax.xlane.f32.xlu0 %v1209_v22  ;;  %v2229_v22 = vmul.f32 %v5132_v4, %v2228_v47 }
 0x277   : > { %6360 = sst [smem:[#allocation35_spill]] %s5533_s23 }
 0x27b   : > { %6355 = sst [smem:[#allocation30_spill]] %s5308_s2 }
 0x2bd   : > { %v1457_v31 = vpop.xlane.xlu1 %1456 }
 0x2be   : > { %v1459_v39 = vsub.f32 %v4941_v46, %v1457_v31 }
 0x2c0   : > { %v1462_v1 = vmul.f32 1.442695, %v1459_v39  ;;  %v2231_v39 = vstv %s5172_s24  ;;  %s1866_s24 = sadd.s32 102, %s4201_s14 }
 0x2c1   : > { %v962_v59 = vpop.xlane.xlu1 %961 }
 0x2c2   : > { %3816 = vpow2.f32 %v1462_v1  ;;  %v966_v2 = vsub.f32 %v4949_v19, %v962_v59  ;;  %v2252_v1 = vstv %s5174_s22 }
 0x2c4   : > { %v968_v27 = vmul.f32 1.442695, %v966_v2 }
 0x2c6   : > { %3818 = vpow2.f32 %v968_v27 }
 0x2c9   : > { %v1703_v15 = vpop.xlane.xlu0 %1702 }
 0x2ca   : > { %v1705_v0 = vsub.f32 %v4965_v16, %v1703_v15  ;;  %v2190_v15 = vsel %vm2186_vm14, %v2184_v38, %v2188_v17 }
 0x2cc   : > { %v5087_v25 = vpop.eup %3816  ;;  %v1708_v41 = vmul.f32 1.442695, %v1705_v0  ;;  %v1208_v62 = vpop.xlane.xlu1 %1207  ;;  %v2212_v0 = vmul.f32 0.01, %v2208_v32 }
 0x2cd   : > { %v1212_v54 = vsub.f32 %v4971_v10, %v1208_v62  ;;  %v1467_v46 = vsel %vm959_vm15, %v5087_v25, 0.0  ;;  %v2232_v62 = vadd.f32 %v2231_v39, %v2229_v22 }
 0x2ce   : > { %3820 = vpow2.f32 %v1708_v41  ;;  %1468 = vadd.xlane.f32.xlu0 %v1467_v46  ;;  %v2255_v46 = vstv %s5189_s6  ;;  %v2214_v5 = vsel %vm2210_vm0, %v2208_v32, %v2212_v0  ;;  %v2351_v0 = vstv %s5254_s29  ;;  %s1936_s6 = sadd.s32 41, %s4201_s14 }
 0x2cf   : > { %v1214_v19 = vmul.f32 1.442695, %v1212_v54  ;;  %v2253_v54 = vmul.f32 %v5132_v4, %v2252_v1  ;;  %vm2234_vm1 = vcmp.ge.f32.partialorder %v2232_v62, 0.0  ;;  %s5541_s12 = sld [smem:[#allocation3 + %s1936_s6]] }
 0x2d0   : > { %v5092_v36 = vpop.eup %3818 }
 0x2d1   : > { %3822 = vpow2.f32 %v1214_v19  ;;  %v972_v16 = vsel %vm959_vm15, %v5092_v36, 0.0  ;;  %v2276_v19 = vstv %s5191_s17  ;;  %v2256_v49 = vadd.f32 %v2255_v46, %v2253_v54  ;;  %s1938_s17 = sadd.s32 105, %s4201_s14 }
 0x2d2   : > { %973 = vadd.xlane.f32.xlu1 %v972_v16 }
 0x2d3   : > { %vm2258_vm3 = vcmp.ge.f32.partialorder %v2256_v49, 0.0 }
 0x2d5   : > { %6361 = sst [smem:[#allocation36_spill]] %s5541_s12 }
 0x2d8   : > { %v5096_v45 = vpop.eup %3820 }
 0x2d9   : > { %v1713_v10 = vsel %vm959_vm15, %v5096_v45, 0.0 }
 0x2da   : > { %1714 = vadd.xlane.f32.xlu0 %v1713_v10 }
 0x2db   : > { %v5100_v13 = vpop.eup %3822 }
 0x2dc   : > { %v1218_v29 = vsel %vm959_vm15, %v5100_v13, 0.0 }
 0x2dd   : > { %1219 = vadd.xlane.f32.xlu1 %v1218_v29 }
 0x2ef   : > { %v1466_v40 = vpop.xlane.xlu1 %1465 }
 0x2f0   : > { %3824 = vrcp.f32 %v1466_v40  ;;  %v2236_v40 = vmul.f32 0.01, %v2232_v62 }
 0x2f1   : > { %v965_v35 = vpop.xlane.xlu0 %964 }
 0x2f2   : > { %v967_v50 = vsub.f32 %v5059_v63, %v965_v35  ;;  %v2116_v63 = vmul.f32 0.01, %v2112_v21  ;;  %v2277_v35 = vmul.f32 %v5132_v4, %v2276_v19  ;;  %v2238_v52 = vsel %vm2234_vm1, %v2232_v62, %v2236_v40 }
 0x2f3   : > { %v2375_v40 = vstv %s5269_s3  ;;  %s1792_s3 = sadd.s32 35, %s4201_s14 }
 0x2f4   : > { %v970_v56 = vmul.f32 1.442695, %v967_v50  ;;  %v2118_v24 = vsel %vm2114_vm11, %v2112_v21, %v2116_v63  ;;  %v2279_v50 = vstv %s5208_s9  ;;  %v2300_v21 = vstv %s5210_s10  ;;  %s5398_s29 = sld [smem:[#allocation3 + %s1792_s3]]  ;;  %s1888_s3 = sadd.s32 39, %s4201_s14 }
 0x2f5   : > { %v2260_v63 = vmul.f32 0.01, %v2256_v49  ;;  %v2280_v61 = vadd.f32 %v2279_v50, %v2277_v35  ;;  %v2301_v9 = vmul.f32 %v5132_v4, %v2300_v21  ;;  %s5473_s22 = sld [smem:[#allocation3 + %s1888_s3]]  ;;  %s1962_s10 = sadd.s32 106, %s4201_s14 }
 0x2f6   : > { %3826 = vpow2.f32 %v970_v56  ;;  %s1984_s9 = sadd.s32 43, %s4201_s14  ;;  %s5581_s18 = sld [smem:[#allocation3 + %s1962_s10]] }
 0x2f7   : > { %v2262_v30 = vsel %vm2258_vm3, %v2256_v49, %v2260_v63  ;;  %v2304_v18 = vadd.f32 %v2303_v8, %v2301_v9  ;;  %vm2282_vm4 = vcmp.ge.f32.partialorder %v2280_v61, 0.0  ;;  %v2399_v63 = vstv %s5288_s19  ;;  %s5584_s3 = sld [smem:[#allocation3 + %s1984_s9]]  ;;  %s1986_s10 = sadd.s32 107, %s4201_s14 }
 0x2f8   : > { %s5609_s6 = sld [smem:[#allocation3 + %s1986_s10]]  ;;  %s2058_s10 = sadd.s32 110, %s4201_s14 }
 0x2f9   : > { %vm2306_vm5 = vcmp.ge.f32.partialorder %v2304_v18, 0.0 }
 0x2fa   : > { %v3825_v12 = vpop.eup %3824 }
 0x2fb   : > { %v5179_v34 = vmul.f32 %v3825_v12, %v5055_v44  ;;  %v2324_v12 = vstv %s5226_s28  ;;  %s2418_s28 = sadd.s32 125, %s4201_s14 }
 0x2fc   : > { %s5306_s11 = sld [smem:[#allocation3 + %s2418_s28]] }
 0x2fd   : > { %v2120_v53 = vmul.f32 %v2118_v24, %v5179_v34  ;;  %v2144_v42 = vmul.f32 %v2142_v51, %v5179_v34  ;;  %v2168_v27 = vmul.f32 %v2166_v33, %v5179_v34  ;;  %v2192_v29 = vmul.f32 %v2190_v15, %v5179_v34 }
 0x2fe   : > { %v2216_v43 = vmul.f32 %v2214_v5, %v5179_v34  ;;  %v2240_v38 = vmul.f32 %v2238_v52, %v5179_v34  ;;  %v2284_v51 = vmul.f32 0.01, %v2280_v61  ;;  %v2264_v22 = vmul.f32 %v2262_v30, %v5179_v34 }
 0x2ff   : > { %v2122_v44 = vsel %vm959_vm15, %v2120_v53, 0.0  ;;  %v2146_v2 = vsel %vm959_vm15, %v2144_v42, 0.0  ;;  %v2170_v10 = vsel %vm959_vm15, %v2168_v27, 0.0  ;;  %v2194_v56 = vsel %vm959_vm15, %v2192_v29, 0.0 }
 0x300   : > { %v5199_v20 = vpop.eup %3826  ;;  %2123 = vadd.xlane.f32.xlu1 %v2122_v44  ;;  %v2218_v24 = vsel %vm959_vm15, %v2216_v43, 0.0  ;;  %v2325_v53 = vmul.f32 %v5132_v4, %v2324_v12  ;;  %v2327_v44 = vstv %s5239_s16  ;;  %v2348_v42 = vstv %s5241_s25  ;;  %s2442_s16 = sadd.s32 126, %s4201_s14  ;;  %s2464_s25 = sadd.s32 63, %s4201_s14 }
 0x301   : > { %v975_v31 = vsel %vm959_vm15, %v5199_v20, 0.0  ;;  %v2242_v32 = vsel %vm959_vm15, %v2240_v38, 0.0  ;;  %v2349_v15 = vmul.f32 %v5132_v4, %v2348_v42  ;;  %v2266_v54 = vsel %vm959_vm15, %v2264_v22, 0.0  ;;  %s5321_s1 = sld [smem:[#allocation3 + %s2442_s16]] }
 0x302   : > { %976 = vadd.xlane.f32.xlu0 %v975_v31  ;;  %v2328_v27 = vadd.f32 %v2327_v44, %v2325_v53  ;;  %6354 = sst [smem:[#allocation29_spill]] %s5306_s11  ;;  %v2423_v53 = vstv %s5306_s11  ;;  %s1746_s11 = sadd.s32 97, %s4201_s14 }
 0x303   : > { %v1211_v59 = vpop.xlane.xlu0 %1210  ;;  %v2352_v29 = vadd.f32 %v2351_v0, %v2349_v15  ;;  %s5323_s28 = sld [smem:[#allocation3 + %s2464_s25]]  ;;  %s1720_s25 = sadd.s32 32, %s4201_s14 }
 0x304   : > { %v1213_v41 = vsub.f32 %v5080_v37, %v1211_v59  ;;  %2147 = vadd.xlane.f32.xlu1 %v2146_v2  ;;  %v1712_v37 = vpop.xlane.xlu1 %1711  ;;  %v2286_v59 = vsel %vm2282_vm4, %v2280_v61, %v2284_v51  ;;  %v2308_v2 = vmul.f32 0.01, %v2304_v18  ;;  %vm2330_vm6 = vcmp.ge.f32.partialorder %v2328_v27, 0.0 }
 0x305   : > { %vm2354_vm7 = vcmp.ge.f32.partialorder %v2352_v29, 0.0  ;;  %v2420_v61 = vstv %s5290_s15 }
 0x306   : > { %v1216_v16 = vmul.f32 1.442695, %v1213_v41  ;;  %v2372_v41 = vstv %s5256_s21  ;;  %s2466_s21 = sadd.s32 127, %s4201_s14 }
 0x307   : > { %v2373_v5 = vmul.f32 %v5132_v4, %v2372_v41  ;;  %6356 = sst [smem:[#allocation31_spill]] %s5321_s1  ;;  %v2447_v15 = vstv %s5321_s1  ;;  %s1722_s1 = sadd.s32 96, %s4201_s14 }
 0x308   : > { %3828 = vpow2.f32 %v1216_v16  ;;  %2171 = vadd.xlane.f32.xlu1 %v2170_v10  ;;  %v2288_v16 = vmul.f32 %v2286_v59, %v5179_v34  ;;  %v2332_v10 = vmul.f32 0.01, %v2328_v27  ;;  %s5335_s16 = sld [smem:[#allocation3 + %s2466_s21]]  ;;  %s1744_s21 = sadd.s32 33, %s4201_s14 }
 0x309   : > { %3830 = vrcp.f32 %v1712_v37  ;;  %v2310_v37 = vsel %vm2306_vm5, %v2304_v18, %v2308_v2  ;;  %v2376_v43 = vadd.f32 %v2375_v40, %v2373_v5  ;;  %6357 = sst [smem:[#allocation32_spill]] %s5323_s28  ;;  %v2421_v18 = vmul.f32 %v5132_v4, %v2420_v61 }
 0x30a   : > { %v2290_v34 = vsel %vm959_vm15, %v2288_v16, 0.0  ;;  %v2334_v35 = vsel %vm2330_vm6, %v2328_v27, %v2332_v10  ;;  %s5374_s19 = sld [smem:[#allocation3 + %s1722_s1]] }
 0x30b   : > { %v2380_v30 = vmul.f32 0.01, %v2376_v43  ;;  %vm2378_vm8 = vcmp.ge.f32.partialorder %v2376_v43, 0.0  ;;  %v2424_v2 = vadd.f32 %v2423_v53, %v2421_v18 }
 0x30c   : > { %2195 = vadd.xlane.f32.xlu1 %v2194_v56  ;;  %v2356_v56 = vmul.f32 0.01, %v2352_v29 }
 0x30d   : > { %vm2426_vm10 = vcmp.ge.f32.partialorder %v2424_v2, 0.0 }
 0x30e   : > { %v2358_v38 = vsel %vm2354_vm7, %v2352_v29, %v2356_v56  ;;  %6358 = sst [smem:[#allocation33_spill]] %s5335_s16  ;;  %v2428_v29 = vmul.f32 0.01, %v2424_v2 }
 0x310   : > { %2219 = vadd.xlane.f32.xlu1 %v2218_v24 }
 0x312   : > { %v5273_v17 = vpop.eup %3828 }
 0x313   : > { %v1221_v33 = vsel %vm959_vm15, %v5273_v17, 0.0  ;;  %v3831_v31 = vpop.eup %3830 }
 0x314   : > { %2243 = vadd.xlane.f32.xlu1 %v2242_v32  ;;  %1222 = vadd.xlane.f32.xlu0 %v1221_v33  ;;  %v5295_v62 = vmul.f32 %v3831_v31, %v5076_v55  ;;  %v2396_v55 = vstv %s5271_s5  ;;  %v2444_v32 = vstv %s5308_s2  ;;  %v2382_v31 = vsel %vm2378_vm8, %v2376_v43, %v2380_v30  ;;  %s1768_s2 = sadd.s32 34, %s4201_s14  ;;  %s5378_s5 = sld [smem:[#allocation3 + %s1746_s11]] }
 0x315   : > { %v2397_v52 = vmul.f32 %v5132_v4, %v2396_v55  ;;  %v2445_v27 = vmul.f32 %v5132_v4, %v2444_v32  ;;  %v2430_v43 = vsel %vm2426_vm10, %v2424_v2, %v2428_v29  ;;  %s5376_s15 = sld [smem:[#allocation3 + %s1768_s2]]  ;;  %s1816_s11 = sadd.s32 36, %s4201_s14 }
 0x316   : > { %v2312_v49 = vmul.f32 %v2310_v37, %v5295_v62  ;;  %v2336_v24 = vmul.f32 %v2334_v35, %v5295_v62  ;;  %v2360_v22 = vmul.f32 %v2358_v38, %v5295_v62  ;;  %v2384_v37 = vmul.f32 %v2382_v31, %v5295_v62  ;;  %s5413_s0 = sld [smem:[#allocation3 + %s1816_s11]]  ;;  %s1890_s2 = sadd.s32 103, %s4201_s14 }
 0x317   : > { %v2400_v51 = vadd.f32 %v2399_v63, %v2397_v52  ;;  %v2448_v5 = vadd.f32 %v2447_v15, %v2445_v27  ;;  %v2432_v38 = vmul.f32 %v2430_v43, %v5295_v62  ;;  %s1912_s11 = sadd.s32 40, %s4201_s14 }
 0x318   : > { %2267 = vadd.xlane.f32.xlu1 %v2266_v54  ;;  %v2314_v9 = vsel %vm959_vm15, %v2312_v49, 0.0  ;;  %v2338_v33 = vsel %vm959_vm15, %v2336_v24, 0.0  ;;  %v2468_v54 = vstv %s5323_s28  ;;  %v2362_v16 = vsel %vm959_vm15, %v2360_v22, 0.0  ;;  %s5369_s28 = sld [smem:[#allocation3 + %s1744_s21]] }
 0x319   : > { %v2404_v59 = vmul.f32 0.01, %v2400_v51  ;;  %vm2402_vm9 = vcmp.ge.f32.partialorder %v2400_v51, 0.0  ;;  %v2471_v49 = vstv %s5335_s16  ;;  %v2386_v35 = vsel %vm959_vm15, %v2384_v37, 0.0  ;;  %s5367_s16 = sld [smem:[#allocation3 + %s1720_s25]]  ;;  %s1770_s25 = sadd.s32 98, %s4201_s14 }
 0x31a   : > { %v2452_v52 = vmul.f32 0.01, %v2448_v5  ;;  %vm2450_vm11 = vcmp.ge.f32.partialorder %v2448_v5, 0.0  ;;  %v2434_v18 = vsel %vm959_vm15, %v2432_v38, 0.0  ;;  %s5390_s1 = sld [smem:[#allocation3 + %s1770_s25]]  ;;  %v1751_v43 = vstv %s5378_s5 }
 0x31b   : > { %v2406_v10 = vsel %vm2402_vm9, %v2400_v51, %v2404_v59  ;;  %s5486_s25 = sld [smem:[#allocation3 + %s1866_s24]] }
 0x31c   : > { %2291 = vadd.xlane.f32.xlu1 %v2290_v34  ;;  %v2469_v34 = vmul.f32 %v5132_v4, %v2468_v54  ;;  %v2408_v56 = vmul.f32 %v2406_v10, %v5295_v62  ;;  %v2454_v30 = vsel %vm2450_vm11, %v2448_v5, %v2452_v52  ;;  %s5491_s21 = sld [smem:[#allocation3 + %s1890_s2]] }
 0x31d   : > { %s5510_s27 = sld [smem:[#allocation3 + %s1912_s11]] }
 0x31e   : > { %v2410_v24 = vsel %vm959_vm15, %v2408_v56, 0.0  ;;  %v1748_v10 = vstv %s5369_s28  ;;  %v1727_v56 = vstv %s5374_s19  ;;  %s5562_s24 = sld [smem:[#allocation3 + %s1938_s17]]  ;;  %s2032_s17 = sadd.s32 45, %s4201_s14 }
 0x31f   : > { %s5575_s11 = sld [smem:[#allocation3 + %s1960_s7]]  ;;  %s2008_s7 = sadd.s32 44, %s4201_s14 }
 0x320   : > { %2315 = vadd.xlane.f32.xlu1 %v2314_v9  ;;  %v2472_v9 = vadd.f32 %v2471_v49, %v2469_v34  ;;  %v1749_v34 = vmul.f32 %v5132_v4, %v1748_v10  ;;  %s5601_s2 = sld [smem:[#allocation3 + %s2008_s7]] }
 0x321   : > { %s5631_s9 = sld [smem:[#allocation3 + %s2032_s17]] }
 0x322   : > { %v2476_v51 = vmul.f32 0.01, %v2472_v9  ;;  %vm2474_vm12 = vcmp.ge.f32.partialorder %v2472_v9, 0.0  ;;  %s5682_s17 = sld [smem:[#allocation3 + %s2058_s10]] }
 0x323   : > { %6359 = sst [smem:[#allocation34_spill]] %s5510_s27  ;;  %s6419_s19 = sld [smem:[#allocation50_spill]] }
 0x324   : > { %2339 = vadd.xlane.f32.xlu1 %v2338_v33  ;;  %v2456_v33 = vmul.f32 %v2454_v30, %v5295_v62  ;;  %v2478_v22 = vsel %vm2474_vm12, %v2472_v9, %v2476_v51  ;;  %v1752_v51 = vadd.f32 %v1751_v43, %v1749_v34  ;;  %6363 = sst [smem:[#allocation21_spill]] %s5562_s24 }
 0x325   : > { %v2480_v59 = vmul.f32 %v2478_v22, %v5295_v62  ;;  %v5385_v62 = vld [vmem:[%s6279_s20 + $0x8] sm:$0xff]  ;;  %6365 = sst [smem:[#allocation19_spill]] %s5575_s11 }
 0x326   : > { %v2458_v31 = vsel %vm959_vm15, %v2456_v33, 0.0  ;;  %v2110_v27 = vmul.f32 %v5385_v62, %v2108_v3  ;;  %v2134_v37 = vmul.f32 %v5385_v62, %v2132_v57  ;;  %v2158_v3 = vmul.f32 %v5385_v62, %v2156_v60  ;;  %6368 = sst [smem:[#allocation22_spill]] %s5601_s2 }
 0x327   : > { %v2482_v2 = vsel %vm959_vm15, %v2480_v59, 0.0  ;;  %v2206_v9 = vmul.f32 %v5385_v62, %v2204_v23  ;;  %v1775_v23 = vstv %s5390_s1  ;;  %v2254_v22 = vmul.f32 %v5385_v62, %v2252_v1  ;;  %6372 = sst [smem:[#allocation20_spill]] %s5631_s9 }
 0x328   : > { %2363 = vadd.xlane.f32.xlu1 %v2362_v16  ;;  %v1724_v16 = vstv %s5367_s16  ;;  %v2113_v5 = vadd.f32 %v2111_v48, %v2110_v27  ;;  %v2137_v60 = vadd.f32 %v2135_v7, %v2134_v37  ;;  %v2182_v48 = vmul.f32 %v5385_v62, %v2180_v58  ;;  %s6425_s1 = sld [smem:[#allocation45_spill]] }
 0x329   : > { %v1725_v57 = vmul.f32 %v5132_v4, %v1724_v16  ;;  %v2230_v58 = vmul.f32 %v5385_v62, %v2228_v47  ;;  %v1796_v47 = vstv %s5398_s29  ;;  %v2209_v33 = vadd.f32 %v2207_v26, %v2206_v9 }
 0x32a   : > { %v2117_v38 = vmul.f32 0.01, %v2113_v5  ;;  %vm2115_vm13 = vcmp.ge.f32.partialorder %v2113_v5, 0.0  ;;  %vm2139_vm14 = vcmp.ge.f32.partialorder %v2137_v60, 0.0  ;;  %v1756_v26 = vmul.f32 0.01, %v1752_v51 }
 0x32b   : > { %v1728_v30 = vadd.f32 %v1727_v56, %v1725_v57  ;;  %v1820_v37 = vstv %s5413_s0  ;;  %vm1754_vm4 = vcmp.ge.f32.partialorder %v1752_v51, 0.0  ;;  %v1799_v57 = vstv %s5423_s4  ;;  %s3977_s0 = smov 16  }
 0x32c   : > { %2387 = vadd.xlane.f32.xlu1 %v2386_v35  ;;  %v1772_v35 = vstv %s5376_s15  ;;  %vm2211_vm6 = vcmp.ge.f32.partialorder %v2209_v33, 0.0 }
 0x32d   : > { %v1773_v7 = vmul.f32 %v5132_v4, %v1772_v35  ;;  %v1732_v27 = vmul.f32 0.01, %v1728_v30  ;;  %vm1730_vm3 = vcmp.ge.f32.partialorder %v1728_v30, 0.0 }
 0x32f   : > { %v1776_v59 = vadd.f32 %v1775_v23, %v1773_v7 }
 0x330   : > { %2411 = vadd.xlane.f32.xlu1 %v2410_v24  ;;  %v2161_v24 = vadd.f32 %v2159_v28, %v2158_v3  ;;  %v2141_v28 = vmul.f32 0.01, %v2137_v60 }
 0x331   : > { %vm1778_vm5 = vcmp.ge.f32.partialorder %v1776_v59, 0.0 }
 0x332   : > { %vm2163_vm0 = vcmp.ge.f32.partialorder %v2161_v24, 0.0 }
 0x334   : > { %2435 = vadd.xlane.f32.xlu1 %v2434_v18  ;;  %v2185_v18 = vadd.f32 %v2183_v6, %v2182_v48  ;;  %v5461_v6 = vadd.f32 %v2231_v39, %v2230_v58  ;;  %v1797_v39 = vmul.f32 %v5132_v4, %v1796_v47  ;;  %v2213_v48 = vmul.f32 0.01, %v2209_v33 }
 0x335   : > { %v1734_v58 = vsel %vm1730_vm3, %v1728_v30, %v1732_v27 }
 0x336   : > { %vm2187_vm1 = vcmp.ge.f32.partialorder %v2185_v18, 0.0  ;;  %v2189_v3 = vmul.f32 0.01, %v2185_v18  ;;  %v2215_v27 = vsel %vm2211_vm6, %v2209_v33, %v2213_v48  ;;  %vm2235_vm7 = vcmp.ge.f32.partialorder %v5461_v6, 0.0 }
 0x337   : > { %v6228_v33 = vstv %s5464_s26 }
 0x338   : > { %2459 = vadd.xlane.f32.xlu1 %v2458_v31  ;;  %v2165_v31 = vmul.f32 0.01, %v2161_v24 }
 0x33a   : > { %v2167_v34 = vsel %vm2163_vm0, %v2161_v24, %v2165_v31  ;;  %v2191_v24 = vsel %vm2187_vm1, %v2185_v18, %v2189_v3  ;;  %v2257_v3 = vadd.f32 %v2255_v46, %v2254_v22 }
 0x33c   : > { %2483 = vadd.xlane.f32.xlu1 %v2482_v2  ;;  %v2119_v2 = vsel %vm2115_vm13, %v2113_v5, %v2117_v38  ;;  %v1758_v38 = vsel %vm1754_vm4, %v1752_v51, %v1756_v26  ;;  %v6229_v51 = vstv %s5451_s13  ;;  %vm2259_vm10 = vcmp.ge.f32.partialorder %v2257_v3, 0.0 }
 0x35b   : > { %v1469_v29 = vpop.xlane.xlu0 %1468 }
 0x35c   : > { %3832 = vrcp.f32 %v1469_v29  ;;  %v2143_v29 = vsel %vm2139_vm14, %v2137_v60, %v2141_v28  ;;  %v1780_v60 = vmul.f32 0.01, %v1776_v59  ;;  %v1800_v28 = vadd.f32 %v1799_v57, %v1797_v39 }
 0x35d   : > { %v6227_v39 = vstv %s5466_s30 }
 0x35e   : > { %v1782_v18 = vsel %vm1778_vm5, %v1776_v59, %v1780_v60  ;;  %vm1802_vm8 = vcmp.ge.f32.partialorder %v1800_v28, 0.0  ;;  %v1845_v59 = vmul.f32 %v5132_v4, %v6229_v51  ;;  %v1916_v51 = vstv %s5510_s27  ;;  %s2034_s27 = sadd.s32 109, %s4201_s14 }
 0x35f   : > { %v974_v52 = vpop.xlane.xlu1 %973 }
 0x360   : > { %3834 = vrcp.f32 %v974_v52  ;;  %v1821_v52 = vmul.f32 %v5132_v4, %v1820_v37 }
 0x366   : > { %v3833_v1 = vpop.eup %3832 }
 0x367   : > { %v5476_v5 = vmul.f32 %v3833_v1, %v5087_v25  ;;  %v1823_v25 = vstv %s5442_s8  ;;  %v2237_v1 = vmul.f32 0.01, %v5461_v6  ;;  %s6427_s8 = sld [smem:[#allocation46_spill]] }
 0x368   : > { %v1824_v26 = vadd.f32 %v1823_v25, %v1821_v52  ;;  %v1804_v52 = vmul.f32 0.01, %v1800_v28 }
 0x369   : > { %v2121_v9 = vmul.f32 %v2119_v2, %v5476_v5  ;;  %v2145_v30 = vmul.f32 %v2143_v29, %v5476_v5  ;;  %v6226_v29 = vstv %s5473_s22  ;;  %v2169_v22 = vmul.f32 %v2167_v34, %v5476_v5 }
 0x36a   : > { %v3835_v7 = vpop.eup %3834  ;;  %vm1826_vm9 = vcmp.ge.f32.partialorder %v1824_v26, 0.0  ;;  %v2278_v34 = vmul.f32 %v5385_v62, %v2276_v19 }
 0x36b   : > { %v5495_v31 = vmul.f32 %v3835_v7, %v5092_v36  ;;  %v2125_v2 = vsel %vm959_vm15, %v2121_v9, 0.0  ;;  %v2149_v48 = vsel %vm959_vm15, %v2145_v30, 0.0  ;;  %v2239_v9 = vsel %vm2235_vm7, %v5461_v6, %v2237_v1 }
 0x36c   : > { %2126 = vadd.xlane.f32.xlu0 %v2125_v2  ;;  %v1869_v7 = vmul.f32 %v5132_v4, %v6227_v39  ;;  %v2261_v2 = vmul.f32 0.01, %v2257_v3  ;;  %v1848_v30 = vadd.f32 %v6228_v33, %v1845_v59  ;;  %v1893_v6 = vmul.f32 %v5132_v4, %v6226_v29 }
 0x36d   : > { %v1736_v36 = vmul.f32 %v1734_v58, %v5495_v31  ;;  %v1760_v46 = vmul.f32 %v1758_v38, %v5495_v31  ;;  %v1828_v58 = vmul.f32 0.01, %v1824_v26  ;;  %v1871_v38 = vstv %s5486_s25  ;;  %s6403_s25 = sld [smem:[#allocation18_spill]] }
 0x36e   : > { %v1895_v1 = vstv %s5491_s21  ;;  %v2173_v19 = vsel %vm959_vm15, %v2169_v22, 0.0  ;;  %v2193_v59 = vmul.f32 %v2191_v24, %v5476_v5  ;;  %v1806_v29 = vsel %vm1802_vm8, %v1800_v28, %v1804_v52  ;;  %s6405_s21 = sld [smem:[#allocation14_spill]] }
 0x36f   : > { %v1738_v60 = vsel %vm959_vm15, %v1736_v36, 0.0  ;;  %v1715_v36 = vpop.xlane.xlu0 %1714  ;;  %v1872_v39 = vadd.f32 %v1871_v38, %v1869_v7  ;;  %v2302_v33 = vmul.f32 %v5385_v62, %v2300_v21  ;;  %v2263_v22 = vsel %vm2259_vm10, %v2257_v3, %v2261_v2  ;;  %v1220_v21 = vpop.xlane.xlu1 %1219 }
 0x370   : > { %1739 = vadd.xlane.f32.xlu1 %v1738_v60  ;;  %2150 = vadd.xlane.f32.xlu0 %v2149_v48  ;;  %v1762_v60 = vsel %vm959_vm15, %v1760_v46, 0.0  ;;  %v1784_v48 = vmul.f32 %v1782_v18, %v5495_v31  ;;  %v1830_v46 = vsel %vm1826_vm9, %v1824_v26, %v1828_v58  ;;  %v2281_v18 = vadd.f32 %v2279_v50, %v2278_v34 }
 0x371   : > { %3836 = vrcp.f32 %v1715_v36  ;;  %vm1850_vm11 = vcmp.ge.f32.partialorder %v1848_v30, 0.0  ;;  %v1852_v24 = vmul.f32 0.01, %v1848_v30  ;;  %v1896_v28 = vadd.f32 %v1895_v1, %v1893_v6 }
 0x372   : > { %v1786_v26 = vsel %vm959_vm15, %v1784_v48, 0.0  ;;  %v2197_v3 = vsel %vm959_vm15, %v2193_v59, 0.0  ;;  %v1808_v50 = vmul.f32 %v1806_v29, %v5495_v31  ;;  %v2217_v52 = vmul.f32 %v2215_v27, %v5476_v5 }
 0x373   : > { %vm1874_vm12 = vcmp.ge.f32.partialorder %v1872_v39, 0.0  ;;  %v1876_v7 = vmul.f32 0.01, %v1872_v39  ;;  %v2305_v58 = vadd.f32 %v2303_v8, %v2302_v33  ;;  %v1917_v2 = vmul.f32 %v5132_v4, %v1916_v51 }
 0x374   : > { %1763 = vadd.xlane.f32.xlu1 %v1762_v60  ;;  %2174 = vadd.xlane.f32.xlu0 %v2173_v19  ;;  %vm2283_vm13 = vcmp.ge.f32.partialorder %v2281_v18, 0.0  ;;  %v2285_v34 = vmul.f32 0.01, %v2281_v18  ;;  %v1919_v29 = vstv %s5533_s23  ;;  %v2326_v27 = vmul.f32 %v5385_v62, %v2324_v12  ;;  %s2010_s23 = sadd.s32 108, %s4201_s14  ;;  %s6420_s15 = scalar_lea.vmem %s6419_s19, %s6405_s21 }
 0x375   : > { %3838 = vrcp.f32 %v1220_v21  ;;  %vm1898_vm14 = vcmp.ge.f32.partialorder %v1896_v28, 0.0  ;;  %v1900_v6 = vmul.f32 0.01, %v1896_v28  ;;  %v1940_v8 = vstv %s5541_s12  ;;  %s5625_s7 = sld [smem:[#allocation3 + %s2010_s23]]  ;;  %s2056_s23 = sadd.s32 46, %s4201_s14 }
 0x376   : > { %v1810_v33 = vsel %vm959_vm15, %v1808_v50, 0.0  ;;  %v2221_v36 = vsel %vm959_vm15, %v2217_v52, 0.0  ;;  %v1832_v60 = vmul.f32 %v1830_v46, %v5495_v31  ;;  %v2241_v12 = vmul.f32 %v2239_v9, %v5476_v5  ;;  %s5656_s12 = sld [smem:[#allocation3 + %s2056_s23]]  ;;  %s6426_s29 = scalar_lea.vmem %s6425_s1, %s6405_s21 }
 0x377   : > { %v1854_v19 = vsel %vm1850_vm11, %v1848_v30, %v1852_v24  ;;  %v2309_v48 = vmul.f32 0.01, %v2305_v58  ;;  %v1920_v59 = vadd.f32 %v1919_v29, %v1917_v2  ;;  %v2350_v21 = vmul.f32 %v5385_v62, %v2348_v42 }
 0x378   : > { %1787 = vadd.xlane.f32.xlu1 %v1786_v26  ;;  %2198 = vadd.xlane.f32.xlu0 %v2197_v3  ;;  %v1878_v26 = vsel %vm1874_vm12, %v1872_v39, %v1876_v7  ;;  %vm2307_vm0 = vcmp.ge.f32.partialorder %v2305_v58, 0.0  ;;  %v2329_v46 = vadd.f32 %v2327_v44, %v2326_v27  ;;  %v2287_v9 = vsel %vm2283_vm13, %v2281_v18, %v2285_v34 }
 0x379   : > { %v1902_v3 = vsel %vm1898_vm14, %v1896_v28, %v1900_v6  ;;  %v1941_v30 = vmul.f32 %v5132_v4, %v1940_v8  ;;  %v1943_v24 = vstv %s5562_s24  ;;  %v1834_v42 = vsel %vm959_vm15, %v1832_v60, 0.0  ;;  %s6418_s24 = sld [smem:[#allocation17_spill]] }
 0x37a   : > { %v2245_v44 = vsel %vm959_vm15, %v2241_v12, 0.0  ;;  %v1856_v39 = vmul.f32 %v1854_v19, %v5495_v31  ;;  %v2265_v18 = vmul.f32 %v2263_v22, %v5476_v5  ;;  %v2311_v50 = vsel %vm2307_vm0, %v2305_v58, %v2309_v48 }
 0x37b   : > { %v3837_v28 = vpop.eup %3836  ;;  %v1924_v52 = vmul.f32 0.01, %v1920_v59  ;;  %v2353_v7 = vadd.f32 %v2351_v0, %v2350_v21  ;;  %v1964_v2 = vstv %s5575_s11  ;;  %vm1922_vm1 = vcmp.ge.f32.partialorder %v1920_v59, 0.0  ;;  %s5654_s11 = sld [smem:[#allocation3 + %s2034_s27]]  ;;  %s2082_s27 = sadd.s32 111, %s4201_s14 }
 0x37c   : > { %1811 = vadd.xlane.f32.xlu1 %v1810_v33  ;;  %2222 = vadd.xlane.f32.xlu0 %v2221_v36  ;;  %v2333_v34 = vmul.f32 0.01, %v2329_v46  ;;  %v1967_v27 = vstv %s5581_s18  ;;  %v2374_v22 = vmul.f32 %v5385_v62, %v2372_v41  ;;  %v1880_v6 = vmul.f32 %v1878_v26, %v5495_v31  ;;  %s6406_s18 = sld [smem:[#allocation42_spill]] }
 0x37d   : > { %vm2331_vm3 = vcmp.ge.f32.partialorder %v2329_v46, 0.0  ;;  %v1944_v58 = vadd.f32 %v1943_v24, %v1941_v30  ;;  %v1988_v33 = vstv %s5584_s3  ;;  %v5634_v0 = vmul.f32 %v3837_v28, %v5096_v45 }
 0x37e   : > { %v1858_v36 = vsel %vm959_vm15, %v1856_v39, 0.0  ;;  %v2269_v41 = vsel %vm959_vm15, %v2265_v18, 0.0  ;;  %v2289_v60 = vmul.f32 %v2287_v9, %v5476_v5  ;;  %v1926_v19 = vsel %vm1922_vm1, %v1920_v59, %v1924_v52 }
 0x37f   : > { %v3839_v12 = vpop.eup %3838  ;;  %vm2355_vm4 = vcmp.ge.f32.partialorder %v2353_v7, 0.0  ;;  %v2357_v48 = vmul.f32 0.01, %v2353_v7  ;;  %v1965_v45 = vmul.f32 %v5132_v4, %v1964_v2  ;;  %v2335_v21 = vsel %vm2331_vm3, %v2329_v46, %v2333_v34 }
 0x380   : > { %1835 = vadd.xlane.f32.xlu1 %v1834_v42  ;;  %2246 = vadd.xlane.f32.xlu0 %v2245_v44  ;;  %v2377_v26 = vadd.f32 %v2375_v40, %v2374_v22  ;;  %v1989_v5 = vmul.f32 %v5132_v4, %v1988_v33  ;;  %v2012_v9 = vstv %s5601_s2  ;;  %v1882_v30 = vsel %vm959_vm15, %v1880_v6, 0.0  ;;  %s2080_s2 = sadd.s32 47, %s4201_s14  ;;  %s6414_s14 = sld [smem:[#allocation44_spill]] }
 0x381   : > { %vm1946_vm5 = vcmp.ge.f32.partialorder %v1944_v58, 0.0  ;;  %v1948_v59 = vmul.f32 0.01, %v1944_v58  ;;  %v1991_v42 = vstv %s5609_s6  ;;  %v5659_v40 = vmul.f32 %v3839_v12, %v5100_v13  ;;  %s5700_s10 = sld [smem:[#allocation3 + %s2080_s2]] }
 0x382   : > { %v2293_v46 = vsel %vm959_vm15, %v2289_v60, 0.0  ;;  %v1904_v44 = vmul.f32 %v1902_v3, %v5495_v31  ;;  %v2313_v39 = vmul.f32 %v2311_v50, %v5634_v0  ;;  %v1968_v18 = vadd.f32 %v1967_v27, %v1965_v45  ;;  %s5718_s2 = sld [smem:[#allocation3 + %s2082_s27]]  ;;  %s6407_s3 = scalar_lea.vmem %s6406_s18, %s6405_s21 }
 0x383   : > { %v2398_v28 = vmul.f32 %v5385_v62, %v2396_v55  ;;  %v2013_v13 = vmul.f32 %v5132_v4, %v2012_v9  ;;  %v2381_v52 = vmul.f32 0.01, %v2377_v26  ;;  %v1992_v34 = vadd.f32 %v1991_v42, %v1989_v5 }
 0x384   : > { %1859 = vadd.xlane.f32.xlu1 %v1858_v36  ;;  %2270 = vadd.xlane.f32.xlu0 %v2269_v41  ;;  %v2015_v22 = vstv %s5625_s7  ;;  %v2422_v31 = vmul.f32 %v5385_v62, %v2420_v61  ;;  %v1950_v3 = vsel %vm1946_vm5, %v1944_v58, %v1948_v59  ;;  %v2359_v50 = vsel %vm2355_vm4, %v2353_v7, %v2357_v48 }
 0x385   : > { %vm2379_vm6 = vcmp.ge.f32.partialorder %v2377_v26, 0.0  ;;  %v2036_v6 = vstv %s5631_s9  ;;  %v1906_v55 = vsel %vm959_vm15, %v1904_v44, 0.0  ;;  %v2317_v36 = vsel %vm959_vm15, %v2313_v39, 0.0 }
 0x386   : > { %v1928_v41 = vmul.f32 %v1926_v19, %v5659_v40  ;;  %v2337_v61 = vmul.f32 %v2335_v21, %v5634_v0  ;;  %vm1970_vm7 = vcmp.ge.f32.partialorder %v1968_v18, 0.0  ;;  %v1972_v7 = vmul.f32 0.01, %v1968_v18 }
 0x387   : > { %v2401_v58 = vadd.f32 %v2399_v63, %v2398_v28  ;;  %v2016_v60 = vadd.f32 %v2015_v22, %v2013_v13  ;;  %v2383_v48 = vsel %vm2379_vm6, %v2377_v26, %v2381_v52  ;;  %v1996_v45 = vmul.f32 0.01, %v1992_v34 }
 0x388   : > { %1883 = vadd.xlane.f32.xlu1 %v1882_v30  ;;  %2294 = vadd.xlane.f32.xlu0 %v2293_v46  ;;  %v2425_v5 = vadd.f32 %v2423_v53, %v2422_v31  ;;  %v2037_v19 = vmul.f32 %v5132_v4, %v2036_v6  ;;  %vm1994_vm8 = vcmp.ge.f32.partialorder %v1992_v34, 0.0  ;;  %v2039_v21 = vstv %s5654_s11 }
 0x389   : > { %v2446_v30 = vmul.f32 %v5385_v62, %v2444_v32  ;;  %v2060_v59 = vstv %s5656_s12  ;;  %v1930_v63 = vsel %vm959_vm15, %v1928_v41, 0.0  ;;  %v2341_v26 = vsel %vm959_vm15, %v2337_v61, 0.0 }
 0x38a   : > { %v1952_v53 = vmul.f32 %v1950_v3, %v5659_v40  ;;  %v2361_v46 = vmul.f32 %v2359_v50, %v5634_v0  ;;  %v1974_v4 = vsel %vm1970_vm7, %v1968_v18, %v1972_v7  ;;  %vm2403_vm9 = vcmp.ge.f32.partialorder %v2401_v58, 0.0  ;;  %v3851_v18 = vld [vmem:[%s6279_s20] sm:$0xff] }
 0x38b   : > { %v2405_v32 = vmul.f32 0.01, %v2401_v58  ;;  %v2020_v44 = vmul.f32 0.01, %v2016_v60  ;;  %v1998_v28 = vsel %vm1994_vm8, %v1992_v34, %v1996_v45  ;;  %vm2018_vm10 = vcmp.ge.f32.partialorder %v2016_v60, 0.0 }
 0x38c   : > { %1907 = vadd.xlane.f32.xlu1 %v1906_v55  ;;  %2318 = vadd.xlane.f32.xlu0 %v2317_v36  ;;  %v2429_v13 = vmul.f32 0.01, %v2425_v5  ;;  %v2040_v52 = vadd.f32 %v2039_v21, %v2037_v19  ;;  %vm2427_vm11 = vcmp.ge.f32.partialorder %v2425_v5, 0.0  ;;  %v2449_v31 = vadd.f32 %v2447_v15, %v2446_v30 }
 0x38d   : > { %v5693_v12 = vpop.xlane.xlu1 %2123  ;;  %v2061_v3 = vmul.f32 %v3851_v18, %v2060_v59  ;;  %v2063_v50 = vstv %s5682_s17  ;;  %v1954_v34 = vsel %vm959_vm15, %v1952_v53, 0.0  ;;  %v2365_v36 = vsel %vm959_vm15, %v2361_v46, 0.0  ;;  %s6412_s17 = sld [smem:[#allocation43_spill]] }
 0x38e   : > { %v1976_v41 = vmul.f32 %v1974_v4, %v5659_v40  ;;  %v2385_v61 = vmul.f32 %v2383_v48, %v5634_v0  ;;  %v2407_v15 = vsel %vm2403_vm9, %v2401_v58, %v2405_v32  ;;  %v2022_v7 = vsel %vm2018_vm10, %v2016_v60, %v2020_v44 }
 0x38f   : > { %v977_v55 = vpop.xlane.xlu0 %976  ;;  %v2470_v45 = vmul.f32 %v5385_v62, %v2468_v54  ;;  %v2431_v30 = vsel %vm2427_vm11, %v2425_v5, %v2429_v13  ;;  %vm2042_vm12 = vcmp.ge.f32.partialorder %v2040_v52, 0.0  ;;  %v2084_v48 = vstv %s5700_s10 }
 0x390   : > { %1931 = vadd.xlane.f32.xlu1 %v1930_v63  ;;  %2342 = vadd.xlane.f32.xlu0 %v2341_v26  ;;  %v2044_v63 = vmul.f32 0.01, %v2040_v52  ;;  %3840 = vrcp.f32 %v977_v55  ;;  %vm2451_vm13 = vcmp.ge.f32.partialorder %v2449_v31, 0.0  ;;  %v2453_v26 = vmul.f32 0.01, %v2449_v31 }
 0x391   : > { %v5713_v39 = vpop.xlane.xlu1 %2147  ;;  %v2064_v58 = vadd.f32 %v2063_v50, %v2061_v3  ;;  %v1978_v60 = vsel %vm959_vm15, %v1976_v41, 0.0  ;;  %v2389_v54 = vsel %vm959_vm15, %v2385_v61, 0.0  ;;  %v2000_v53 = vmul.f32 %v1998_v28, %v5659_v40 }
 0x392   : > { %v2409_v46 = vmul.f32 %v2407_v15, %v5634_v0  ;;  %v2473_v5 = vadd.f32 %v2471_v49, %v2470_v45  ;;  %v2085_v4 = vmul.f32 %v3851_v18, %v2084_v48  ;;  %v1726_v32 = vmul.f32 %v5385_v62, %v1724_v16 }
 0x393   : > { %v2087_v13 = vstv %s5718_s2  ;;  %v2046_v3 = vsel %vm2042_vm12, %v2040_v52, %v2044_v63  ;;  %v2455_v28 = vsel %vm2451_vm13, %v2449_v31, %v2453_v26  ;;  %vm2066_vm14 = vcmp.ge.f32.partialorder %v2064_v58, 0.0  ;;  %s6413_s10 = scalar_lea.vmem %s6412_s17, %s6405_s21  ;;  %s6415_s2 = scalar_lea.vmem %s6414_s14, %s6405_s21 }
 0x394   : > { %1955 = vadd.xlane.f32.xlu1 %v1954_v34  ;;  %2366 = vadd.xlane.f32.xlu0 %v2365_v36  ;;  %v2068_v55 = vmul.f32 0.01, %v2064_v58  ;;  %v2002_v34 = vsel %vm959_vm15, %v2000_v53, 0.0  ;;  %v2413_v49 = vsel %vm959_vm15, %v2409_v46, 0.0  ;;  %v2024_v18 = vmul.f32 %v2022_v7, %v5659_v40 }
 0x395   : > { %v5737_v19 = vpop.xlane.xlu1 %2171  ;;  %v2433_v36 = vmul.f32 %v2431_v30, %v5634_v0  ;;  %v2477_v16 = vmul.f32 0.01, %v2473_v5  ;;  %v2088_v41 = vadd.f32 %v2087_v13, %v2085_v4  ;;  %v1729_v61 = vadd.f32 %v1727_v56, %v1726_v32 }
 0x396   : > { %v1750_v52 = vmul.f32 %v5385_v62, %v1748_v10  ;;  %vm2475_vm0 = vcmp.ge.f32.partialorder %v2473_v5, 0.0  ;;  %v2457_v15 = vmul.f32 %v2455_v28, %v5634_v0  ;;  %v2070_v45 = vsel %vm2066_vm14, %v2064_v58, %v2068_v55 }
 0x397   : > { %v2026_v7 = vsel %vm959_vm15, %v2024_v18, 0.0  ;;  %v2437_v30 = vsel %vm959_vm15, %v2433_v36, 0.0  ;;  %v2048_v63 = vmul.f32 %v2046_v3, %v5659_v40  ;;  %v1774_v56 = vmul.f32 %v5385_v62, %v1772_v35 }
 0x398   : > { %1979 = vadd.xlane.f32.xlu1 %v1978_v60  ;;  %2390 = vadd.xlane.f32.xlu0 %v2389_v54  ;;  %v2479_v10 = vsel %vm2475_vm0, %v2473_v5, %v2477_v16  ;;  %v2092_v60 = vmul.f32 0.01, %v2088_v41  ;;  %v1733_v54 = vmul.f32 0.01, %v1729_v61  ;;  %v1753_v53 = vadd.f32 %v1751_v43, %v1750_v52 }
 0x399   : > { %v5754_v44 = vpop.xlane.xlu1 %2195  ;;  %vm2090_vm1 = vcmp.ge.f32.partialorder %v2088_v41, 0.0  ;;  %vm1731_vm3 = vcmp.ge.f32.partialorder %v1729_v61, 0.0  ;;  %v2461_v46 = vsel %vm959_vm15, %v2457_v15, 0.0  ;;  %v1798_v4 = vmul.f32 %v5385_v62, %v1796_v47 }
 0x39a   : > { %v3841_v26 = vpop.eup %3840  ;;  %v2050_v32 = vsel %vm959_vm15, %v2048_v63, 0.0  ;;  %v2072_v5 = vmul.f32 %v2070_v45, %v5659_v40  ;;  %v2481_v3 = vmul.f32 %v2479_v10, %v5634_v0  ;;  %v2094_v43 = vsel %vm2090_vm1, %v2088_v41, %v2092_v60 }
 0x39b   : > { %v5787_v35 = vmul.f32 %v3841_v26, %v5199_v20  ;;  %v1735_v28 = vsel %vm1731_vm3, %v1729_v61, %v1733_v54  ;;  %v1757_v55 = vmul.f32 0.01, %v1753_v53  ;;  %vm1755_vm4 = vcmp.ge.f32.partialorder %v1753_v53, 0.0 }
 0x39c   : > { %2003 = vadd.xlane.f32.xlu1 %v2002_v34  ;;  %2414 = vadd.xlane.f32.xlu0 %v2413_v49  ;;  %v1777_v34 = vadd.f32 %v1775_v23, %v1774_v56  ;;  %v2074_v20 = vsel %vm959_vm15, %v2072_v5, 0.0  ;;  %v2485_v47 = vsel %vm959_vm15, %v2481_v3, 0.0  ;;  %v2096_v18 = vmul.f32 %v2094_v43, %v5659_v40 }
 0x39d   : > { %v5769_v31 = vpop.xlane.xlu1 %2219  ;;  %v1737_v0 = vmul.f32 %v1735_v28, %v5787_v35  ;;  %v1759_v36 = vsel %vm1755_vm4, %v1753_v53, %v1757_v55  ;;  %v1801_v41 = vadd.f32 %v1799_v57, %v1798_v4  ;;  %v1822_v23 = vmul.f32 %v5385_v62, %v1820_v37 }
 0x39e   : > { %v1781_v16 = vmul.f32 0.01, %v1777_v34  ;;  %vm1779_vm5 = vcmp.ge.f32.partialorder %v1777_v34, 0.0  ;;  %v2098_v52 = vsel %vm959_vm15, %v2096_v18, 0.0  ;;  %v1761_v15 = vmul.f32 %v1759_v36, %v5787_v35 }
 0x39f   : > { %v1741_v40 = vsel %vm959_vm15, %v1737_v0, 0.0  ;;  %v1825_v57 = vadd.f32 %v1823_v25, %v1822_v23  ;;  %vm1803_vm6 = vcmp.ge.f32.partialorder %v1801_v41, 0.0  ;;  %v6382_v54 = vstv %s5464_s26  ;;  %s6396_s26 = sld [smem:[#allocation15_spill]] }
 0x3a0   : > { %2027 = vadd.xlane.f32.xlu1 %v2026_v7  ;;  %2438 = vadd.xlane.f32.xlu0 %v2437_v30  ;;  %v1783_v45 = vsel %vm1779_vm5, %v1777_v34, %v1781_v16  ;;  %v1805_v7 = vmul.f32 0.01, %v1801_v41  ;;  %v6381_v30 = vstv %s5451_s13  ;;  %v1765_v56 = vsel %vm959_vm15, %v1761_v15, 0.0  ;;  %s3978_s13 = smov 32  }
 0x3a1   : > { %v5780_v58 = vpop.xlane.xlu1 %2243  ;;  %v1846_v37 = vmul.f32 %v5385_v62, %v6381_v30  ;;  %v1785_v26 = vmul.f32 %v1783_v45, %v5787_v35  ;;  %v1829_v60 = vmul.f32 0.01, %v1825_v57  ;;  %vm1827_vm7 = vcmp.ge.f32.partialorder %v1825_v57, 0.0 }
 0x3a2   : > { %v1807_v10 = vsel %vm1803_vm6, %v1801_v41, %v1805_v7  ;;  %v6385_v43 = vstv %s5473_s22  ;;  %v1918_v23 = vmul.f32 %v5385_v62, %v1916_v51  ;;  %vm2488_vm9 = vcmask 7168   ;;  %s3979_s22 = smov 96  }
 0x3a3   : > { %v1849_v53 = vadd.f32 %v6382_v54, %v1846_v37  ;;  %v1789_v5 = vsel %vm959_vm15, %v1785_v26, 0.0  ;;  %v1809_v3 = vmul.f32 %v1807_v10, %v5787_v35  ;;  %v1894_v28 = vmul.f32 %v5385_v62, %v6385_v43 }
 0x3a4   : > { %2051 = vadd.xlane.f32.xlu1 %v2050_v32  ;;  %2462 = vadd.xlane.f32.xlu0 %v2461_v46  ;;  %v6383_v46 = vstv %s5466_s30  ;;  %v1223_v32 = vpop.xlane.xlu0 %1222  ;;  %v1831_v55 = vsel %vm1827_vm7, %v1825_v57, %v1829_v60  ;;  %vm2491_vm11 = vcmask 15360   ;;  %vm2494_vm12 = vcmask 23552   ;;  %s6400_s30 = sld [smem:[#allocation16_spill]] }
 0x3a5   : > { %v5794_v49 = vpop.xlane.xlu1 %2267  ;;  %v1870_v25 = vmul.f32 %v5385_v62, %v6383_v46  ;;  %v1853_v34 = vmul.f32 0.01, %v1849_v53  ;;  %vm1851_vm8 = vcmp.ge.f32.partialorder %v1849_v53, 0.0  ;;  %3842 = vrcp.f32 %v1223_v32 }
 0x3a6   : > { %v1813_v18 = vsel %vm959_vm15, %v1809_v3, 0.0  ;;  %v1833_v0 = vmul.f32 %v1831_v55, %v5787_v35  ;;  %v1897_v36 = vadd.f32 %v1895_v1, %v1894_v28  ;;  %vm2497_vm13 = vcmask 31744  }
 0x3a7   : > { %v1855_v16 = vsel %vm1851_vm8, %v1849_v53, %v1853_v34  ;;  %v2532_v15 = vsel %vm2488_vm9, %v5693_v12, %v5713_v39  ;;  %v1921_v51 = vadd.f32 %v1919_v29, %v1918_v23  ;;  %v1942_v7 = vmul.f32 %v5385_v62, %v1940_v8 }
 0x3a8   : > { %2075 = vadd.xlane.f32.xlu1 %v2074_v20  ;;  %2486 = vadd.xlane.f32.xlu0 %v2485_v47  ;;  %v1873_v20 = vadd.f32 %v1871_v38, %v1870_v25  ;;  %v1837_v38 = vsel %vm959_vm15, %v1833_v0, 0.0  ;;  %v1901_v1 = vmul.f32 0.01, %v1897_v36  ;;  %v2534_v57 = vsel %vm2491_vm11, %v2532_v15, %v5737_v19 }
 0x3a9   : > { %v5805_v61 = vpop.xlane.xlu1 %2291  ;;  %vm2500_vm14 = vcmask 39936   ;;  %vm1899_vm0 = vcmp.ge.f32.partialorder %v1897_v36, 0.0  ;;  %v2536_v37 = vsel %vm2494_vm12, %v2534_v57, %v5754_v44  ;;  %vm2503_vm1 = vcmask 48128  }
 0x3aa   : > { %v1877_v41 = vmul.f32 0.01, %v1873_v20  ;;  %vm1875_vm10 = vcmp.ge.f32.partialorder %v1873_v20, 0.0  ;;  %v1966_v12 = vmul.f32 %v5385_v62, %v1964_v2  ;;  %v2538_v29 = vsel %vm2497_vm13, %v2536_v37, %v5769_v31 }
 0x3ab   : > { %vm6240_vm3 = vcmask 56320   ;;  %v1903_v44 = vsel %vm1899_vm0, %v1897_v36, %v1901_v1  ;;  %v1925_v26 = vmul.f32 0.01, %v1921_v51  ;;  %v1945_v10 = vadd.f32 %v1943_v24, %v1942_v7  ;;  %v3852_v7 = vld [vmem:[%s6279_s20 + $0x8] sm:$0xff] }
 0x3ac   : > { %2099 = vadd.xlane.f32.xlu1 %v2098_v52  ;;  %1742 = vadd.xlane.f32.xlu0 %v1741_v40  ;;  %v1857_v40 = vmul.f32 %v1855_v16, %v5787_v35  ;;  %v1879_v45 = vsel %vm1875_vm10, %v1873_v20, %v1877_v41  ;;  %vm6238_vm4 = vcmask 72704   ;;  %vm1923_vm5 = vcmp.ge.f32.partialorder %v1921_v51, 0.0 }
 0x3ad   : > { %v5815_v63 = vpop.xlane.xlu1 %2315  ;;  %v1881_v39 = vmul.f32 %v1879_v45, %v5787_v35  ;;  %v1990_v60 = vmul.f32 %v5385_v62, %v1988_v33  ;;  %vm2514_vm6 = vcmask 80896   ;;  %vm2517_vm7 = vcmask 89088  }
 0x3ae   : > { %v1861_v8 = vsel %vm959_vm15, %v1857_v40, 0.0  ;;  %v1905_v46 = vmul.f32 %v1903_v44, %v5787_v35  ;;  %vm2520_vm8 = vcmask 97280   ;;  %v1949_v25 = vmul.f32 0.01, %v1945_v10 }
 0x3af   : > { %v3843_v19 = vpop.eup %3842  ;;  %vm2523_vm10 = vcmask 105472   ;;  %vm1947_vm0 = vcmp.ge.f32.partialorder %v1945_v10, 0.0  ;;  %v1993_v55 = vadd.f32 %v1991_v42, %v1990_v60  ;;  %v2038_v16 = vmul.f32 %v5385_v62, %v2036_v6 }
 0x3b0   : > { %1766 = vadd.xlane.f32.xlu0 %v1765_v56  ;;  %v2540_v56 = vsel %vm2500_vm14, %v2538_v29, %v5780_v58  ;;  %v1969_v58 = vadd.f32 %v1967_v27, %v1966_v12  ;;  %v5875_v53 = vmul.f32 %v3843_v19, %v5273_v17  ;;  %v1951_v43 = vsel %vm1947_vm0, %v1945_v10, %v1949_v25 }
 0x3b1   : > { %v5824_v4 = vpop.xlane.xlu1 %2339  ;;  %v2542_v2 = vsel %vm2503_vm1, %v2540_v56, %v5794_v49  ;;  %v1885_v49 = vsel %vm959_vm15, %v1881_v39, 0.0  ;;  %v1997_v36 = vmul.f32 0.01, %v1993_v55  ;;  %vm1995_vm0 = vcmp.ge.f32.partialorder %v1993_v55, 0.0 }
 0x3b2   : > { %v2544_v54 = vsel %vm6240_vm3, %v2542_v2, %v5805_v61  ;;  %v1927_v61 = vsel %vm1923_vm5, %v1921_v51, %v1925_v26  ;;  %v1973_v28 = vmul.f32 0.01, %v1969_v58  ;;  %vm1971_vm5 = vcmp.ge.f32.partialorder %v1969_v58, 0.0 }
 0x3b3   : > { %v2546_v24 = vsel %vm959_vm15, %v2544_v54, %v5815_v63  ;;  %v2014_v63 = vmul.f32 %v5385_v62, %v2012_v9  ;;  %v2041_v40 = vadd.f32 %v2039_v21, %v2038_v16  ;;  %v2062_v1 = vmul.f32 %v5385_v62, %v2060_v59 }
 0x3b4   : > { %1790 = vadd.xlane.f32.xlu0 %v1789_v5  ;;  %v2548_v33 = vsel %vm6238_vm4, %v2546_v24, %v5824_v4  ;;  %v1909_v4 = vsel %vm959_vm15, %v1905_v46, 0.0  ;;  %vm6239_vm4 = vcmask 121856   ;;  %v1929_v5 = vmul.f32 %v1927_v61, %v5875_v53 }
 0x3b5   : > { %v2364_v47 = vpop.xlane.xlu1 %2363  ;;  %v1975_v0 = vsel %vm1971_vm5, %v1969_v58, %v1973_v28  ;;  %v2017_v42 = vadd.f32 %v2015_v22, %v2014_v63  ;;  %v2045_v45 = vmul.f32 0.01, %v2041_v40  ;;  %v2065_v51 = vadd.f32 %v2063_v50, %v2062_v1 }
 0x3b6   : > { %v2550_v27 = vsel %vm2514_vm6, %v2548_v33, %v2364_v47  ;;  %v1933_v47 = vsel %vm959_vm15, %v1929_v5, 0.0  ;;  %v1977_v23 = vmul.f32 %v1975_v0, %v5875_v53  ;;  %v2086_v21 = vmul.f32 %v3852_v7, %v2084_v48 }
 0x3b7   : > { %vm2019_vm5 = vcmp.ge.f32.partialorder %v2017_v42, 0.0 }
 0x3b8   : > { %1814 = vadd.xlane.f32.xlu0 %v1813_v18  ;;  %v1953_v18 = vmul.f32 %v1951_v43, %v5875_v53  ;;  %v1981_v22 = vsel %vm959_vm15, %v1977_v23, 0.0  ;;  %v2089_v37 = vadd.f32 %v2087_v13, %v2086_v21 }
 0x3b9   : > { %v2388_v52 = vpop.xlane.xlu1 %2387 }
 0x3ba   : > { %v2552_v32 = vsel %vm2517_vm7, %v2550_v27, %v2388_v52  ;;  %v1957_v41 = vsel %vm959_vm15, %v1953_v18, 0.0  ;;  %v1999_v52 = vsel %vm1995_vm0, %v1993_v55, %v1997_v36  ;;  %vm2043_vm0 = vcmp.ge.f32.partialorder %v2041_v40, 0.0 }
 0x3bb   : > { %v2001_v6 = vmul.f32 %v1999_v52, %v5875_v53  ;;  %v2047_v57 = vsel %vm2043_vm0, %v2041_v40, %v2045_v45  ;;  %vm6393_vm0 = vcmask 121856  }
 0x3bc   : > { %1838 = vadd.xlane.f32.xlu0 %v1837_v38  ;;  %v2021_v38 = vmul.f32 0.01, %v2017_v42  ;;  %v2049_v50 = vmul.f32 %v2047_v57, %v5875_v53 }
 0x3bd   : > { %v2412_v30 = vpop.xlane.xlu1 %2411  ;;  %v2005_v62 = vsel %vm959_vm15, %v2001_v6, 0.0 }
 0x3be   : > { %v2554_v35 = vsel %vm2520_vm8, %v2552_v32, %v2412_v30  ;;  %v2023_v15 = vsel %vm2019_vm5, %v2017_v42, %v2021_v38  ;;  %v2069_v30 = vmul.f32 0.01, %v2065_v51  ;;  %vm2067_vm5 = vcmp.ge.f32.partialorder %v2065_v51, 0.0 }
 0x3bf   : > { %v2025_v59 = vmul.f32 %v2023_v15, %v5875_v53  ;;  %v2053_v48 = vsel %vm959_vm15, %v2049_v50, 0.0 }
 0x3c0   : > { %1862 = vadd.xlane.f32.xlu0 %v1861_v8  ;;  %v2071_v29 = vsel %vm2067_vm5, %v2065_v51, %v2069_v30  ;;  %v2093_v8 = vmul.f32 0.01, %v2089_v37 }
 0x3c1   : > { %v2436_v31 = vpop.xlane.xlu1 %2435  ;;  %v2029_v12 = vsel %vm959_vm15, %v2025_v59, 0.0  ;;  %v2073_v39 = vmul.f32 %v2071_v29, %v5875_v53 }
 0x3c2   : > { %v2556_v3 = vsel %vm2523_vm10, %v2554_v35, %v2436_v31 }
 0x3c3   : > { %v2077_v56 = vsel %vm959_vm15, %v2073_v39, 0.0 }
 0x3c4   : > { %1886 = vadd.xlane.f32.xlu0 %v1885_v49 }
 0x3c5   : > { %v2460_v17 = vpop.xlane.xlu1 %2459 }
 0x3c6   : > { %v2558_v34 = vsel %vm2526_vm2, %v2556_v3, %v2460_v17 }
 0x3c8   : > { %1910 = vadd.xlane.f32.xlu0 %v1909_v4 }
 0x3c9   : > { %v2484_v20 = vpop.xlane.xlu1 %2483 }
 0x3ca   : > { %v2560_v9 = vsel %vm6239_vm4, %v2558_v34, %v2484_v20  ;;  %vm2091_vm4 = vcmp.ge.f32.partialorder %v2089_v37, 0.0 }
 0x3cb   : > { %2564 = vrot.lane.b32.xlu1 %v2560_v9, %s3977_s0  ;;  %v2095_v19 = vsel %vm2091_vm4, %v2089_v37, %v2093_v8  ;;  %vm6392_vm4 = vcmask 72704  }
 0x3cc   : > { %1934 = vadd.xlane.f32.xlu0 %v1933_v47  ;;  %v2097_v44 = vmul.f32 %v2095_v19, %v5875_v53  ;;  %vm6394_vm5 = vmmov %vm6392_vm4 }
 0x3ce   : > { %v2101_v13 = vsel %vm959_vm15, %v2097_v44, 0.0 }
 0x3d0   : > { %1958 = vadd.xlane.f32.xlu0 %v1957_v41 }
 0x3d4   : > { %1982 = vadd.xlane.f32.xlu0 %v1981_v22 }
 0x3d8   : > { %2006 = vadd.xlane.f32.xlu0 %v2005_v62 }
 0x3dc   : > { %2030 = vadd.xlane.f32.xlu0 %v2029_v12 }
 0x3e0   : > { %2054 = vadd.xlane.f32.xlu0 %v2053_v48 }
 0x3e4   : > { %2078 = vadd.xlane.f32.xlu0 %v2077_v56 }
 0x3e8   : > { %2102 = vadd.xlane.f32.xlu0 %v2101_v13 }
 0x3f9   : > { %v2127_v26 = vpop.xlane.xlu0 %2126 }
 0x3fd   : > { %v1740_v10 = vpop.xlane.xlu1 %1739  ;;  %v2151_v2 = vpop.xlane.xlu0 %2150 }
 0x3fe   : > { %v2533_v28 = vsel %vm2488_vm9, %v2127_v26, %v2151_v2 }
 0x401   : > { %v1764_v31 = vpop.xlane.xlu1 %1763  ;;  %v2175_v60 = vpop.xlane.xlu0 %2174 }
 0x402   : > { %v2535_v55 = vsel %vm2491_vm11, %v2533_v28, %v2175_v60  ;;  %v2489_v41 = vsel %vm2488_vm9, %v1740_v10, %v1764_v31 }
 0x405   : > { %v1788_v54 = vpop.xlane.xlu1 %1787  ;;  %v2199_v58 = vpop.xlane.xlu0 %2198 }
 0x406   : > { %v2537_v9 = vsel %vm2494_vm12, %v2535_v55, %v2199_v58  ;;  %v2492_v52 = vsel %vm2491_vm11, %v2489_v41, %v1788_v54 }
 0x409   : > { %v1812_v24 = vpop.xlane.xlu1 %1811  ;;  %v2223_v49 = vpop.xlane.xlu0 %2222 }
 0x40a   : > { %v2539_v47 = vsel %vm2497_vm13, %v2537_v9, %v2223_v49  ;;  %v2495_v40 = vsel %vm2494_vm12, %v2492_v52, %v1812_v24 }
 0x40d   : > { %v1836_v46 = vpop.xlane.xlu1 %1835  ;;  %v2247_v33 = vpop.xlane.xlu0 %2246 }
 0x40e   : > { %v2541_v18 = vsel %vm2500_vm14, %v2539_v47, %v2247_v33  ;;  %v2498_v15 = vsel %vm2497_vm13, %v2495_v40, %v1836_v46  ;;  %v3767_v47 = vld [vmem:[%s6396_s26 + $0x8] sm:$0xff]  }
 0x411   : > { %v1860_v61 = vpop.xlane.xlu1 %1859  ;;  %v2271_v25 = vpop.xlane.xlu0 %2270 }
 0x412   : > { %v2543_v0 = vsel %vm2503_vm1, %v2541_v18, %v2271_v25  ;;  %v2501_v51 = vsel %vm2500_vm14, %v2498_v15, %v1860_v61 }
 0x415   : > { %v1884_v27 = vpop.xlane.xlu1 %1883  ;;  %v2295_v17 = vpop.xlane.xlu0 %2294 }
 0x416   : > { %v2545_v16 = vsel %vm6240_vm3, %v2543_v0, %v2295_v17  ;;  %v2504_v21 = vsel %vm2503_vm1, %v2501_v51, %v1884_v27  ;;  %v6404_v51 = vmov 0  }
 0x419   : > { %v1908_v53 = vpop.xlane.xlu1 %1907  ;;  %v2319_v32 = vpop.xlane.xlu0 %2318 }
 0x41a   : > { %v2547_v23 = vsel %vm959_vm15, %v2545_v16, %v2319_v32  ;;  %v2507_v59 = vsel %vm6240_vm3, %v2504_v21, %v1908_v53  ;;  %vm6395_vm3 = vmmov %vm6393_vm0  ;;  %v3770_v21 = vld [vmem:[%s6400_s30 + $0x4] ss:$16 sps:$4 sm:$0xff]  }
 0x41b   : > { %2777 = vmatprep.subr.bf16.mxu0 %v3770_v21  ;;  %v3791_v21 = vld [vmem:[%s6403_s25 + $0x90] sm:$0xff]  }
 0x41d   : > { %v1932_v63 = vpop.xlane.xlu1 %1931  ;;  %v2343_v35 = vpop.xlane.xlu0 %2342 }
 0x41e   : > { %v2549_v38 = vsel %vm6392_vm4, %v2547_v23, %v2343_v35  ;;  %v2509_v12 = vsel %vm959_vm15, %v2507_v59, %v1932_v63  ;;  %vm2570_vm4 = vcmask 130048   ;;  %v3773_v59 = vld [vmem:[%s6400_s30 + $0xc] ss:$16 sps:$4 sm:$0xff]  }
 0x421   : > { %v1956_v4 = vpop.xlane.xlu1 %1955  ;;  %v2367_v5 = vpop.xlane.xlu0 %2366 }
 0x422   : > { %v2551_v1 = vsel %vm2514_vm6, %v2549_v38, %v2367_v5  ;;  %v2512_v29 = vsel %vm6394_vm5, %v2509_v12, %v1956_v4  ;;  %v3781_v12 = vld [vmem:[%s6403_s25 + $0xc0] sm:$0xff]  }
 0x425   : > { %v1980_v3 = vpop.xlane.xlu1 %1979  ;;  %v2391_v43 = vpop.xlane.xlu0 %2390 }
 0x426   : > { %v2553_v45 = vsel %vm2517_vm7, %v2551_v1, %v2391_v43  ;;  %v2515_v8 = vsel %vm2514_vm6, %v2512_v29, %v1980_v3 }
 0x429   : > { %v2004_v34 = vpop.xlane.xlu1 %2003  ;;  %v2415_v20 = vpop.xlane.xlu0 %2414 }
 0x42a   : > { %v2555_v7 = vsel %vm2520_vm8, %v2553_v45, %v2415_v20  ;;  %v2518_v48 = vsel %vm2517_vm7, %v2515_v8, %v2004_v34  ;;  %v3766_v34 = vld [vmem:[%s6396_s26] sm:$0xff]   ;;  %s6431_s26 = sld [smem:[#allocation13_spill]] }
 0x42b   : > { %3620 = vmatpush3.bf16.msra.mxu1 %v3766_v34 }
 0x42d   : > { %v2028_v36 = vpop.xlane.xlu1 %2027  ;;  %v2439_v42 = vpop.xlane.xlu0 %2438 }
 0x42e   : > { %v2557_v62 = vsel %vm2523_vm10, %v2555_v7, %v2439_v42  ;;  %v2521_v19 = vsel %vm2520_vm8, %v2518_v48, %v2028_v36  ;;  %v6399_v36 = vmov 0.0   ;;  %v3768_v7 = vld [vmem:[%s6400_s30] ss:$16 sps:$4 sm:$0xff]  }
 0x42f   : > { %3621 = vmatprep.subr.bf16.mxu1 %v6399_v36  ;;  %2778 = vmatpush1.bf16.msra.mxu0 %v3768_v7  ;;  %v3504_v36 = vld [vmem:[%s6415_s2] ss:$0 sm:$0xff]  ;;  %v3790_v7 = vld [vmem:[%s6403_s25 + $0x10] sm:$0xff]  }
 0x430   : > { %3622 = vmatpush3.bf16.msra.mxu1 %v3767_v47  ;;  %p3550_p2 = scmp.ne.s32.totalorder %s6431_s26, 1 }
 0x431   : > { %v2052_v22 = vpop.xlane.xlu1 %2051  ;;  %v2463_v6 = vpop.xlane.xlu0 %2462  ;;  %2820 = vmatprep.subr.bf16.mxu1 %v3773_v59  ;;  %v3793_v59 = vld [vmem:[%s6403_s25 + $0xd8] sm:$0xff]  }
 0x432   : > { %v2559_v57 = vsel %vm2526_vm2, %v2557_v62, %v2463_v6  ;;  %v2524_v56 = vsel %vm2523_vm10, %v2521_v19, %v2052_v22  ;;  %v3771_v62 = vld [vmem:[%s6400_s30 + $0x8] ss:$16 sps:$4 sm:$0xff]   ;;  %v3853_v19 = vld [vmem:[#allocation2] sm:$0xff] }
 0x435   : > { %v2076_v30 = vpop.xlane.xlu1 %2075  ;;  %v2487_v37 = vpop.xlane.xlu0 %2486 }
 0x436   : > { %v2561_v50 = vsel %vm6393_vm0, %v2559_v57, %v2487_v37  ;;  %v2527_v44 = vsel %vm2526_vm2, %v2524_v56, %v2076_v30  ;;  %vm6398_vm0 = vmmov %vm6394_vm5  ;;  %v3776_v57 = vld [vmem:[%s6400_s30 + $0x24] ss:$16 sps:$4 sm:$0xff]   ;;  %v3777_v30 = vld [vmem:[%s6400_s30 + $0x28] ss:$16 sps:$4 sm:$0xff]  }
 0x437   : > { %2566 = vrot.lane.b32.xlu0 %v2561_v50, %s3977_s0  ;;  %2779 = vmatprep.subr.bf16.mxu0 %v3776_v57  ;;  %v3780_v37 = vld [vmem:[%s6403_s25 + $0x40] sm:$0xff]   ;;  %v3794_v57 = vld [vmem:[%s6403_s25 + $0x18] sm:$0xff]  }
 0x438   : > { %v3499_v50 = vld [vmem:[%s6407_s3] ss:$0 sm:$0xff] }
 0x439   : > { %v2100_v39 = vpop.xlane.xlu1 %2099  ;;  %v1743_v2 = vpop.xlane.xlu0 %1742 }
 0x43a   : > { %v2530_v13 = vsel %vm6395_vm3, %v2527_v44, %v2100_v39  ;;  %vm6397_vm3 = vcmask 56320  }
 0x43d   : > { %v2565_v26 = vpop.permute.xlu1 %2564  ;;  %v1767_v31 = vpop.xlane.xlu0 %1766 }
 0x43e   : > { %v2571_v10 = vsel %vm2570_vm4, %v2530_v13, %v2565_v26  ;;  %v2490_v32 = vsel %vm2488_vm9, %v1743_v2, %v1767_v31  ;;  %v3854_v26 = vld [vmem:[#allocation2 + $0x8] sm:$0xff] }
 0x43f   : > { %2575 = vrot.lane.b32.xlu1 %v2571_v10, %s3978_s13 }
 0x441   : > { %v1791_v60 = vpop.xlane.xlu0 %1790 }
 0x442   : > { %v2493_v63 = vsel %vm2491_vm11, %v2490_v32, %v1791_v60 }
 0x445   : > { %v1815_v54 = vpop.xlane.xlu0 %1814 }
 0x446   : > { %v2496_v35 = vsel %vm2494_vm12, %v2493_v63, %v1815_v54 }
 0x449   : > { %v1839_v58 = vpop.xlane.xlu0 %1838 }
 0x44a   : > { %v2499_v4 = vsel %vm2497_vm13, %v2496_v35, %v1839_v58 }
 0x44d   : > { %v1863_v24 = vpop.xlane.xlu0 %1862 }
 0x44e   : > { %v2502_v5 = vsel %vm2500_vm14, %v2499_v4, %v1863_v24 }
 0x451   : > { %v1887_v49 = vpop.xlane.xlu0 %1886 }
 0x452   : > { %v2505_v43 = vsel %vm2503_vm1, %v2502_v5, %v1887_v49 }
 0x455   : > { %v1911_v46 = vpop.xlane.xlu0 %1910 }
 0x456   : > { %v2508_v28 = vsel %vm6397_vm3, %v2505_v43, %v1911_v46  ;;  %vm6432_vm3 = vcmask (!%p3550_p2), 261120  }
 0x459   : > { %v1935_v33 = vpop.xlane.xlu0 %1934 }
 0x45a   : > { %v2510_v55 = vsel %vm959_vm15, %v2508_v28, %v1935_v33  ;;  %vm6401_vm15 = vcmask 121856  }
 0x45d   : > { %v1959_v61 = vpop.xlane.xlu0 %1958 }
 0x45e   : > { %v2513_v20 = vsel %vm6398_vm0, %v2510_v55, %v1959_v61  ;;  %vm6433_vm0 = vmmov (!%p3550_p2), %vm6432_vm3 }
 0x461   : > { %v1983_v25 = vpop.xlane.xlu0 %1982 }
 0x462   : > { %v2516_v9 = vsel %vm2514_vm6, %v2513_v20, %v1983_v25 }
 0x465   : > { %v2007_v27 = vpop.xlane.xlu0 %2006 }
 0x466   : > { %v2519_v18 = vsel %vm2517_vm7, %v2516_v9, %v2007_v27  ;;  %v3503_v9 = vld [vmem:[%s6413_s10] ss:$0 sm:$0xff] }
 0x469   : > { %v2031_v17 = vpop.xlane.xlu0 %2030 }
 0x46a   : > { %v2522_v42 = vsel %vm2520_vm8, %v2519_v18, %v2031_v17 }
 0x46d   : > { %v2055_v53 = vpop.xlane.xlu0 %2054 }
 0x46e   : > { %v2525_v16 = vsel %vm2523_vm10, %v2522_v42, %v2055_v53 }
 0x471   : > { %v2079_v3 = vpop.xlane.xlu0 %2078 }
 0x472   : > { %v2528_v41 = vsel %vm2526_vm2, %v2525_v16, %v2079_v3  ;;  %vm6402_vm2 = vcmask 261120  }
 0x473   : > { %vm6408_vm9 = vmmov %vm6402_vm2 }
 0x474   : > { %vm6409_vm11 = vmmov %vm6402_vm2 }
 0x475   : > { %v2103_v0 = vpop.xlane.xlu0 %2102  ;;  %vm6410_vm12 = vmmov %vm6402_vm2 }
 0x476   : > { %v2531_v23 = vsel %vm6401_vm15, %v2528_v41, %v2103_v0  ;;  %vm6411_vm13 = vmmov %vm6402_vm2 }
 0x477   : > { %vm6416_vm14 = vmmov %vm6402_vm2 }
 0x478   : > { %vm6417_vm1 = vmmov %vm6402_vm2 }
 0x479   : > { %vm6421_vm6 = vmmov %vm6417_vm1 }
 0x47a   : > { %vm6422_vm7 = vmmov %vm6417_vm1 }
 0x47b   : > { %vm6423_vm8 = vmmov %vm6417_vm1 }
 0x47c   : > { %vm6424_vm10 = vmmov %vm6417_vm1 }
 0x47d   : > { %vm6429_vm5 = vmmov %vm6417_vm1 }
 0x47e   : > { %vm6434_vm15 = vmmov (!%p3550_p2), %vm6433_vm0 }
 0x4a9   : > { %v2567_v52 = vpop.permute.xlu0 %2566 }
 0x4aa   : > { %v2572_v38 = vsel %vm2570_vm4, %v2531_v23, %v2567_v52  ;;  %v3782_v52 = vld [vmem:[%s6403_s25] sm:$0xff]   ;;  %vm6430_vm4 = vmmov %vm6417_vm1 }
 0x4ab   : > { %2577 = vrot.lane.b32.xlu1 %v2572_v38, %s3978_s13  ;;  %v3783_v38 = vld [vmem:[%s6403_s25 + $0x80] sm:$0xff]   ;;  %s6428_s13 = scalar_lea.vmem %s6427_s8, %s6405_s21 }
 0x4b1   : > { %v2576_v40 = vpop.permute.xlu1 %2575 }
 0x4b2   : > { %v2581_v22 = vadd.f32 %v2576_v40, %v4165_v11  ;;  %v3779_v11 = vld [vmem:[%s6400_s30 + $0x2c] ss:$16 sps:$4 sm:$0xff]  }
 0x51d   : > { %v2578_v1 = vpop.permute.xlu1 %2577 }
 0x51e   : > { %v2582_v6 = vadd.f32 %v2578_v1, %v4170_v14  ;;  %v3774_v14 = vld [vmem:[%s6400_s30 + $0x20] ss:$16 sps:$4 sm:$0xff]   ;;  %v3784_v1 = vld [vmem:[%s6403_s25 + $0x48] sm:$0xff]  }
 0x51f   : > { %2780 = vmatpush1.bf16.msra.mxu0 %v3774_v14  ;;  %v3796_v14 = vld [vmem:[%s6403_s25 + $0x60] sm:$0xff]  }
 0x520   : > { %v2583_v15 = vpack.c.bf16 %v2582_v6, %v2581_v22  ;;  %3567 = vmatprep.subr.bf16.mxu0 %v3780_v37  ;;  %v3785_v22 = vld [vmem:[%s6403_s25 + $0xc8] sm:$0xff]   ;;  %v3798_v37 = vld [vmem:[%s6403_s25 + $0x20] sm:$0xff]  }
 0x521   : > { %v3786_v6 = vld [vmem:[%s6403_s25 + $0x8] sm:$0xff]  }
 0x522   : > { %2596 = vrot.lane.b32.xlu0 %v2583_v15, %s3979_s22  ;;  %v3787_v15 = vld [vmem:[%s6403_s25 + $0x88] sm:$0xff]  }
 0x594   : > { %v2597_v45 = vpop.permute.xlu0 %2596 }
 0x595   : > { %3624 = vmatmul.mubr.msk.bf16.vlgmr.msra.gmra.mrb[0].mxu1 %vm6402_vm2, %v2597_v45  ;;  %v3788_v45 = vld [vmem:[%s6403_s25 + $0x50] sm:$0xff]   ;;  %vm6435_vm2 = vmmov (!%p3550_p2), %vm6433_vm0 }
 0x596   : > { %2852 = vmatprep.mubr.bf16.mxu1 %v6404_v51  ;;  %2821 = vmatpush1.bf16.msra.mxu1 %v3771_v62  ;;  %v3789_v51 = vld [vmem:[%s6403_s25 + $0xd0] sm:$0xff]   ;;  %v3792_v62 = vld [vmem:[%s6403_s25 + $0x58] sm:$0xff]  }
 0x597   : > { %2822 = vmatprep.subr.bf16.mxu1 %v3779_v11  ;;  %v3795_v11 = vld [vmem:[%s6403_s25 + $0x98] sm:$0xff]  }
 0x59a   : > { %2823 = vmatpush1.bf16.msra.mxu1 %v3777_v30  ;;  %v3797_v30 = vld [vmem:[%s6403_s25 + $0xe0] sm:$0xff]  }
 0x59b   : > { %3589 = vmatprep.subr.bf16.mxu1 %v3781_v12  ;;  %v3799_v12 = vld [vmem:[%s6403_s25 + $0xa0] sm:$0xff]  }
 0x668   : > { %v2647_v29 = vpop.f32.mrb[0].mxu1 }
 0x669   : > { %v2648_v8 = vadd.f32 %v3499_v50, %v2647_v29  ;;  %v3625_v48 = vpop.f32.mrb[1].mxu1  ;;  %v3801_v29 = vld [vmem:[%s6403_s25 + $0xe8] sm:$0xff]  }
 0x66a   : > { %v2650_v39 = vpop.f32.mrb[2].mxu1  ;;  %v3803_v48 = vld [vmem:[%s6403_s25 + $0xa8] sm:$0xff]  }
 0x66b   : > { %v2654_v56 = vadd.f32 %v3853_v19, %v2648_v8  ;;  %v2651_v44 = vadd.f32 %v3499_v50, %v2650_v39  ;;  %v3626_v13 = vpop.f32.mrb[3].mxu1  ;;  %v3800_v50 = vld [vmem:[%s6403_s25 + $0x68] sm:$0xff]   ;;  %v3804_v39 = vld [vmem:[%s6403_s25 + $0x70] sm:$0xff]  }
 0x66c   : > { %v3802_v8 = vld [vmem:[%s6403_s25 + $0x28] sm:$0xff]   ;;  %v3805_v19 = vld [vmem:[%s6403_s25 + $0xf0] sm:$0xff]   ;;  %v3808_v13 = vld [vmem:[%s6403_s25 + $0x78] sm:$0xff]  }
 0x66d   : > { %v2655_v10 = vadd.f32 %v3854_v26, %v2651_v44  ;;  %v2658_v2 = vsel %vm6408_vm9, %v2654_v56, 0.0  ;;  %v3807_v44 = vld [vmem:[%s6403_s25 + $0xb0] sm:$0xff]   ;;  %v3809_v26 = vld [vmem:[%s6403_s25 + $0xf8] sm:$0xff]   ;;  %vm3284_vm9 = vcmask (!%p3550_p2), 253952  }
 0x66f   : > { %v2659_v31 = vsel %vm6409_vm11, %v2655_v10, 0.0 }
 0x670   : > { %v2660_v60 = vadd.f32 %v2659_v31, %v2658_v2  ;;  %v3811_v2 = vld [vmem:[%s6403_s25 + $0xb8] sm:$0xff]   ;;  %v2714_v31 = vlaneseq }
 0x672   : > { %v2661_v54 = vrot.slane %v2660_v60, 4 }
 0x674   : > { %v2662_v58 = vadd.f32 %v2661_v54, %v2660_v60  ;;  %v2715_v60 = vshrl.u32 %v2714_v31, 7 }
 0x676   : > { %v2663_v24 = vrot.slane %v2662_v58, 2  ;;  %v2716_v54 = vsub.s32 0, %v2715_v60 }
 0x678   : > { %v2664_v49 = vadd.f32 %v2663_v24, %v2662_v58  ;;  %v2724_v58 = vsub.s32 2, %v2715_v60  ;;  %v2712_v24 = vld [vmem:[%s6418_s24] sm:$0xf] }
 0x67a   : > { %v2665_v46 = vrot.slane %v2664_v49, 1 }
 0x67c   : > { %v2666_v33 = vadd.f32 %v2665_v46, %v2664_v49  ;;  %v2720_v49 = vsub.s32 1, %v2715_v60  ;;  %v2728_v46 = vsub.s32 3, %v2715_v60 }
 0x67e   : > { %v2668_v61 = vmul.f32 0.0625, %v2666_v33  ;;  %v2717_v33 = vrot.slane %v2712_v24, %v2716_v54 }
 0x680   : > { %v2669_v25 = vsub.f32 %v2654_v56, %v2668_v61  ;;  %v2670_v27 = vsub.f32 %v2655_v10, %v2668_v61  ;;  %v3806_v56 = vld [vmem:[%s6403_s25 + $0x30] sm:$0xff]   ;;  %v3810_v10 = vld [vmem:[%s6403_s25 + $0x38] sm:$0xff]   ;;  %v2725_v61 = vrot.slane %v2712_v24, %v2724_v58 }
 0x682   : > { %v2671_v17 = vmul.f32 %v2669_v25, %v2669_v25  ;;  %v2672_v53 = vmul.f32 %v2670_v27, %v2670_v27  ;;  %v2689_v47 = vmul.f32 %v3503_v9, %v2669_v25  ;;  %v2690_v18 = vmul.f32 %v3503_v9, %v2670_v27 }
 0x683   : > { %v2721_v25 = vrot.slane %v2712_v24, %v2720_v49  ;;  %v2729_v27 = vrot.slane %v2712_v24, %v2728_v46 }
 0x684   : > { %v2673_v32 = vsel %vm6410_vm12, %v2671_v17, 0.0  ;;  %v2674_v63 = vsel %vm6411_vm13, %v2672_v53, 0.0 }
 0x685   : > { %v2675_v35 = vadd.f32 %v2674_v63, %v2673_v32 }
 0x687   : > { %v2676_v4 = vrot.slane %v2675_v35, 4 }
 0x689   : > { %v2677_v5 = vadd.f32 %v2676_v4, %v2675_v35 }
 0x68b   : > { %v2678_v3 = vrot.slane %v2677_v5, 2 }
 0x68d   : > { %v2679_v43 = vadd.f32 %v2678_v3, %v2677_v5 }
 0x68f   : > { %v2680_v28 = vrot.slane %v2679_v43, 1 }
 0x691   : > { %v2681_v55 = vadd.f32 %v2680_v28, %v2679_v43 }
 0x693   : > { %v2682_v34 = vmul.f32 0.0625, %v2681_v55 }
 0x695   : > { %v2691_v20 = vadd.f32 1e-05, %v2682_v34 }
 0x697   : > { %3844 = vrsqrt.f32 %v2691_v20 }
 0x6a1   : > { %v3845_v0 = vpop.eup %3844 }
 0x6a2   : > { %v2693_v42 = vmul.f32 %v3845_v0, %v2689_v47  ;;  %v2694_v16 = vmul.f32 %v3845_v0, %v2690_v18 }
 0x6a4   : > { %v6017_v41 = vadd.f32 %v3504_v36, %v2693_v42  ;;  %v6019_v23 = vadd.f32 %v3504_v36, %v2694_v16 }
 0x6a6   : > { %v2703_v40 = vpack.c.bf16 %v6019_v23, %v6017_v41 }
 0x6a8   : > { %3513 = vmatmul.mubr.msk.bf16.vlgmr.msra.gmra.mrb[4].mxu0 %vm6416_vm14, %v2703_v40  ;;  %3514 = vmatmul.mubr.msk.bf16.vlgmr.msra.gmra.mrb[4].mxu1 %vm6417_vm1, %v2703_v40 }
 0x6a9   : > { %3568 = vmatpush3.bf16.msra.mxu0 %v3782_v52  ;;  %3590 = vmatpush3.bf16.msra.mxu1 %v3783_v38 }
 0x6aa   : > { %3569 = vmatprep.subr.bf16.mxu0 %v3784_v1  ;;  %3591 = vmatprep.subr.bf16.mxu1 %v3785_v22 }
 0x6ad   : > { %3570 = vmatpush3.bf16.msra.mxu0 %v3786_v6  ;;  %3592 = vmatpush3.bf16.msra.mxu1 %v3787_v15 }
 0x6ae   : > { %3571 = vmatprep.subr.bf16.mxu0 %v3788_v45  ;;  %3593 = vmatprep.subr.bf16.mxu1 %v3789_v51 }
 0x6b1   : > { %3572 = vmatpush3.bf16.msra.mxu0 %v3790_v7  ;;  %3594 = vmatpush3.bf16.msra.mxu1 %v3791_v21  ;;  %v3515_v21 = vld [vmem:[%s6420_s15] ss:$0 sm:$0xff] }
 0x6b2   : > { %3573 = vmatprep.subr.bf16.mxu0 %v3792_v62  ;;  %3595 = vmatprep.subr.bf16.mxu1 %v3793_v59 }
 0x6b5   : > { %3574 = vmatpush3.bf16.msra.mxu0 %v3794_v57  ;;  %3596 = vmatpush3.bf16.msra.mxu1 %v3795_v11 }
 0x6b6   : > { %3575 = vmatprep.subr.bf16.mxu0 %v3796_v14  ;;  %3597 = vmatprep.subr.bf16.mxu1 %v3797_v30 }
 0x6b9   : > { %3576 = vmatpush3.bf16.msra.mxu0 %v3798_v37  ;;  %3598 = vmatpush3.bf16.msra.mxu1 %v3799_v12 }
 0x6ba   : > { %3577 = vmatprep.subr.bf16.mxu0 %v3800_v50  ;;  %3599 = vmatprep.subr.bf16.mxu1 %v3801_v29 }
 0x6bd   : > { %3578 = vmatpush3.bf16.msra.mxu0 %v3802_v8  ;;  %3600 = vmatpush3.bf16.msra.mxu1 %v3803_v48 }
 0x6be   : > { %3579 = vmatprep.subr.bf16.mxu0 %v3804_v39  ;;  %3601 = vmatprep.subr.bf16.mxu1 %v3805_v19 }
 0x6c1   : > { %3580 = vmatpush3.bf16.msra.mxu0 %v3806_v56  ;;  %3602 = vmatpush3.bf16.msra.mxu1 %v3807_v44 }
 0x6c2   : > { %3581 = vmatprep.subr.bf16.mxu0 %v3808_v13  ;;  %3603 = vmatprep.subr.bf16.mxu1 %v3809_v26 }
 0x6c5   : > { %3582 = vmatpush3.bf16.msra.mxu0 %v3810_v10  ;;  %3604 = vmatpush3.bf16.msra.mxu1 %v3811_v2 }
 0x77b   : > { %v2811_v17 = vpop.f32.mrb[4].mxu0  ;;  %v2854_v53 = vpop.f32.mrb[4].mxu1 }
 0x77c   : > { %v2812_v32 = vadd.f32 %v2811_v17, %v2717_v33  ;;  %v2855_v63 = vadd.f32 %v2854_v53, %v2725_v61  ;;  %v2813_v35 = vpop.f32.mrb[5].mxu0  ;;  %v2856_v4 = vpop.f32.mrb[5].mxu1 }
 0x77d   : > { %v2814_v5 = vadd.f32 %v2813_v35, %v2721_v25  ;;  %v2857_v3 = vadd.f32 %v2856_v4, %v2729_v27  ;;  %v2815_v43 = vpop.f32.mrb[6].mxu0  ;;  %v2858_v28 = vpop.f32.mrb[6].mxu1 }
 0x77e   : > { %v2816_v55 = vadd.f32 %v2815_v43, %v2717_v33  ;;  %v2859_v34 = vadd.f32 %v2858_v28, %v2725_v61  ;;  %v2817_v20 = vpop.f32.mrb[7].mxu0  ;;  %v2860_v9 = vpop.f32.mrb[7].mxu1  ;;  %v2863_v0 = vmax.f32 %v2812_v32, 0.0  ;;  %v2865_v36 = vmax.f32 %v2855_v63, 0.0  ;;  %v3548_v43 = vld [vmem:[%s6426_s29] ss:$0 sm:$0xff] }
 0x77f   : > { %v2818_v47 = vadd.f32 %v2817_v20, %v2721_v25  ;;  %v2861_v18 = vadd.f32 %v2860_v9, %v2729_v27  ;;  %v2864_v52 = vmax.f32 %v2814_v5, 0.0  ;;  %v2866_v38 = vmax.f32 %v2857_v3, 0.0  ;;  %v3549_v20 = vld [vmem:[%s6428_s13] ss:$0 sm:$0xff] }
 0x780   : > { %v2867_v42 = vmax.f32 %v2816_v55, 0.0  ;;  %v2869_v16 = vmax.f32 %v2859_v34, 0.0 }
 0x781   : > { %v2868_v40 = vmax.f32 %v2818_v47, 0.0  ;;  %v2870_v1 = vmax.f32 %v2861_v18, 0.0 }
 0x782   : > { %v2871_v22 = vpack.c.bf16 %v2867_v42, %v2863_v0  ;;  %v2873_v6 = vpack.c.bf16 %v2869_v16, %v2865_v36 }
 0x783   : > { %v2872_v15 = vpack.c.bf16 %v2868_v40, %v2864_v52  ;;  %v2874_v45 = vpack.c.bf16 %v2870_v1, %v2866_v38 }
 0x785   : > { %3170 = vmatprep.mubr.bf16.mxu0 %v2872_v15  ;;  %3211 = vmatprep.mubr.bf16.mxu1 %v2874_v45 }
 0x786   : > { %3171 = vmatmul.mubr.bf16.vlgmr.msra.gmra.mrb[8].mxu0 %v2871_v22  ;;  %3212 = vmatmul.mubr.bf16.vlgmr.msra.gmra.mrb[8].mxu1 %v2873_v6 }
 0x859   : > { %v3583_v51 = vpop.f32.mrb[8].mxu0  ;;  %v3605_v7 = vpop.f32.mrb[8].mxu1 }
 0x85a   : > { %v3584_v62 = vpop.f32.mrb[9].mxu0  ;;  %v3606_v59 = vpop.f32.mrb[9].mxu1 }
 0x85b   : > { %v3585_v57 = vadd.f32 %v3584_v62, %v3583_v51  ;;  %v3607_v11 = vadd.f32 %v3606_v59, %v3605_v7  ;;  %v3586_v14 = vpop.f32.mrb[10].mxu0  ;;  %v3608_v30 = vpop.f32.mrb[10].mxu1 }
 0x85c   : > { %v3587_v37 = vpop.f32.mrb[11].mxu0  ;;  %v3609_v12 = vpop.f32.mrb[11].mxu1 }
 0x85d   : > { %v3173_v50 = vadd.f32 %v3585_v57, %v3515_v21  ;;  %v3588_v29 = vadd.f32 %v3587_v37, %v3586_v14  ;;  %v3610_v8 = vadd.f32 %v3609_v12, %v3608_v30 }
 0x85f   : > { %v3214_v48 = vadd.f32 %v3607_v11, %v3173_v50  ;;  %v3176_v39 = vadd.f32 %v3588_v29, %v3515_v21 }
 0x861   : > { %v3220_v19 = vadd.f32 %v3214_v48, %v6017_v41  ;;  %v3217_v56 = vadd.f32 %v3610_v8, %v3176_v39 }
 0x863   : > { %v3221_v44 = vadd.f32 %v3217_v56, %v6019_v23  ;;  %v3224_v13 = vsel %vm6421_vm6, %v3220_v19, 0.0 }
 0x865   : > { %v3225_v26 = vsel %vm6422_vm7, %v3221_v44, 0.0 }
 0x866   : > { %v3226_v10 = vadd.f32 %v3225_v26, %v3224_v13 }
 0x868   : > { %v3227_v2 = vrot.slane %v3226_v10, 4 }
 0x86a   : > { %v3228_v31 = vadd.f32 %v3227_v2, %v3226_v10 }
 0x86c   : > { %v3229_v60 = vrot.slane %v3228_v31, 2 }
 0x86e   : > { %v3230_v54 = vadd.f32 %v3229_v60, %v3228_v31 }
 0x870   : > { %v3231_v58 = vrot.slane %v3230_v54, 1 }
 0x872   : > { %v3232_v24 = vadd.f32 %v3231_v58, %v3230_v54 }
 0x874   : > { %v3233_v49 = vmul.f32 0.0625, %v3232_v24 }
 0x876   : > { %v3234_v46 = vsub.f32 %v3220_v19, %v3233_v49  ;;  %v3235_v33 = vsub.f32 %v3221_v44, %v3233_v49 }
 0x878   : > { %v3236_v61 = vmul.f32 %v3234_v46, %v3234_v46  ;;  %v3237_v41 = vmul.f32 %v3235_v33, %v3235_v33  ;;  %v3254_v28 = vmul.f32 %v3548_v43, %v3234_v46  ;;  %v3255_v55 = vmul.f32 %v3548_v43, %v3235_v33 }
 0x87a   : > { %v3238_v25 = vsel %vm6423_vm8, %v3236_v61, 0.0  ;;  %v3239_v23 = vsel %vm6424_vm10, %v3237_v41, 0.0 }
 0x87b   : > { %v3240_v27 = vadd.f32 %v3239_v23, %v3238_v25 }
 0x87d   : > { %v3241_v17 = vrot.slane %v3240_v27, 4 }
 0x87f   : > { %v3242_v53 = vadd.f32 %v3241_v17, %v3240_v27 }
 0x881   : > { %v3243_v32 = vrot.slane %v3242_v53, 2 }
 0x883   : > { %v3244_v63 = vadd.f32 %v3243_v32, %v3242_v53 }
 0x885   : > { %v3245_v35 = vrot.slane %v3244_v63, 1 }
 0x887   : > { %v3246_v4 = vadd.f32 %v3245_v35, %v3244_v63 }
 0x889   : > { %v3247_v5 = vmul.f32 0.0625, %v3246_v4 }
 0x88b   : > { %v3256_v3 = vadd.f32 1e-05, %v3247_v5 }
 0x88d   : > { %3846 = vrsqrt.f32 %v3256_v3 }
 0x897   : > { %v3847_v34 = vpop.eup %3846  ;;  %3273 = sbr.rel (%p3550_p2) target bundleno = 2220 (0x8ac), region = 88 }
 0x898   : > { %v3258_v9 = vmul.f32 %v3847_v34, %v3254_v28  ;;  %v3259_v47 = vmul.f32 %v3847_v34, %v3255_v55 }
 0x89a   : > { %v3266_v18 = vadd.f32 %v3549_v20, %v3258_v9  ;;  %v3267_v0 = vadd.f32 %v3549_v20, %v3259_v47 }
 0x89c   : > { %3268 = vst.msk [vmem:[#allocation2] sm:$0xff] %vm6429_vm5, %v3266_v18  ;;  %v3276_v36 = vsel (!%p3550_p2), %vm6434_vm15, %v3266_v18, 0.0  ;;  %v3286_v42 = vsel (!%p3550_p2), %vm6435_vm2, %v3267_v0, 0.0 }
 0x89d   : > { %3269 = vst.msk [vmem:[#allocation2 + $0x8] sm:$0xff] %vm6430_vm4, %v3267_v0  ;;  %v3277_v16 = vrot.slane (!%p3550_p2), %v3276_v36, 4  ;;  %v3287_v52 = vrot.slane (!%p3550_p2), %v3286_v42, 4 }
 0x89e   : > { %3274 = vst.msk [vmem:[#allocation6] sm:$0xff] %vm6432_vm3, %v3266_v18 }
 0x89f   : > { %3275 = vst.msk [vmem:[#allocation6 + $0x8] sm:$0xff] %vm6433_vm0, %v3267_v0  ;;  %v3278_v38 = vadd.f32 %v3277_v16, %v3276_v36  ;;  %v3288_v40 = vadd.f32 %v3287_v52, %v3286_v42 }
 0x8a1   : > { %v3279_v1 = vrot.slane %v3278_v38, 2  ;;  %v3289_v22 = vrot.slane %v3288_v40, 2 }
 0x8a3   : > { %v3280_v6 = vadd.f32 %v3279_v1, %v3278_v38  ;;  %v3290_v15 = vadd.f32 %v3289_v22, %v3288_v40 }
 0x8a5   : > { %v3281_v45 = vrot.slane %v3280_v6, 1  ;;  %v3291_v51 = vrot.slane %v3290_v15, 1 }
 0x8a7   : > { %v3282_v7 = vadd.f32 %v3281_v45, %v3280_v6  ;;  %v3292_v21 = vadd.f32 %v3291_v51, %v3290_v15 }
 0x8a9   : > { %v3283_v62 = vmul.f32 0.125, %v3282_v7  ;;  %v3293_v59 = vmul.f32 0.125, %v3292_v21 }
 0x8ab   : > { %3285 = vst.msk [vmem:[#allocation7] sm:$0x1] %vm3284_vm9, %v3283_v62  ;;  %3294 = vst.msk [vmem:[#allocation7 + $0x1] sm:$0x1] %vm3284_vm9, %v3293_v59 }
 0x8ac PF: > { %s6436_s30 = sld [smem:[#allocation13_spill]]  ;;  %s3980_s22 = smov [#allocation6]  }
 0x8ad   : > { %s3301_s25 = sshll.u32 %s3980_s22, 4  ;;  %s3302_s25 = int_to_ptr.vmem [resolvable:$true] %s3301_s25 }
 0x8ae   : > { %s3870_s21 = scalar_lea.vmem %s3302_s25, 256  ;;  %p3877_p7 = scmp.lt.s32.totalorder %s3302_s25, %s3302_s25 }
 0x8af   : > { %p3871_p4 = scmp.ne.s32.totalorder %s3302_s25, %s3870_s21  ;;  %p3878_p8 = scmp.lt.s32.totalorder %s3870_s21, %s3870_s21 }
 0x8b1   : > { %p3879_p9 = por %p3878_p8, %p3877_p7 }
 0x8b2   : > { %p3645_p3 = scmp.eq.s32.totalorder %s6436_s30, 1 }
 0x8b4   : > { %p3872_p5 = pnand %p3871_p4, %p3645_p3 }
 0x8b6   : > { %p3873_p6 = pneg %p3872_p5 }
 0x8b8   : > { %p3880_p10 = pnand %p3879_p9, %p3873_p6 }
 0x8ba   : > { %3883 = shalt.err (!%p3880_p10)
}
 0x8bb   : > { %s6437_s18 = sld [smem:[#allocation51_spill]] }
 0x8c1   : > { %s6438_s3 = smov %s6437_s18  ;;  %s3884_s6 = scalar_lea.hbm %s6437_s18, 256 }
 0x8c2   : > { %p3885_p11 = scmp.ne.s32.totalorder %s6438_s3, %s3884_s6  ;;  %p3890_p0 = scmp.lt.u32.totalorder %s3884_s6, %s6438_s3 }
 0x8c4   : > { %p3886_p12 = pnand %p3885_p11, %p3645_p3 }
 0x8c6   : > { %p3887_p13 = pneg %p3886_p12 }
 0x8c8   : > { %p3892_p1 = pnand %p3890_p0, %p3887_p13 }
 0x8ca   : > { %3895 = shalt.err (!%p3892_p1)
}
 0x8cb   : > { %s3981_s23 = smov 128   ;;  %s3982_s14 = smov 8  }
 0x8cc   : > { %3632 = dma.vmem_to_hbm [thread:$0]  (%p3645_p3), %s3302_s25, 256, %s6438_s3, [#allocation4], %s3981_s23, %s3981_s23, %s3982_s14  }
 0x8cd   : > { %s3983_s9 = smov [#allocation7]  }
 0x8ce   : > { %s3315_s5 = sshll.u32 %s3983_s9, 4  ;;  %s3316_s5 = int_to_ptr.vmem [resolvable:$true] %s3315_s5 }
 0x8cf   : > { %s3896_s19 = scalar_lea.vmem %s3316_s5, 32  ;;  %p3903_p6 = scmp.lt.s32.totalorder %s3316_s5, %s3316_s5 }
 0x8d0   : > { %p3897_p2 = scmp.ne.s32.totalorder %s3316_s5, %s3896_s19  ;;  %p3904_p7 = scmp.lt.s32.totalorder %s3896_s19, %s3896_s19 }
 0x8d2   : > { %p3898_p4 = pnand %p3897_p2, %p3645_p3  ;;  %p3905_p8 = por %p3904_p7, %p3903_p6 }
 0x8d4   : > { %p3899_p5 = pneg %p3898_p4 }
 0x8d6   : > { %p3906_p9 = pnand %p3905_p8, %p3899_p5 }
 0x8d8   : > { %3909 = shalt.err (!%p3906_p9)
}
 0x8d9   : > { %s6439_s16 = sld [smem:[#allocation52_spill]] }
 0x8df   : > { %s3910_s1 = scalar_lea.hbm %s6439_s16, 32 }
 0x8e0   : > { %p3911_p10 = scmp.ne.s32.totalorder %s6439_s16, %s3910_s1  ;;  %p3916_p13 = scmp.lt.u32.totalorder %s3910_s1, %s6439_s16 }
 0x8e2   : > { %p3912_p11 = pnand %p3911_p10, %p3645_p3 }
 0x8e4   : > { %p3913_p12 = pneg %p3912_p11 }
 0x8e6   : > { %p3918_p0 = pnand %p3916_p13, %p3913_p12 }
 0x8e8   : > { %3921 = shalt.err (!%p3918_p0)
}
 0x8e9   : > { %3634 = dma.vmem_to_hbm [thread:$0]  (%p3645_p3), %s3316_s5, 32, %s6439_s16, [#allocation8]  }
 0x8ea   : > { %3931 = dma.done.wait (%p3645_p3), [#allocation4], 256  }
 0x8eb   : > { %3933 = vsyncadd (%p3645_p3), [#allocation4], 4294967040 }
 0x8ec   : > { %3935 = dma.done.wait (%p3645_p3), [#allocation8], 32  }
 0x8ed   : > { %3937 = vsyncadd (%p3645_p3), [#allocation8], 4294967264 }
 0x8ee PF: > { %s6440_s22 = sld [smem:[#allocation12_spill]] }
 0x8f4   : > { %s29_s18 = sadd.s32 1, %s6440_s22  }
 0x8f5   : > { %p26_p1 = scmp.ge.s32.totalorder %s29_s18, 4  }
 0x8f7   :  { %28 = sbr.rel (!%p26_p1) target bundleno = 20 (0x14), region = 154 }
 0x8fe   :  { %3332 = vsyncpa [#allocation4], 1 }
 0x8ff   :  { %3334 = vsyncpa [#allocation4 + $0x1], 1 }
 0x900   :  { %3335 = vsyncpa [#allocation8], 1 }
 0x901   :  { %3336 = vsyncpa [#allocation5], 1 }
 0x902   :  { %3338 = vsyncpa [#allocation5 + $0x1], 1 }

</bundles_post_ra>
